<compile_context>
chip_gen: v7x
topology: tpu7x:2x2x1
jax: 0.10.0
libtpu: 0.0.40
codegen_flags: <defaults>
</compile_context>

<pallas_src>
import jax
import jax.numpy as jnp
from jax.experimental import pallas as pl
from jax.experimental.pallas import tpu as pltpu


def _pick_batch_block(B: int, bytes_per_image: int, max_block_bytes: int) -> int:
    """Largest divisor of B (multiple of 8, or B itself, to satisfy the (8,128)
    block constraint) whose per-step activation block stays under the budget."""
    cands = [d for d in range(1, B + 1) if B % d == 0 and (d % 8 == 0 or d == B)]
    fitting = [d for d in cands if d * bytes_per_image <= max_block_bytes]
    return max(fitting) if fitting else min(cands)


def _se_kernel(x_ref, p_ref, w1t_ref, w2t_ref, e_ref, o_ref):
    # Squeeze: global average pool of every channel in one MXU matmul.
    # (Bblk, C*HW) @ (C*HW, C) -> (Bblk, C)
    pooled = jnp.dot(x_ref[...], p_ref[...], preferred_element_type=jnp.float32)
    # Excitation MLP: fc1 -> ReLU -> fc2 -> sigmoid.
    h = jnp.maximum(
        jnp.dot(pooled, w1t_ref[...], preferred_element_type=jnp.float32), 0.0)
    g = jax.nn.sigmoid(
        jnp.dot(h, w2t_ref[...], preferred_element_type=jnp.float32))      # (Bblk, C)
    # Expand per-channel gates to full lane width with one matmul against the
    # constant expansion matrix, then do a single unmasked lane-dense store.
    glanes = jnp.dot(g, e_ref[...], preferred_element_type=jnp.float32)    # (Bblk, C*HW)
    # Re-read x at the point of use (no long-lived copy across phases).
    o_ref[...] = (x_ref[...] * glanes).astype(o_ref.dtype)


def squeeze_excitation(x, w1, w2, *, max_block_bytes=2 << 20):
    """SE block.  x: (B, C, H, W); w1: (C//r, C); w2: (C, C//r)
    (PyTorch nn.Linear weight layout, bias=False).  Returns (B, C, H, W)."""
    B, C, H, W = x.shape
    HW = H * W
    CHW = C * HW
    Cr = w1.shape[0]
    assert w1.shape == (Cr, C) and w2.shape == (C, Cr)

    if C * CHW * 4 > (8 << 20):
        # TODO(synk): for very large C*H*W the (C*HW, C) pooling/expansion matrices
        # no longer fit VMEM; a channel-folded per-segment scheme is needed there.
        raise NotImplementedError("feature map too large for the one-shot SE kernel")

    itemsize = x.dtype.itemsize
    Bblk = _pick_batch_block(B, CHW * itemsize, max_block_bytes)
    grid = (B // Bblk,)

    # Free, fully contiguous row-major flatten: column j = c*HW + hw.
    x2 = x.reshape(B, CHW)

    # Constant pooling / expansion matrices (built once in the wrapper).
    seg = jnp.arange(CHW, dtype=jnp.int32) // HW            # channel owning lane j
    ch = jnp.arange(C, dtype=jnp.int32)
    p_mat = (seg[:, None] == ch[None, :]).astype(jnp.float32) * (1.0 / HW)  # (CHW, C)
    e_mat = (ch[:, None] == seg[None, :]).astype(jnp.float32)               # (C, CHW)
    w1t = jnp.transpose(w1)                                   # (C, Cr)
    w2t = jnp.transpose(w2)                                   # (Cr, C)

    # VMEM budget: double-buffered in/out activation blocks + constants + the
    # gate-lane temporary, with slack; capped for v7x's 64 MiB physical VMEM.
    block_bytes = Bblk * CHW * itemsize
    vmem_bytes = int(5 * block_bytes + 4 * C * CHW * 4 + 8 * (C * Cr) + (2 << 20))
    vmem_bytes = max(8 << 20, min(vmem_bytes, 48 << 20))

    out = pl.pallas_call(
        _se_kernel,
        out_shape=jax.ShapeDtypeStruct((B, CHW), x.dtype),
        grid=grid,
        in_specs=[
            pl.BlockSpec((Bblk, CHW), lambda i: (i, 0)),
            pl.BlockSpec((CHW, C), lambda i: (0, 0)),
            pl.BlockSpec((C, Cr), lambda i: (0, 0)),
            pl.BlockSpec((Cr, C), lambda i: (0, 0)),
            pl.BlockSpec((C, CHW), lambda i: (0, 0)),
        ],
        out_specs=pl.BlockSpec((Bblk, CHW), lambda i: (i, 0)),
        input_output_aliases={0: 0},          # rescale the activation in place
        compiler_params=pltpu.CompilerParams(
            dimension_semantics=("parallel",),
            vmem_limit_bytes=vmem_bytes),
    )(x2, p_mat, w1t, w2t, e_mat)
    return out.reshape(B, C, H, W)


def se_reference(x, w1, w2):
    """Pure-JAX reference matching the PyTorch SqueezeExcitation.forward."""
    y = jnp.mean(x, axis=(2, 3))                 # AdaptiveAvgPool2d(1)
    y = jnp.maximum(y @ w1.T, 0.0)               # Linear(C, C//r, bias=False) + ReLU
    y = jax.nn.sigmoid(y @ w2.T)                 # Linear(C//r, C, bias=False) + Sigmoid
    return x * y[:, :, None, None]


def _run_case(key, B, C, H, W, reduction, **kwargs):
    Cr = C // reduction
    kx, k1, k2 = jax.random.split(key, 3)
    x = jax.random.normal(kx, (B, C, H, W), dtype=jnp.float32)
    # PyTorch Linear weight layout is (out, in).
    w1 = jax.random.normal(k1, (Cr, C), dtype=jnp.float32) * (1.0 / jnp.sqrt(C))
    w2 = jax.random.normal(k2, (C, Cr), dtype=jnp.float32) * (1.0 / jnp.sqrt(Cr))

    ref = se_reference(x, w1, w2)
    out = jax.block_until_ready(squeeze_excitation(x, w1, w2, **kwargs))

    assert out.shape == (B, C, H, W)
    assert jnp.allclose(out, ref, atol=3e-5, rtol=1e-5), "mismatch vs reference"


if __name__ == "__main__":
    key = jax.random.PRNGKey(0)
    k0, k1, k2 = jax.random.split(key, 3)

    # Main config (stem output scale of the model: in_channels=64, reduction=16):
    # one large lane-dense step, grid=(1,).
    _run_case(k0, B=16, C=64, H=8, W=8, reduction=16)

    # Multi-step grid: force Bblk=8 -> grid=(4,) to exercise the batch pipeline
    # and in-place aliasing across steps.
    _run_case(k1, B=32, C=64, H=8, W=8, reduction=16, max_block_bytes=128 * 1024)

    # Odd spatial size (HW=49): no channel fold exists, but the flattened layout
    # handles it with the same single-matmul pooling / gate-expansion path.
    _run_case(k2, B=8, C=32, H=7, W=7, reduction=8)

    print("KERNEL_OK")
</pallas_src>

<mosaic_0001>
module attributes {stable_mosaic.version = 11 : i64} {
  func.func @_se_kernel(%arg0: i32, %arg1: memref<16x4096xf32, #tpu.memory_space<vmem>>, %arg2: memref<4096x64xf32, #tpu.memory_space<vmem>>, %arg3: memref<64x4xf32, #tpu.memory_space<vmem>>, %arg4: memref<4x64xf32, #tpu.memory_space<vmem>>, %arg5: memref<64x4096xf32, #tpu.memory_space<vmem>>, %arg6: memref<16x4096xf32, #tpu.memory_space<vmem>>) attributes {dimension_semantics = [#tpu.dimension_semantics<parallel>], iteration_bounds = array<i64: 1>, scalar_prefetch = 0 : i64, scratch_operands = 0 : i64, tpu.core_type = #tpu.core_type<tc>, window_params = [{transform_indices = @transform_0, window_bounds = array<i64: 16, 4096>}, {pipeline_mode = #tpu.pipeline_mode<synchronous>, transform_indices = @transform_1, window_bounds = array<i64: 4096, 64>}, {pipeline_mode = #tpu.pipeline_mode<synchronous>, transform_indices = @transform_2, window_bounds = array<i64: 64, 4>}, {pipeline_mode = #tpu.pipeline_mode<synchronous>, transform_indices = @transform_3, window_bounds = array<i64: 4, 64>}, {pipeline_mode = #tpu.pipeline_mode<synchronous>, transform_indices = @transform_4, window_bounds = array<i64: 64, 4096>}, {transform_indices = @transform_5, window_bounds = array<i64: 16, 4096>}]} {
    %c0 = arith.constant 0 : index
    %c0_0 = arith.constant 0 : index
    %0 = vector.load %arg1[%c0, %c0_0] : memref<16x4096xf32, #tpu.memory_space<vmem>>, vector<16x4096xf32>
    %c0_1 = arith.constant 0 : index
    %c0_2 = arith.constant 0 : index
    %1 = vector.load %arg2[%c0_1, %c0_2] : memref<4096x64xf32, #tpu.memory_space<vmem>>, vector<4096x64xf32>
    %cst = arith.constant dense<0.000000e+00> : vector<16x64xf32>
    %2 = tpu.matmul %0, %1, %cst {dimension_numbers = #tpu.dot_dimension_numbers<[1], [0], [0], [1], [0, 0, 1, 1], [], []>} : vector<16x4096xf32>, vector<4096x64xf32>, vector<16x64xf32> -> vector<16x64xf32>
    %c0_3 = arith.constant 0 : index
    %c0_4 = arith.constant 0 : index
    %3 = vector.load %arg3[%c0_3, %c0_4] : memref<64x4xf32, #tpu.memory_space<vmem>>, vector<64x4xf32>
    %cst_5 = arith.constant dense<0.000000e+00> : vector<16x4xf32>
    %4 = tpu.matmul %2, %3, %cst_5 {dimension_numbers = #tpu.dot_dimension_numbers<[1], [0], [0], [1], [0, 0, 1, 1], [], []>} : vector<16x64xf32>, vector<64x4xf32>, vector<16x4xf32> -> vector<16x4xf32>
    %cst_6 = arith.constant 0.000000e+00 : f32
    %5 = vector.broadcast %cst_6 : f32 to vector<16x4xf32>
    %6 = arith.maximumf %4, %5 : vector<16x4xf32>
    %c0_7 = arith.constant 0 : index
    %c0_8 = arith.constant 0 : index
    %7 = vector.load %arg4[%c0_7, %c0_8] : memref<4x64xf32, #tpu.memory_space<vmem>>, vector<4x64xf32>
    %cst_9 = arith.constant dense<0.000000e+00> : vector<16x64xf32>
    %8 = tpu.matmul %6, %7, %cst_9 {dimension_numbers = #tpu.dot_dimension_numbers<[1], [0], [0], [1], [0, 0, 1, 1], [], []>} : vector<16x4xf32>, vector<4x64xf32>, vector<16x64xf32> -> vector<16x64xf32>
    %9 = arith.negf %8 : vector<16x64xf32>
    %10 = math.exp %9 : vector<16x64xf32>
    %cst_10 = arith.constant 1.000000e+00 : f32
    %11 = vector.broadcast %cst_10 : f32 to vector<16x64xf32>
    %12 = arith.addf %11, %10 : vector<16x64xf32>
    %13 = arith.divf %11, %12 : vector<16x64xf32>
    %c0_11 = arith.constant 0 : index
    %c0_12 = arith.constant 0 : index
    %14 = vector.load %arg5[%c0_11, %c0_12] : memref<64x4096xf32, #tpu.memory_space<vmem>>, vector<64x4096xf32>
    %cst_13 = arith.constant dense<0.000000e+00> : vector<16x4096xf32>
    %15 = tpu.matmul %13, %14, %cst_13 {dimension_numbers = #tpu.dot_dimension_numbers<[1], [0], [0], [1], [0, 0, 1, 1], [], []>} : vector<16x64xf32>, vector<64x4096xf32>, vector<16x4096xf32> -> vector<16x4096xf32>
    %c0_14 = arith.constant 0 : index
    %c0_15 = arith.constant 0 : index
    %16 = vector.load %arg1[%c0_14, %c0_15] : memref<16x4096xf32, #tpu.memory_space<vmem>>, vector<16x4096xf32>
    %17 = arith.mulf %16, %15 : vector<16x4096xf32>
    %c0_16 = arith.constant 0 : index
    %c0_17 = arith.constant 0 : index
    %18 = vector.load %arg6[%c0_16, %c0_17] : memref<16x4096xf32, #tpu.memory_space<vmem>>, vector<16x4096xf32>
    tpu.vector_store %arg6[%c0_16, %c0_17], %17 {strides = array<i32>} : memref<16x4096xf32, #tpu.memory_space<vmem>>, vector<16x4096xf32>,
    return
  }
  func.func @transform_0(%arg0: i32) -> (i32, i32) {
    %c0_i32 = arith.constant 0 : i32
    %c0_i32_0 = arith.constant 0 : i32
    return %arg0, %c0_i32 : i32, i32
  }
  func.func @transform_1(%arg0: i32) -> (i32, i32) {
    %c0_i32 = arith.constant 0 : i32
    %c0_i32_0 = arith.constant 0 : i32
    %c0_i32_1 = arith.constant 0 : i32
    return %c0_i32, %c0_i32_0 : i32, i32
  }
  func.func @transform_2(%arg0: i32) -> (i32, i32) {
    %c0_i32 = arith.constant 0 : i32
    %c0_i32_0 = arith.constant 0 : i32
    %c0_i32_1 = arith.constant 0 : i32
    return %c0_i32, %c0_i32_0 : i32, i32
  }
  func.func @transform_3(%arg0: i32) -> (i32, i32) {
    %c0_i32 = arith.constant 0 : i32
    %c0_i32_0 = arith.constant 0 : i32
    %c0_i32_1 = arith.constant 0 : i32
    return %c0_i32, %c0_i32_0 : i32, i32
  }
  func.func @transform_4(%arg0: i32) -> (i32, i32) {
    %c0_i32 = arith.constant 0 : i32
    %c0_i32_0 = arith.constant 0 : i32
    %c0_i32_1 = arith.constant 0 : i32
    return %c0_i32, %c0_i32_0 : i32, i32
  }
  func.func @transform_5(%arg0: i32) -> (i32, i32) {
    %c0_i32 = arith.constant 0 : i32
    %c0_i32_0 = arith.constant 0 : i32
    return %arg0, %c0_i32 : i32, i32
  }
}

</mosaic_0001>

<bundles_post_ra>
// kernel: tpu_custom_call.1
= control target key start
LH: loop header
LB: loop body
LE: loop exit
PB: predicated region body
PF: predicated region fallthrough
CT: control target
= control target key end

     0   :  { %10 = vsyncpa [#allocation3], 0  ;;  %s7732_s0 = inlined_call_operand.hbm [shape: f32[16,4096], index: 0, kind: input, shape index: {}, may-alias: {0,5}]   ;;  %s7733_s1 = inlined_call_operand.vmem [shape: f32[4096,64], index: 1, kind: input, shape index: {}]   ;;  %s7734_s2 = inlined_call_operand.vmem [shape: f32[64,4], index: 2, kind: input, shape index: {}]   ;;  %s7735_s3 = inlined_call_operand.vmem [shape: f32[4,64], index: 3, kind: input, shape index: {}]   ;;  %s7736_s4 = inlined_call_operand.vmem [shape: f32[64,4096], index: 4, kind: input, shape index: {}]   ;;  %s7737_s5 = inlined_call_operand.hbm [shape: f32[16,4096], index: 5, kind: output, shape index: {}, may-alias: {0,5}]  }
   0x1   :  { %11 = vsyncpa [#allocation4], 0  ;;  %s5234_s18 = smov [#allocation2]   ;;  %s5186_s22 = scalar_lea.hbm %s7732_s0, 8192 }
   0x2   :  { %s17_s19 = sshll.u32 %s5234_s18, 4  ;;  %p5187_p0 = scmp.ne.s32.totalorder %s7732_s0, %s5186_s22  ;;  %s18_s19 = int_to_ptr.vmem [resolvable:$true] %s17_s19 }
   0x3   :  { %p5190_p1 = scmp.lt.u32.totalorder %s5186_s22, %s7732_s0 }
   0x5   :  { %p5192_p2 = pnand %p5190_p1, %p5187_p0 }
   0x7   :  { %5195 = shalt.err (!%p5192_p2)
}
   0x8   :  { %s5196_s27 = scalar_lea.vmem %s18_s19, 8192  ;;  %p5201_p4 = scmp.lt.s32.totalorder %s18_s19, %s18_s19 }
   0x9   :  { %p5197_p3 = scmp.ne.s32.totalorder %s18_s19, %s5196_s27  ;;  %p5202_p5 = scmp.lt.s32.totalorder %s5196_s27, %s5196_s27 }
   0xb   :  { %p5203_p6 = por %p5202_p5, %p5201_p4 }
   0xd   :  { %p5204_p7 = pnand %p5203_p6, %p5197_p3 }
   0xf   :  { %5207 = shalt.err (!%p5204_p7)
}
  0x10   :  { %s5235_s28 = smov 4096   ;;  %s5236_s29 = smov 256  }
  0x11   :  { %23 = dma.hbm_to_vmem [thread:$0]  %s7732_s0, 8192, %s18_s19, [#allocation3], %s5235_s28, %s5235_s28, %s5236_s29  }
  0x12   :  { %5230 = dma.done.wait [#allocation3], 8192  }
  0x13   :  { %5231 = vsyncadd [#allocation3], 4294959104  ;;  %v115_v0 = vld [vmem:[%s7733_s1 + $0x80] sm:$0xff]  ;;  %v116_v1 = vld [vmem:[%s7733_s1 + $0x88] sm:$0xff]  ;;  %vm1911_vm0 = vcmask 1043456   ;;  %vm1819_vm1 = vcmask 523264  }
  0x14   :  { %v147_v2 = vld [vmem:[%s7733_s1 + $0x180] sm:$0xff]  ;;  %v4325_v3 = vpack.c.bf16 %v116_v1, %v115_v0  ;;  %v148_v4 = vld [vmem:[%s7733_s1 + $0x188] sm:$0xff]  ;;  %v117_v11 = vld [vmem:[%s7733_s1 + $0x90] sm:$0xff]  ;;  %vm1904_vm2 = vcmask 31744  }
  0x15   :  { %v99_v5 = vld [vmem:[%s7733_s1] sm:$0xff]  ;;  %v100_v6 = vld [vmem:[%s7733_s1 + $0x8] sm:$0xff]  ;;  %v4357_v7 = vpack.c.bf16 %v148_v4, %v147_v2  ;;  %v118_v13 = vld [vmem:[%s7733_s1 + $0x98] sm:$0xff] }
  0x16   :  { %v4327_v8 = vpack.c.bf16 %v100_v6, %v99_v5  ;;  %v131_v9 = vld [vmem:[%s7733_s1 + $0x100] sm:$0xff]  ;;  %v132_v10 = vld [vmem:[%s7733_s1 + $0x108] sm:$0xff]  ;;  %4326 = vmatprep.subr.bf16.mxu0 %v4325_v3  ;;  %v149_v14 = vld [vmem:[%s7733_s1 + $0x190] sm:$0xff]  ;;  %v4329_v16 = vpack.c.bf16 %v118_v13, %v117_v11 }
  0x17   :  { %v4359_v12 = vpack.c.bf16 %v132_v10, %v131_v9  ;;  %v150_v15 = vld [vmem:[%s7733_s1 + $0x198] sm:$0xff]  ;;  %4358 = vmatprep.subr.bf16.mxu1 %v4357_v7  ;;  %v101_v18 = vld [vmem:[%s7733_s1 + $0x10] sm:$0xff]  ;;  %v119_v23 = vld [vmem:[%s7733_s1 + $0xa0] sm:$0xff] }
  0x18   :  { %4328 = vmatpush3.bf16.msra.mxu0 %v4327_v8  ;;  %v4361_v17 = vpack.c.bf16 %v150_v15, %v149_v14  ;;  %v102_v19 = vld [vmem:[%s7733_s1 + $0x18] sm:$0xff]  ;;  %v133_v20 = vld [vmem:[%s7733_s1 + $0x110] sm:$0xff]  ;;  %v120_v24 = vld [vmem:[%s7733_s1 + $0xa8] sm:$0xff] }
  0x19   :  { %4360 = vmatpush3.bf16.msra.mxu1 %v4359_v12  ;;  %v4331_v21 = vpack.c.bf16 %v102_v19, %v101_v18  ;;  %v134_v22 = vld [vmem:[%s7733_s1 + $0x118] sm:$0xff]  ;;  %4330 = vmatprep.subr.bf16.mxu0 %v4329_v16  ;;  %v4333_v26 = vpack.c.bf16 %v120_v24, %v119_v23  ;;  %v151_v27 = vld [vmem:[%s7733_s1 + $0x1a0] sm:$0xff]  ;;  %v152_v28 = vld [vmem:[%s7733_s1 + $0x1a8] sm:$0xff] }
  0x1a   :  { %4362 = vmatprep.subr.bf16.mxu1 %v4361_v17  ;;  %v4363_v25 = vpack.c.bf16 %v134_v22, %v133_v20  ;;  %v103_v29 = vld [vmem:[%s7733_s1 + $0x20] sm:$0xff]  ;;  %v4365_v30 = vpack.c.bf16 %v152_v28, %v151_v27  ;;  %v104_v31 = vld [vmem:[%s7733_s1 + $0x28] sm:$0xff]  ;;  %v121_v35 = vld [vmem:[%s7733_s1 + $0xb0] sm:$0xff] }
  0x1b   :  { %v135_v32 = vld [vmem:[%s7733_s1 + $0x120] sm:$0xff]  ;;  %v136_v33 = vld [vmem:[%s7733_s1 + $0x128] sm:$0xff]  ;;  %v4335_v34 = vpack.c.bf16 %v104_v31, %v103_v29  ;;  %v122_v36 = vld [vmem:[%s7733_s1 + $0xb8] sm:$0xff] }
  0x1c   :  { %4332 = vmatpush3.bf16.msra.mxu0 %v4331_v21  ;;  %v153_v37 = vld [vmem:[%s7733_s1 + $0x1b0] sm:$0xff]  ;;  %v4367_v38 = vpack.c.bf16 %v136_v33, %v135_v32  ;;  %v4337_v39 = vpack.c.bf16 %v122_v36, %v121_v35  ;;  %v154_v40 = vld [vmem:[%s7733_s1 + $0x1b8] sm:$0xff]  ;;  %v123_v46 = vld [vmem:[%s7733_s1 + $0xc0] sm:$0xff] }
  0x1d   :  { %4364 = vmatpush3.bf16.msra.mxu1 %v4363_v25  ;;  %4334 = vmatprep.subr.bf16.mxu0 %v4333_v26  ;;  %v105_v41 = vld [vmem:[%s7733_s1 + $0x30] sm:$0xff]  ;;  %v106_v42 = vld [vmem:[%s7733_s1 + $0x38] sm:$0xff]  ;;  %v4369_v43 = vpack.c.bf16 %v154_v40, %v153_v37  ;;  %v124_v47 = vld [vmem:[%s7733_s1 + $0xc8] sm:$0xff] }
  0x1e   :  { %4366 = vmatprep.subr.bf16.mxu1 %v4365_v30  ;;  %v137_v44 = vld [vmem:[%s7733_s1 + $0x130] sm:$0xff]  ;;  %v138_v45 = vld [vmem:[%s7733_s1 + $0x138] sm:$0xff]  ;;  %v155_v48 = vld [vmem:[%s7733_s1 + $0x1c0] sm:$0xff]  ;;  %v4339_v50 = vpack.c.bf16 %v106_v42, %v105_v41  ;;  %v4341_v52 = vpack.c.bf16 %v124_v47, %v123_v46 }
  0x1f   :  { %v156_v49 = vld [vmem:[%s7733_s1 + $0x1c8] sm:$0xff]  ;;  %v4371_v51 = vpack.c.bf16 %v138_v45, %v137_v44  ;;  %v107_v53 = vld [vmem:[%s7733_s1 + $0x40] sm:$0xff]  ;;  %v125_v58 = vld [vmem:[%s7733_s1 + $0xd0] sm:$0xff] }
  0x20   :  { %4336 = vmatpush3.bf16.msra.mxu0 %v4335_v34  ;;  %v108_v54 = vld [vmem:[%s7733_s1 + $0x48] sm:$0xff]  ;;  %v139_v55 = vld [vmem:[%s7733_s1 + $0x140] sm:$0xff]  ;;  %v4373_v56 = vpack.c.bf16 %v156_v49, %v155_v48  ;;  %v126_v59 = vld [vmem:[%s7733_s1 + $0xd8] sm:$0xff] }
  0x21   :  { %4368 = vmatpush3.bf16.msra.mxu1 %v4367_v38  ;;  %4338 = vmatprep.subr.bf16.mxu0 %v4337_v39  ;;  %v140_v57 = vld [vmem:[%s7733_s1 + $0x148] sm:$0xff]  ;;  %v157_v60 = vld [vmem:[%s7733_s1 + $0x1d0] sm:$0xff]  ;;  %v158_v61 = vld [vmem:[%s7733_s1 + $0x1d8] sm:$0xff]  ;;  %v4343_v62 = vpack.c.bf16 %v108_v54, %v107_v53  ;;  %v4345_v0 = vpack.c.bf16 %v126_v59, %v125_v58 }
  0x22   :  { %4370 = vmatprep.subr.bf16.mxu1 %v4369_v43  ;;  %v4375_v63 = vpack.c.bf16 %v140_v57, %v139_v55  ;;  %v109_v1 = vld [vmem:[%s7733_s1 + $0x50] sm:$0xff]  ;;  %v110_v2 = vld [vmem:[%s7733_s1 + $0x58] sm:$0xff]  ;;  %v4377_v4 = vpack.c.bf16 %v158_v61, %v157_v60  ;;  %v127_v6 = vld [vmem:[%s7733_s1 + $0xe0] sm:$0xff] }
  0x23   :  { %v141_v3 = vld [vmem:[%s7733_s1 + $0x150] sm:$0xff]  ;;  %v142_v5 = vld [vmem:[%s7733_s1 + $0x158] sm:$0xff]  ;;  %v128_v7 = vld [vmem:[%s7733_s1 + $0xe8] sm:$0xff]  ;;  %v4347_v10 = vpack.c.bf16 %v110_v2, %v109_v1 }
  0x24   :  { %4340 = vmatpush3.bf16.msra.mxu0 %v4339_v50  ;;  %v159_v8 = vld [vmem:[%s7733_s1 + $0x1e0] sm:$0xff]  ;;  %v160_v9 = vld [vmem:[%s7733_s1 + $0x1e8] sm:$0xff]  ;;  %v4379_v13 = vpack.c.bf16 %v142_v5, %v141_v3  ;;  %v4349_v14 = vpack.c.bf16 %v128_v7, %v127_v6  ;;  %v38_v17 = vld [vmem:[#allocation2 + $0x18] sm:$0xff] }
  0x25   :  { %4372 = vmatpush3.bf16.msra.mxu1 %v4371_v51  ;;  %4342 = vmatprep.subr.bf16.mxu0 %v4341_v52  ;;  %v111_v11 = vld [vmem:[%s7733_s1 + $0x60] sm:$0xff]  ;;  %v112_v12 = vld [vmem:[%s7733_s1 + $0x68] sm:$0xff]  ;;  %v4381_v18 = vpack.c.bf16 %v160_v9, %v159_v8  ;;  %v129_v20 = vld [vmem:[%s7733_s1 + $0xf0] sm:$0xff] }
  0x26   :  { %4374 = vmatprep.subr.bf16.mxu1 %v4373_v56  ;;  %v143_v15 = vld [vmem:[%s7733_s1 + $0x160] sm:$0xff]  ;;  %v36_v16 = vld [vmem:[#allocation2 + $0x8] sm:$0xff]  ;;  %v130_v21 = vld [vmem:[%s7733_s1 + $0xf8] sm:$0xff]  ;;  %750 = vmatprep.mubr.f32.mxu1 %v38_v17  ;;  %v4351_v24 = vpack.c.bf16 %v112_v12, %v111_v11 }
  0x27   :  { %v144_v19 = vld [vmem:[%s7733_s1 + $0x168] sm:$0xff]  ;;  %675 = vmatprep.mubr.f32.mxu0 %v36_v16  ;;  %v161_v22 = vld [vmem:[%s7733_s1 + $0x1f0] sm:$0xff]  ;;  %v162_v23 = vld [vmem:[%s7733_s1 + $0x1f8] sm:$0xff]  ;;  %v4353_v26 = vpack.c.bf16 %v130_v21, %v129_v20 }
  0x28   :  { %4344 = vmatpush3.bf16.msra.mxu0 %v4343_v62  ;;  %v4383_v25 = vpack.c.bf16 %v144_v19, %v143_v15  ;;  %v113_v27 = vld [vmem:[%s7733_s1 + $0x70] sm:$0xff]  ;;  %v114_v28 = vld [vmem:[%s7733_s1 + $0x78] sm:$0xff]  ;;  %v4385_v30 = vpack.c.bf16 %v162_v23, %v161_v22  ;;  %v179_v32 = vld [vmem:[%s7733_s1 + $0x280] sm:$0xff] }
  0x29   :  { %4376 = vmatpush3.bf16.msra.mxu1 %v4375_v63  ;;  %4346 = vmatprep.subr.bf16.mxu0 %v4345_v0  ;;  %v145_v29 = vld [vmem:[%s7733_s1 + $0x170] sm:$0xff]  ;;  %v146_v31 = vld [vmem:[%s7733_s1 + $0x178] sm:$0xff]  ;;  %v180_v33 = vld [vmem:[%s7733_s1 + $0x288] sm:$0xff]  ;;  %v4355_v36 = vpack.c.bf16 %v114_v28, %v113_v27 }
  0x2a   :  { %4378 = vmatprep.subr.bf16.mxu1 %v4377_v4  ;;  %v211_v34 = vld [vmem:[%s7733_s1 + $0x380] sm:$0xff]  ;;  %v212_v35 = vld [vmem:[%s7733_s1 + $0x388] sm:$0xff]  ;;  %v4387_v37 = vpack.c.bf16 %v146_v31, %v145_v29  ;;  %v4389_v38 = vpack.c.bf16 %v180_v33, %v179_v32  ;;  %v181_v44 = vld [vmem:[%s7733_s1 + $0x290] sm:$0xff] }
  0x2b   :  { %v163_v39 = vld [vmem:[%s7733_s1 + $0x200] sm:$0xff]  ;;  %v164_v40 = vld [vmem:[%s7733_s1 + $0x208] sm:$0xff]  ;;  %v4421_v42 = vpack.c.bf16 %v212_v35, %v211_v34  ;;  %v182_v45 = vld [vmem:[%s7733_s1 + $0x298] sm:$0xff] }
  0x2c   :  { %4348 = vmatpush3.bf16.msra.mxu0 %v4347_v10  ;;  %v195_v41 = vld [vmem:[%s7733_s1 + $0x300] sm:$0xff]  ;;  %v196_v43 = vld [vmem:[%s7733_s1 + $0x308] sm:$0xff]  ;;  %v213_v46 = vld [vmem:[%s7733_s1 + $0x390] sm:$0xff]  ;;  %v4391_v50 = vpack.c.bf16 %v164_v40, %v163_v39  ;;  %v4393_v52 = vpack.c.bf16 %v182_v45, %v181_v44 }
  0x2d   :  { %4380 = vmatpush3.bf16.msra.mxu1 %v4379_v13  ;;  %4350 = vmatprep.subr.bf16.mxu0 %v4349_v14  ;;  %v214_v47 = vld [vmem:[%s7733_s1 + $0x398] sm:$0xff]  ;;  %v35_v48 = vld [vmem:[#allocation2] sm:$0xff]  ;;  %v37_v49 = vld [vmem:[#allocation2 + $0x10] sm:$0xff]  ;;  %v4423_v51 = vpack.c.bf16 %v196_v43, %v195_v41 }
  0x2e   :  { %4382 = vmatprep.subr.bf16.mxu1 %v4381_v18  ;;  %v165_v53 = vld [vmem:[%s7733_s1 + $0x210] sm:$0xff]  ;;  %v166_v54 = vld [vmem:[%s7733_s1 + $0x218] sm:$0xff]  ;;  %v4425_v56 = vpack.c.bf16 %v214_v47, %v213_v46  ;;  %v183_v58 = vld [vmem:[%s7733_s1 + $0x2a0] sm:$0xff] }
  0x2f   :  { %v197_v55 = vld [vmem:[%s7733_s1 + $0x310] sm:$0xff]  ;;  %v198_v57 = vld [vmem:[%s7733_s1 + $0x318] sm:$0xff]  ;;  %v184_v59 = vld [vmem:[%s7733_s1 + $0x2a8] sm:$0xff]  ;;  %v4395_v62 = vpack.c.bf16 %v166_v54, %v165_v53 }
  0x30   :  { %4352 = vmatpush3.bf16.msra.mxu0 %v4351_v24  ;;  %v215_v60 = vld [vmem:[%s7733_s1 + $0x3a0] sm:$0xff]  ;;  %v216_v61 = vld [vmem:[%s7733_s1 + $0x3a8] sm:$0xff]  ;;  %v4427_v63 = vpack.c.bf16 %v198_v57, %v197_v55  ;;  %v4397_v0 = vpack.c.bf16 %v184_v59, %v183_v58  ;;  %v185_v6 = vld [vmem:[%s7733_s1 + $0x2b0] sm:$0xff] }
  0x31   :  { %4384 = vmatpush3.bf16.msra.mxu1 %v4383_v25  ;;  %4354 = vmatprep.subr.bf16.mxu0 %v4353_v26  ;;  %v167_v1 = vld [vmem:[%s7733_s1 + $0x220] sm:$0xff]  ;;  %v168_v2 = vld [vmem:[%s7733_s1 + $0x228] sm:$0xff]  ;;  %v4429_v4 = vpack.c.bf16 %v216_v61, %v215_v60  ;;  %v186_v7 = vld [vmem:[%s7733_s1 + $0x2b8] sm:$0xff] }
  0x32   :  { %4386 = vmatprep.subr.bf16.mxu1 %v4385_v30  ;;  %v199_v3 = vld [vmem:[%s7733_s1 + $0x320] sm:$0xff]  ;;  %v200_v5 = vld [vmem:[%s7733_s1 + $0x328] sm:$0xff]  ;;  %v169_v8 = vld [vmem:[%s7733_s1 + $0x230] sm:$0xff]  ;;  %v4399_v11 = vpack.c.bf16 %v168_v2, %v167_v1  ;;  %v4401_v16 = vpack.c.bf16 %v186_v7, %v185_v6 }
  0x33   :  { %v217_v9 = vld [vmem:[%s7733_s1 + $0x3b0] sm:$0xff]  ;;  %v218_v10 = vld [vmem:[%s7733_s1 + $0x3b8] sm:$0xff]  ;;  %v4431_v15 = vpack.c.bf16 %v200_v5, %v199_v3  ;;  %v187_v17 = vld [vmem:[%s7733_s1 + $0x2c0] sm:$0xff] }
  0x34   :  { %4356 = vmatpush3.bf16.msra.mxu0 %v4355_v36  ;;  %v170_v12 = vld [vmem:[%s7733_s1 + $0x238] sm:$0xff]  ;;  %v201_v13 = vld [vmem:[%s7733_s1 + $0x330] sm:$0xff]  ;;  %v68_v18 = vld [vmem:[#allocation2 + $0x108] sm:$0xff]  ;;  %v4433_v20 = vpack.c.bf16 %v218_v10, %v217_v9 }
  0x35   :  { %4388 = vmatpush3.bf16.msra.mxu1 %v4387_v37  ;;  %4390 = vmatprep.subr.bf16.mxu0 %v4389_v38  ;;  %v202_v14 = vld [vmem:[%s7733_s1 + $0x338] sm:$0xff]  ;;  %v188_v21 = vld [vmem:[%s7733_s1 + $0x2c8] sm:$0xff]  ;;  %v67_v22 = vld [vmem:[#allocation2 + $0x100] sm:$0xff]  ;;  %v4403_v26 = vpack.c.bf16 %v170_v12, %v169_v8 }
  0x36   :  { %4422 = vmatprep.subr.bf16.mxu1 %v4421_v42  ;;  %v70_v19 = vld [vmem:[#allocation2 + $0x118] sm:$0xff]  ;;  %v69_v23 = vld [vmem:[#allocation2 + $0x110] sm:$0xff]  ;;  %v219_v24 = vld [vmem:[%s7733_s1 + $0x3c0] sm:$0xff]  ;;  %v4435_v29 = vpack.c.bf16 %v202_v14, %v201_v13  ;;  %v4405_v30 = vpack.c.bf16 %v188_v21, %v187_v17 }
  0x37   :  { %676 = vmatmul.mubr.f32.vlgmr.msra.gmra.mrb[0].mxu0 %v35_v48  ;;  %v220_v25 = vld [vmem:[%s7733_s1 + $0x3c8] sm:$0xff]  ;;  %v171_v27 = vld [vmem:[%s7733_s1 + $0x240] sm:$0xff]  ;;  %v189_v35 = vld [vmem:[%s7733_s1 + $0x2d0] sm:$0xff] }
  0x38   :  { %751 = vmatmul.mubr.f32.vlgmr.msra.gmra.mrb[0].mxu1 %v37_v49  ;;  %4392 = vmatpush3.bf16.msra.mxu0 %v4391_v50  ;;  %v172_v28 = vld [vmem:[%s7733_s1 + $0x248] sm:$0xff]  ;;  %v203_v31 = vld [vmem:[%s7733_s1 + $0x340] sm:$0xff]  ;;  %v4437_v34 = vpack.c.bf16 %v220_v25, %v219_v24  ;;  %v190_v36 = vld [vmem:[%s7733_s1 + $0x2d8] sm:$0xff] }
  0x39   :  { %4424 = vmatpush3.bf16.msra.mxu1 %v4423_v51  ;;  %4394 = vmatprep.subr.bf16.mxu0 %v4393_v52  ;;  %v204_v32 = vld [vmem:[%s7733_s1 + $0x348] sm:$0xff]  ;;  %v42_v37 = vld [vmem:[#allocation2 + $0x38] sm:$0xff]  ;;  %v221_v38 = vld [vmem:[%s7733_s1 + $0x3d0] sm:$0xff]  ;;  %v4407_v40 = vpack.c.bf16 %v172_v28, %v171_v27  ;;  %v4409_v42 = vpack.c.bf16 %v190_v36, %v189_v35 }
  0x3a   :  { %4426 = vmatprep.subr.bf16.mxu1 %v4425_v56  ;;  %680 = vmatprep.mubr.f32.mxu0 %v68_v18  ;;  %v40_v33 = vld [vmem:[#allocation2 + $0x28] sm:$0xff]  ;;  %v222_v39 = vld [vmem:[%s7733_s1 + $0x3d8] sm:$0xff]  ;;  %v4439_v41 = vpack.c.bf16 %v204_v32, %v203_v31  ;;  %v173_v43 = vld [vmem:[%s7733_s1 + $0x250] sm:$0xff] }
  0x3b   :  { %755 = vmatprep.mubr.f32.mxu1 %v70_v19  ;;  %681 = vmatmul.mubr.f32.gmra.mrb[2].mxu0 %v67_v22  ;;  %v174_v44 = vld [vmem:[%s7733_s1 + $0x258] sm:$0xff]  ;;  %v205_v45 = vld [vmem:[%s7733_s1 + $0x350] sm:$0xff]  ;;  %v4441_v46 = vpack.c.bf16 %v222_v39, %v221_v38  ;;  %v191_v48 = vld [vmem:[%s7733_s1 + $0x2e0] sm:$0xff] }
  0x3c   :  { %4396 = vmatpush3.bf16.msra.mxu0 %v4395_v62  ;;  %756 = vmatmul.mubr.f32.gmra.mrb[2].mxu1 %v69_v23  ;;  %v206_v47 = vld [vmem:[%s7733_s1 + $0x358] sm:$0xff]  ;;  %v192_v49 = vld [vmem:[%s7733_s1 + $0x2e8] sm:$0xff]  ;;  %v223_v50 = vld [vmem:[%s7733_s1 + $0x3e0] sm:$0xff]  ;;  %v4411_v52 = vpack.c.bf16 %v174_v44, %v173_v43 }
  0x3d   :  { %4428 = vmatpush3.bf16.msra.mxu1 %v4427_v63  ;;  %4398 = vmatprep.subr.bf16.mxu0 %v4397_v0  ;;  %v224_v51 = vld [vmem:[%s7733_s1 + $0x3e8] sm:$0xff]  ;;  %v4443_v53 = vpack.c.bf16 %v206_v47, %v205_v45  ;;  %v4413_v54 = vpack.c.bf16 %v192_v49, %v191_v48  ;;  %v175_v55 = vld [vmem:[%s7733_s1 + $0x260] sm:$0xff]  ;;  %v193_v60 = vld [vmem:[%s7733_s1 + $0x2f0] sm:$0xff] }
  0x3e   :  { %4430 = vmatprep.subr.bf16.mxu1 %v4429_v4  ;;  %825 = vmatprep.mubr.f32.mxu0 %v40_v33  ;;  %v176_v56 = vld [vmem:[%s7733_s1 + $0x268] sm:$0xff]  ;;  %v207_v57 = vld [vmem:[%s7733_s1 + $0x360] sm:$0xff]  ;;  %v4445_v58 = vpack.c.bf16 %v224_v51, %v223_v50  ;;  %v194_v61 = vld [vmem:[%s7733_s1 + $0x2f8] sm:$0xff] }
  0x3f   :  { %900 = vmatprep.mubr.f32.mxu1 %v42_v37  ;;  %v208_v59 = vld [vmem:[%s7733_s1 + $0x368] sm:$0xff]  ;;  %v225_v62 = vld [vmem:[%s7733_s1 + $0x3f0] sm:$0xff]  ;;  %v226_v63 = vld [vmem:[%s7733_s1 + $0x3f8] sm:$0xff]  ;;  %v4415_v0 = vpack.c.bf16 %v176_v56, %v175_v55  ;;  %v4417_v2 = vpack.c.bf16 %v194_v61, %v193_v60 }
  0x40   :  { %4400 = vmatpush3.bf16.msra.mxu0 %v4399_v11  ;;  %v4447_v1 = vpack.c.bf16 %v208_v59, %v207_v57  ;;  %v177_v3 = vld [vmem:[%s7733_s1 + $0x270] sm:$0xff]  ;;  %v178_v4 = vld [vmem:[%s7733_s1 + $0x278] sm:$0xff]  ;;  %v4449_v6 = vpack.c.bf16 %v226_v63, %v225_v62  ;;  %v243_v8 = vld [vmem:[%s7733_s1 + $0x480] sm:$0xff] }
  0x41   :  { %4432 = vmatpush3.bf16.msra.mxu1 %v4431_v15  ;;  %4402 = vmatprep.subr.bf16.mxu0 %v4401_v16  ;;  %v209_v5 = vld [vmem:[%s7733_s1 + $0x370] sm:$0xff]  ;;  %v210_v7 = vld [vmem:[%s7733_s1 + $0x378] sm:$0xff]  ;;  %v244_v9 = vld [vmem:[%s7733_s1 + $0x488] sm:$0xff]  ;;  %v4419_v12 = vpack.c.bf16 %v178_v4, %v177_v3 }
  0x42   :  { %4434 = vmatprep.subr.bf16.mxu1 %v4433_v20  ;;  %v275_v10 = vld [vmem:[%s7733_s1 + $0x580] sm:$0xff]  ;;  %v276_v11 = vld [vmem:[%s7733_s1 + $0x588] sm:$0xff]  ;;  %v4451_v13 = vpack.c.bf16 %v210_v7, %v209_v5  ;;  %v4453_v14 = vpack.c.bf16 %v244_v9, %v243_v8  ;;  %v41_v21 = vld [vmem:[#allocation2 + $0x30] sm:$0xff] }
  0x43   :  { %v227_v15 = vld [vmem:[%s7733_s1 + $0x400] sm:$0xff]  ;;  %v228_v16 = vld [vmem:[%s7733_s1 + $0x408] sm:$0xff]  ;;  %v4485_v18 = vpack.c.bf16 %v276_v11, %v275_v10  ;;  %v245_v22 = vld [vmem:[%s7733_s1 + $0x490] sm:$0xff] }
  0x44   :  { %4404 = vmatpush3.bf16.msra.mxu0 %v4403_v26  ;;  %v39_v17 = vld [vmem:[#allocation2 + $0x20] sm:$0xff]  ;;  %v260_v20 = vld [vmem:[%s7733_s1 + $0x508] sm:$0xff]  ;;  %v246_v23 = vld [vmem:[%s7733_s1 + $0x498] sm:$0xff]  ;;  %v4455_v24 = vpack.c.bf16 %v228_v16, %v227_v15 }
  0x45   :  { %4436 = vmatpush3.bf16.msra.mxu1 %v4435_v29  ;;  %4406 = vmatprep.subr.bf16.mxu0 %v4405_v30  ;;  %v259_v19 = vld [vmem:[%s7733_s1 + $0x500] sm:$0xff]  ;;  %v72_v25 = vld [vmem:[#allocation2 + $0x128] sm:$0xff]  ;;  %v277_v26 = vld [vmem:[%s7733_s1 + $0x590] sm:$0xff]  ;;  %v4457_v32 = vpack.c.bf16 %v246_v23, %v245_v22 }
  0x46   :  { %4438 = vmatprep.subr.bf16.mxu1 %v4437_v34  ;;  %v278_v27 = vld [vmem:[%s7733_s1 + $0x598] sm:$0xff]  ;;  %v4487_v28 = vpack.c.bf16 %v260_v20, %v259_v19  ;;  %v229_v29 = vld [vmem:[%s7733_s1 + $0x410] sm:$0xff]  ;;  %v247_v34 = vld [vmem:[%s7733_s1 + $0x4a0] sm:$0xff] }
  0x47   :  { %v230_v30 = vld [vmem:[%s7733_s1 + $0x418] sm:$0xff]  ;;  %v261_v31 = vld [vmem:[%s7733_s1 + $0x510] sm:$0xff]  ;;  %v248_v35 = vld [vmem:[%s7733_s1 + $0x4a8] sm:$0xff]  ;;  %v4489_v37 = vpack.c.bf16 %v278_v27, %v277_v26 }
  0x48   :  { %4408 = vmatpush3.bf16.msra.mxu0 %v4407_v40  ;;  %v262_v33 = vld [vmem:[%s7733_s1 + $0x518] sm:$0xff]  ;;  %v279_v38 = vld [vmem:[%s7733_s1 + $0x5a0] sm:$0xff]  ;;  %v280_v39 = vld [vmem:[%s7733_s1 + $0x5a8] sm:$0xff]  ;;  %v4461_v44 = vpack.c.bf16 %v248_v35, %v247_v34 }
  0x49   :  { %4440 = vmatpush3.bf16.msra.mxu1 %v4439_v41  ;;  %4410 = vmatprep.subr.bf16.mxu0 %v4409_v42  ;;  %v74_v36 = vld [vmem:[#allocation2 + $0x138] sm:$0xff]  ;;  %v71_v40 = vld [vmem:[#allocation2 + $0x120] sm:$0xff]  ;;  %v4459_v41 = vpack.c.bf16 %v230_v30, %v229_v29  ;;  %v73_v42 = vld [vmem:[#allocation2 + $0x130] sm:$0xff]  ;;  %v4491_v43 = vpack.c.bf16 %v262_v33, %v261_v31  ;;  %v4493_v48 = vpack.c.bf16 %v280_v39, %v279_v38 }
  0x4a   :  { %4442 = vmatprep.subr.bf16.mxu1 %v4441_v46  ;;  %v231_v45 = vld [vmem:[%s7733_s1 + $0x420] sm:$0xff]  ;;  %v232_v46 = vld [vmem:[%s7733_s1 + $0x428] sm:$0xff]  ;;  %v249_v50 = vld [vmem:[%s7733_s1 + $0x4b0] sm:$0xff] }
  0x4b   :  { %v263_v47 = vld [vmem:[%s7733_s1 + $0x520] sm:$0xff]  ;;  %v264_v49 = vld [vmem:[%s7733_s1 + $0x528] sm:$0xff]  ;;  %v250_v51 = vld [vmem:[%s7733_s1 + $0x4b8] sm:$0xff]  ;;  %v4463_v55 = vpack.c.bf16 %v232_v46, %v231_v45 }
  0x4c   :  { %4412 = vmatpush3.bf16.msra.mxu0 %v4411_v52  ;;  %v281_v52 = vld [vmem:[%s7733_s1 + $0x5b0] sm:$0xff]  ;;  %v46_v56 = vld [vmem:[#allocation2 + $0x58] sm:$0xff]  ;;  %v4495_v57 = vpack.c.bf16 %v264_v49, %v263_v47  ;;  %v284_v3 = vld [vmem:[%s7733_s1 + $0x5c8] sm:$0xff] }
  0x4d   :  { %4444 = vmatpush3.bf16.msra.mxu1 %v4443_v53  ;;  %4414 = vmatprep.subr.bf16.mxu0 %v4413_v54  ;;  %v282_v53 = vld [vmem:[%s7733_s1 + $0x5b8] sm:$0xff]  ;;  %v44_v54 = vld [vmem:[#allocation2 + $0x48] sm:$0xff]  ;;  %v233_v59 = vld [vmem:[%s7733_s1 + $0x430] sm:$0xff] }
  0x4e   :  { %4446 = vmatprep.subr.bf16.mxu1 %v4445_v58  ;;  %v4465_v58 = vpack.c.bf16 %v250_v51, %v249_v50  ;;  %v234_v60 = vld [vmem:[%s7733_s1 + $0x438] sm:$0xff]  ;;  %v265_v61 = vld [vmem:[%s7733_s1 + $0x530] sm:$0xff]  ;;  %v4497_v62 = vpack.c.bf16 %v282_v53, %v281_v52  ;;  %v235_v7 = vld [vmem:[%s7733_s1 + $0x440] sm:$0xff] }
  0x4f   :  { %v266_v63 = vld [vmem:[%s7733_s1 + $0x538] sm:$0xff]  ;;  %v4467_v4 = vpack.c.bf16 %v234_v60, %v233_v59  ;;  %v236_v8 = vld [vmem:[%s7733_s1 + $0x448] sm:$0xff]  ;;  %v267_v9 = vld [vmem:[%s7733_s1 + $0x540] sm:$0xff] }
  0x50   :  { %4416 = vmatpush3.bf16.msra.mxu0 %v4415_v0  ;;  %v251_v0 = vld [vmem:[%s7733_s1 + $0x4c0] sm:$0xff]  ;;  %v4499_v5 = vpack.c.bf16 %v266_v63, %v265_v61  ;;  %v268_v11 = vld [vmem:[%s7733_s1 + $0x548] sm:$0xff]  ;;  %v286_v15 = vld [vmem:[%s7733_s1 + $0x5d8] sm:$0xff]  ;;  %v4471_v16 = vpack.c.bf16 %v236_v8, %v235_v7 }
  0x51   :  { %4448 = vmatpush3.bf16.msra.mxu1 %v4447_v1  ;;  %4418 = vmatprep.subr.bf16.mxu0 %v4417_v2  ;;  %v252_v1 = vld [vmem:[%s7733_s1 + $0x4c8] sm:$0xff]  ;;  %v283_v2 = vld [vmem:[%s7733_s1 + $0x5c0] sm:$0xff]  ;;  %v237_v19 = vld [vmem:[%s7733_s1 + $0x450] sm:$0xff] }
  0x52   :  { %4450 = vmatprep.subr.bf16.mxu1 %v4449_v6  ;;  %v4469_v6 = vpack.c.bf16 %v252_v1, %v251_v0  ;;  %v4501_v10 = vpack.c.bf16 %v284_v3, %v283_v2  ;;  %v238_v20 = vld [vmem:[%s7733_s1 + $0x458] sm:$0xff]  ;;  %v287_v26 = vld [vmem:[%s7733_s1 + $0x5e0] sm:$0xff]  ;;  %v288_v27 = vld [vmem:[%s7733_s1 + $0x5e8] sm:$0xff] }
  0x53   :  { %v270_v23 = vld [vmem:[%s7733_s1 + $0x558] sm:$0xff]  ;;  %v239_v31 = vld [vmem:[%s7733_s1 + $0x460] sm:$0xff]  ;;  %v4509_v34 = vpack.c.bf16 %v288_v27, %v287_v26  ;;  %v272_v35 = vld [vmem:[%s7733_s1 + $0x568] sm:$0xff] }
  0x54   :  { %4420 = vmatpush3.bf16.msra.mxu0 %v4419_v12  ;;  %v253_v12 = vld [vmem:[%s7733_s1 + $0x4d0] sm:$0xff]  ;;  %v271_v33 = vld [vmem:[%s7733_s1 + $0x560] sm:$0xff]  ;;  %v290_v39 = vld [vmem:[%s7733_s1 + $0x5f8] sm:$0xff] }
  0x55   :  { %4452 = vmatpush3.bf16.msra.mxu1 %v4451_v13  ;;  %4454 = vmatprep.subr.bf16.mxu0 %v4453_v14  ;;  %v254_v13 = vld [vmem:[%s7733_s1 + $0x4d8] sm:$0xff]  ;;  %v285_v14 = vld [vmem:[%s7733_s1 + $0x5d0] sm:$0xff]  ;;  %v308_v49 = vld [vmem:[%s7733_s1 + $0x688] sm:$0xff] }
  0x56   :  { %4486 = vmatprep.subr.bf16.mxu1 %v4485_v18  ;;  %v4473_v18 = vpack.c.bf16 %v254_v13, %v253_v12  ;;  %v4505_v22 = vpack.c.bf16 %v286_v15, %v285_v14  ;;  %v289_v38 = vld [vmem:[%s7733_s1 + $0x5f0] sm:$0xff]  ;;  %v274_v47 = vld [vmem:[%s7733_s1 + $0x578] sm:$0xff]  ;;  %v339_v50 = vld [vmem:[%s7733_s1 + $0x780] sm:$0xff] }
  0x57   :  { %826 = vmatmul.mubr.f32.vlgmr.msra.gmra.mrb[4].mxu0 %v39_v17  ;;  %v4503_v17 = vpack.c.bf16 %v268_v11, %v267_v9  ;;  %v273_v45 = vld [vmem:[%s7733_s1 + $0x570] sm:$0xff]  ;;  %v4513_v46 = vpack.c.bf16 %v290_v39, %v289_v38  ;;  %v340_v51 = vld [vmem:[%s7733_s1 + $0x788] sm:$0xff]  ;;  %v323_v59 = vld [vmem:[%s7733_s1 + $0x700] sm:$0xff] }
  0x58   :  { %4456 = vmatpush3.bf16.msra.mxu0 %v4455_v24  ;;  %901 = vmatmul.mubr.f32.vlgmr.msra.gmra.mrb[4].mxu1 %v41_v21  ;;  %v269_v21 = vld [vmem:[%s7733_s1 + $0x550] sm:$0xff]  ;;  %v255_v24 = vld [vmem:[%s7733_s1 + $0x4e0] sm:$0xff]  ;;  %v4515_v53 = vpack.c.bf16 %v274_v47, %v273_v45  ;;  %v324_v60 = vld [vmem:[%s7733_s1 + $0x708] sm:$0xff] }
  0x59   :  { %4488 = vmatpush3.bf16.msra.mxu1 %v4487_v28  ;;  %830 = vmatprep.mubr.f32.mxu0 %v72_v25  ;;  %v256_v25 = vld [vmem:[%s7733_s1 + $0x4e8] sm:$0xff]  ;;  %v4475_v28 = vpack.c.bf16 %v238_v20, %v237_v19  ;;  %v4507_v29 = vpack.c.bf16 %v270_v23, %v269_v21  ;;  %v45_v61 = vld [vmem:[#allocation2 + $0x50] sm:$0xff]  ;;  %v310_v63 = vld [vmem:[%s7733_s1 + $0x698] sm:$0xff] }
  0x5a   :  { %4458 = vmatprep.subr.bf16.mxu0 %v4457_v32  ;;  %905 = vmatprep.mubr.f32.mxu1 %v74_v36  ;;  %v4477_v30 = vpack.c.bf16 %v256_v25, %v255_v24  ;;  %v240_v32 = vld [vmem:[%s7733_s1 + $0x468] sm:$0xff]  ;;  %v257_v36 = vld [vmem:[%s7733_s1 + $0x4f0] sm:$0xff]  ;;  %v342_v3 = vld [vmem:[%s7733_s1 + $0x798] sm:$0xff] }
  0x5b   :  { %831 = vmatmul.mubr.f32.gmra.mrb[6].mxu0 %v71_v40  ;;  %4490 = vmatprep.subr.bf16.mxu1 %v4489_v37  ;;  %v258_v37 = vld [vmem:[%s7733_s1 + $0x4f8] sm:$0xff]  ;;  %v4479_v40 = vpack.c.bf16 %v240_v32, %v239_v31  ;;  %v76_v1 = vld [vmem:[#allocation2 + $0x148] sm:$0xff]  ;;  %v341_v2 = vld [vmem:[%s7733_s1 + $0x790] sm:$0xff] }
  0x5c   :  { %4460 = vmatpush3.bf16.msra.mxu0 %v4459_v41  ;;  %906 = vmatmul.mubr.f32.gmra.mrb[6].mxu1 %v73_v42  ;;  %v4511_v41 = vpack.c.bf16 %v272_v35, %v271_v33  ;;  %v4481_v42 = vpack.c.bf16 %v258_v37, %v257_v36  ;;  %v325_v7 = vld [vmem:[%s7733_s1 + $0x710] sm:$0xff]  ;;  %v326_v9 = vld [vmem:[%s7733_s1 + $0x718] sm:$0xff]  ;;  %v312_v11 = vld [vmem:[%s7733_s1 + $0x6a8] sm:$0xff]  ;;  %v4553_v13 = vpack.c.bf16 %v342_v3, %v341_v2 }
  0x5d   :  { %4492 = vmatpush3.bf16.msra.mxu1 %v4491_v43  ;;  %4462 = vmatprep.subr.bf16.mxu0 %v4461_v44  ;;  %v241_v43 = vld [vmem:[%s7733_s1 + $0x470] sm:$0xff]  ;;  %v242_v44 = vld [vmem:[%s7733_s1 + $0x478] sm:$0xff]  ;;  %v343_v14 = vld [vmem:[%s7733_s1 + $0x7a0] sm:$0xff]  ;;  %v4555_v19 = vpack.c.bf16 %v326_v9, %v325_v7 }
  0x5e   :  { %4494 = vmatprep.subr.bf16.mxu1 %v4493_v48  ;;  %975 = vmatprep.mubr.f32.mxu0 %v44_v54  ;;  %v307_v48 = vld [vmem:[%s7733_s1 + $0x680] sm:$0xff]  ;;  %v4483_v52 = vpack.c.bf16 %v242_v44, %v241_v43  ;;  %v78_v12 = vld [vmem:[#allocation2 + $0x158] sm:$0xff]  ;;  %v344_v15 = vld [vmem:[%s7733_s1 + $0x7a8] sm:$0xff] }
  0x5f   :  { %1050 = vmatprep.mubr.f32.mxu1 %v46_v56  ;;  %v4517_v54 = vpack.c.bf16 %v308_v49, %v307_v48  ;;  %v292_v56 = vld [vmem:[%s7733_s1 + $0x608] sm:$0xff]  ;;  %v295_v21 = vld [vmem:[%s7733_s1 + $0x620] sm:$0xff]  ;;  %v4557_v24 = vpack.c.bf16 %v344_v15, %v343_v14  ;;  %v313_v26 = vld [vmem:[%s7733_s1 + $0x6b0] sm:$0xff] }
  0x60   :  { %4464 = vmatpush3.bf16.msra.mxu0 %v4463_v55  ;;  %v291_v55 = vld [vmem:[%s7733_s1 + $0x600] sm:$0xff]  ;;  %v328_v25 = vld [vmem:[%s7733_s1 + $0x728] sm:$0xff]  ;;  %v314_v27 = vld [vmem:[%s7733_s1 + $0x6b8] sm:$0xff] }
  0x61   :  { %4496 = vmatpush3.bf16.msra.mxu1 %v4495_v57  ;;  %4466 = vmatprep.subr.bf16.mxu0 %v4465_v58  ;;  %v43_v57 = vld [vmem:[#allocation2 + $0x40] sm:$0xff]  ;;  %v4549_v58 = vpack.c.bf16 %v340_v51, %v339_v50  ;;  %v4519_v0 = vpack.c.bf16 %v292_v56, %v291_v55  ;;  %v50_v32 = vld [vmem:[#allocation2 + $0x78] sm:$0xff]  ;;  %v297_v35 = vld [vmem:[%s7733_s1 + $0x630] sm:$0xff] }
  0x62   :  { %4498 = vmatprep.subr.bf16.mxu1 %v4497_v62  ;;  %v309_v62 = vld [vmem:[%s7733_s1 + $0x690] sm:$0xff]  ;;  %v327_v23 = vld [vmem:[%s7733_s1 + $0x720] sm:$0xff]  ;;  %v298_v36 = vld [vmem:[%s7733_s1 + $0x638] sm:$0xff] }
  0x63   :  { %v4521_v8 = vpack.c.bf16 %v310_v63, %v309_v62  ;;  %v4559_v33 = vpack.c.bf16 %v328_v25, %v327_v23  ;;  %v329_v37 = vld [vmem:[%s7733_s1 + $0x730] sm:$0xff]  ;;  %v330_v39 = vld [vmem:[%s7733_s1 + $0x738] sm:$0xff]  ;;  %v348_v43 = vld [vmem:[%s7733_s1 + $0x7c8] sm:$0xff]  ;;  %v4531_v44 = vpack.c.bf16 %v298_v36, %v297_v35 }
  0x64   :  { %4468 = vmatpush3.bf16.msra.mxu0 %v4467_v4  ;;  %v4551_v4 = vpack.c.bf16 %v324_v60, %v323_v59  ;;  %v4563_v45 = vpack.c.bf16 %v330_v39, %v329_v37  ;;  %v299_v47 = vld [vmem:[%s7733_s1 + $0x640] sm:$0xff]  ;;  %v300_v48 = vld [vmem:[%s7733_s1 + $0x648] sm:$0xff]  ;;  %v350_v55 = vld [vmem:[%s7733_s1 + $0x7d8] sm:$0xff] }
  0x65   :  { %4500 = vmatpush3.bf16.msra.mxu1 %v4499_v5  ;;  %4470 = vmatprep.subr.bf16.mxu0 %v4469_v6  ;;  %v293_v5 = vld [vmem:[%s7733_s1 + $0x610] sm:$0xff]  ;;  %v294_v6 = vld [vmem:[%s7733_s1 + $0x618] sm:$0xff]  ;;  %v331_v49 = vld [vmem:[%s7733_s1 + $0x740] sm:$0xff]  ;;  %v4535_v56 = vpack.c.bf16 %v300_v48, %v299_v47 }
  0x66   :  { %4502 = vmatprep.subr.bf16.mxu1 %v4501_v10  ;;  %v311_v10 = vld [vmem:[%s7733_s1 + $0x6a0] sm:$0xff]  ;;  %v332_v51 = vld [vmem:[%s7733_s1 + $0x748] sm:$0xff]  ;;  %v301_v59 = vld [vmem:[%s7733_s1 + $0x650] sm:$0xff] }
  0x67   :  { %v4525_v20 = vpack.c.bf16 %v312_v11, %v311_v10  ;;  %v302_v60 = vld [vmem:[%s7733_s1 + $0x658] sm:$0xff]  ;;  %v351_v2 = vld [vmem:[%s7733_s1 + $0x7e0] sm:$0xff]  ;;  %v352_v3 = vld [vmem:[%s7733_s1 + $0x7e8] sm:$0xff] }
  0x68   :  { %4472 = vmatpush3.bf16.msra.mxu0 %v4471_v16  ;;  %v75_v16 = vld [vmem:[#allocation2 + $0x140] sm:$0xff]  ;;  %v334_v63 = vld [vmem:[%s7733_s1 + $0x758] sm:$0xff]  ;;  %v4573_v10 = vpack.c.bf16 %v352_v3, %v351_v2  ;;  %v336_v11 = vld [vmem:[%s7733_s1 + $0x768] sm:$0xff] }
  0x69   :  { %4504 = vmatpush3.bf16.msra.mxu1 %v4503_v17  ;;  %4474 = vmatprep.subr.bf16.mxu0 %v4473_v18  ;;  %v4523_v17 = vpack.c.bf16 %v294_v6, %v293_v5  ;;  %v77_v18 = vld [vmem:[#allocation2 + $0x150] sm:$0xff]  ;;  %v303_v7 = vld [vmem:[%s7733_s1 + $0x660] sm:$0xff]  ;;  %v354_v15 = vld [vmem:[%s7733_s1 + $0x7f8] sm:$0xff] }
  0x6a   :  { %4506 = vmatprep.subr.bf16.mxu1 %v4505_v22  ;;  %v296_v22 = vld [vmem:[%s7733_s1 + $0x628] sm:$0xff]  ;;  %v335_v9 = vld [vmem:[%s7733_s1 + $0x760] sm:$0xff]  ;;  %v353_v14 = vld [vmem:[%s7733_s1 + $0x7f0] sm:$0xff] }
  0x6b   :  { %v4527_v31 = vpack.c.bf16 %v296_v22, %v295_v21  ;;  %v337_v21 = vld [vmem:[%s7733_s1 + $0x770] sm:$0xff]  ;;  %v4577_v22 = vpack.c.bf16 %v354_v15, %v353_v14  ;;  %v338_v23 = vld [vmem:[%s7733_s1 + $0x778] sm:$0xff]  ;;  %v372_v25 = vld [vmem:[%s7733_s1 + $0x888] sm:$0xff] }
  0x6c   :  { %4476 = vmatpush3.bf16.msra.mxu0 %v4475_v28  ;;  %v345_v28 = vld [vmem:[%s7733_s1 + $0x7b0] sm:$0xff]  ;;  %v387_v35 = vld [vmem:[%s7733_s1 + $0x900] sm:$0xff]  ;;  %v388_v36 = vld [vmem:[%s7733_s1 + $0x908] sm:$0xff] }
  0x6d   :  { %4508 = vmatpush3.bf16.msra.mxu1 %v4507_v29  ;;  %4478 = vmatprep.subr.bf16.mxu0 %v4477_v30  ;;  %v346_v29 = vld [vmem:[%s7733_s1 + $0x7b8] sm:$0xff]  ;;  %v48_v30 = vld [vmem:[#allocation2 + $0x68] sm:$0xff]  ;;  %v49_v37 = vld [vmem:[#allocation2 + $0x70] sm:$0xff] }
  0x6e   :  { %4510 = vmatprep.subr.bf16.mxu1 %v4509_v34  ;;  %v4529_v34 = vpack.c.bf16 %v314_v27, %v313_v26  ;;  %v4561_v38 = vpack.c.bf16 %v346_v29, %v345_v28  ;;  %v403_v26 = vld [vmem:[%s7733_s1 + $0x980] sm:$0xff]  ;;  %v404_v27 = vld [vmem:[%s7733_s1 + $0x988] sm:$0xff]  ;;  %v4579_v29 = vpack.c.bf16 %v338_v23, %v337_v21  ;;  %v374_v39 = vld [vmem:[%s7733_s1 + $0x898] sm:$0xff] }
  0x6f   :  { %v389_v47 = vld [vmem:[%s7733_s1 + $0x910] sm:$0xff]  ;;  %v378_v3 = vld [vmem:[%s7733_s1 + $0x8b8] sm:$0xff]  ;;  %v363_v23 = vld [vmem:[%s7733_s1 + $0x840] sm:$0xff] }
  0x70   :  { %4480 = vmatpush3.bf16.msra.mxu0 %v4479_v40  ;;  %v315_v40 = vld [vmem:[%s7733_s1 + $0x6c0] sm:$0xff]  ;;  %v377_v2 = vld [vmem:[%s7733_s1 + $0x8b0] sm:$0xff]  ;;  %v394_v15 = vld [vmem:[%s7733_s1 + $0x938] sm:$0xff] }
  0x71   :  { %4512 = vmatpush3.bf16.msra.mxu1 %v4511_v41  ;;  %4482 = vmatprep.subr.bf16.mxu0 %v4481_v42  ;;  %v316_v41 = vld [vmem:[%s7733_s1 + $0x6c8] sm:$0xff]  ;;  %v347_v42 = vld [vmem:[%s7733_s1 + $0x7c0] sm:$0xff] }
  0x72   :  { %4514 = vmatprep.subr.bf16.mxu1 %v4513_v46  ;;  %v4533_v46 = vpack.c.bf16 %v316_v41, %v315_v40  ;;  %v4565_v50 = vpack.c.bf16 %v348_v43, %v347_v42  ;;  %v80_v41 = vld [vmem:[#allocation2 + $0x168] sm:$0xff]  ;;  %v405_v42 = vld [vmem:[%s7733_s1 + $0x990] sm:$0xff]  ;;  %v406_v43 = vld [vmem:[%s7733_s1 + $0x998] sm:$0xff] }
  0x74   :  { %4484 = vmatpush3.bf16.msra.mxu0 %v4483_v52  ;;  %v317_v52 = vld [vmem:[%s7733_s1 + $0x6d0] sm:$0xff] }
  0x75   :  { %4516 = vmatpush3.bf16.msra.mxu1 %v4515_v53  ;;  %4518 = vmatprep.subr.bf16.mxu0 %v4517_v54  ;;  %v318_v53 = vld [vmem:[%s7733_s1 + $0x6d8] sm:$0xff]  ;;  %v349_v54 = vld [vmem:[%s7733_s1 + $0x7d0] sm:$0xff] }
  0x76   :  { %4550 = vmatprep.subr.bf16.mxu1 %v4549_v58  ;;  %v4537_v58 = vpack.c.bf16 %v318_v53, %v317_v52  ;;  %v4569_v62 = vpack.c.bf16 %v350_v55, %v349_v54  ;;  %v82_v52 = vld [vmem:[#allocation2 + $0x178] sm:$0xff]  ;;  %v4617_v53 = vpack.c.bf16 %v406_v43, %v405_v42  ;;  %v407_v54 = vld [vmem:[%s7733_s1 + $0x9a0] sm:$0xff]  ;;  %v408_v55 = vld [vmem:[%s7733_s1 + $0x9a8] sm:$0xff] }
  0x77   :  { %976 = vmatmul.mubr.f32.vlgmr.msra.gmra.mrb[8].mxu0 %v43_v57  ;;  %v4567_v57 = vpack.c.bf16 %v332_v51, %v331_v49  ;;  %v390_v49 = vld [vmem:[%s7733_s1 + $0x918] sm:$0xff]  ;;  %v376_v51 = vld [vmem:[%s7733_s1 + $0x8a8] sm:$0xff]  ;;  %v415_v42 = vld [vmem:[%s7733_s1 + $0x9e0] sm:$0xff] }
  0x78   :  { %4520 = vmatpush3.bf16.msra.mxu0 %v4519_v0  ;;  %1051 = vmatmul.mubr.f32.vlgmr.msra.gmra.mrb[8].mxu1 %v45_v61  ;;  %v333_v61 = vld [vmem:[%s7733_s1 + $0x750] sm:$0xff]  ;;  %v319_v0 = vld [vmem:[%s7733_s1 + $0x6e0] sm:$0xff]  ;;  %v416_v43 = vld [vmem:[%s7733_s1 + $0x9e8] sm:$0xff] }
  0x79   :  { %4552 = vmatpush3.bf16.msra.mxu1 %v4551_v4  ;;  %980 = vmatprep.mubr.f32.mxu0 %v76_v1  ;;  %v320_v1 = vld [vmem:[%s7733_s1 + $0x6e8] sm:$0xff]  ;;  %v4539_v4 = vpack.c.bf16 %v302_v60, %v301_v59  ;;  %v4571_v5 = vpack.c.bf16 %v334_v63, %v333_v61  ;;  %v4619_v59 = vpack.c.bf16 %v390_v49, %v389_v47  ;;  %v359_v61 = vld [vmem:[%s7733_s1 + $0x820] sm:$0xff] }
  0x7a   :  { %4522 = vmatprep.subr.bf16.mxu0 %v4521_v8  ;;  %1055 = vmatprep.mubr.f32.mxu1 %v78_v12  ;;  %v4541_v6 = vpack.c.bf16 %v320_v1, %v319_v0  ;;  %v304_v8 = vld [vmem:[%s7733_s1 + $0x668] sm:$0xff]  ;;  %v321_v12 = vld [vmem:[%s7733_s1 + $0x6f0] sm:$0xff]  ;;  %v391_v63 = vld [vmem:[%s7733_s1 + $0x920] sm:$0xff]  ;;  %v4621_v0 = vpack.c.bf16 %v408_v55, %v407_v54 }
  0x7b   :  { %981 = vmatmul.mubr.f32.gmra.mrb[10].mxu0 %v75_v16  ;;  %4554 = vmatprep.subr.bf16.mxu1 %v4553_v13  ;;  %v322_v13 = vld [vmem:[%s7733_s1 + $0x6f8] sm:$0xff]  ;;  %v4543_v16 = vpack.c.bf16 %v304_v8, %v303_v7  ;;  %v392_v1 = vld [vmem:[%s7733_s1 + $0x928] sm:$0xff]  ;;  %v367_v47 = vld [vmem:[%s7733_s1 + $0x860] sm:$0xff] }
  0x7c   :  { %4524 = vmatpush3.bf16.msra.mxu0 %v4523_v17  ;;  %1056 = vmatmul.mubr.f32.gmra.mrb[10].mxu1 %v77_v18  ;;  %v4575_v17 = vpack.c.bf16 %v336_v11, %v335_v9  ;;  %v4545_v18 = vpack.c.bf16 %v322_v13, %v321_v12  ;;  %v54_v8 = vld [vmem:[#allocation2 + $0x98] sm:$0xff]  ;;  %v4623_v9 = vpack.c.bf16 %v392_v1, %v391_v63  ;;  %v361_v11 = vld [vmem:[%s7733_s1 + $0x830] sm:$0xff]  ;;  %v399_v49 = vld [vmem:[%s7733_s1 + $0x960] sm:$0xff] }
  0x7d   :  { %4556 = vmatpush3.bf16.msra.mxu1 %v4555_v19  ;;  %4526 = vmatprep.subr.bf16.mxu0 %v4525_v20  ;;  %v305_v19 = vld [vmem:[%s7733_s1 + $0x670] sm:$0xff]  ;;  %v306_v20 = vld [vmem:[%s7733_s1 + $0x678] sm:$0xff]  ;;  %v436_v1 = vld [vmem:[%s7733_s1 + $0xa88] sm:$0xff] }
  0x7e   :  { %4558 = vmatprep.subr.bf16.mxu1 %v4557_v24  ;;  %1125 = vmatprep.mubr.f32.mxu0 %v48_v30  ;;  %v371_v24 = vld [vmem:[%s7733_s1 + $0x880] sm:$0xff]  ;;  %v4547_v28 = vpack.c.bf16 %v306_v20, %v305_v19  ;;  %v362_v12 = vld [vmem:[%s7733_s1 + $0x838] sm:$0xff]  ;;  %v393_v13 = vld [vmem:[%s7733_s1 + $0x930] sm:$0xff] }
  0x7f   :  { %1200 = vmatprep.mubr.f32.mxu1 %v50_v32  ;;  %v4581_v30 = vpack.c.bf16 %v372_v25, %v371_v24  ;;  %v356_v32 = vld [vmem:[%s7733_s1 + $0x808] sm:$0xff]  ;;  %v4595_v20 = vpack.c.bf16 %v362_v12, %v361_v11  ;;  %v4627_v21 = vpack.c.bf16 %v394_v15, %v393_v13  ;;  %v395_v25 = vld [vmem:[%s7733_s1 + $0x940] sm:$0xff]  ;;  %v417_v54 = vld [vmem:[%s7733_s1 + $0x9f0] sm:$0xff] }
  0x80   :  { %4528 = vmatpush3.bf16.msra.mxu0 %v4527_v31  ;;  %v355_v31 = vld [vmem:[%s7733_s1 + $0x800] sm:$0xff]  ;;  %v412_v19 = vld [vmem:[%s7733_s1 + $0x9c8] sm:$0xff]  ;;  %v418_v55 = vld [vmem:[%s7733_s1 + $0x9f8] sm:$0xff] }
  0x81   :  { %4560 = vmatpush3.bf16.msra.mxu1 %v4559_v33  ;;  %4530 = vmatprep.subr.bf16.mxu0 %v4529_v34  ;;  %v47_v33 = vld [vmem:[#allocation2 + $0x60] sm:$0xff]  ;;  %v4613_v34 = vpack.c.bf16 %v404_v27, %v403_v26  ;;  %v4583_v40 = vpack.c.bf16 %v356_v32, %v355_v31  ;;  %v364_v24 = vld [vmem:[%s7733_s1 + $0x848] sm:$0xff]  ;;  %v414_v31 = vld [vmem:[%s7733_s1 + $0x9d8] sm:$0xff] }
  0x82   :  { %4562 = vmatprep.subr.bf16.mxu1 %v4561_v38  ;;  %v373_v38 = vld [vmem:[%s7733_s1 + $0x890] sm:$0xff]  ;;  %v396_v27 = vld [vmem:[%s7733_s1 + $0x948] sm:$0xff]  ;;  %v4599_v32 = vpack.c.bf16 %v364_v24, %v363_v23  ;;  %v402_v63 = vld [vmem:[%s7733_s1 + $0x978] sm:$0xff] }
  0x83   :  { %v4585_v48 = vpack.c.bf16 %v374_v39, %v373_v38  ;;  %v398_v39 = vld [vmem:[%s7733_s1 + $0x958] sm:$0xff]  ;;  %v451_v11 = vld [vmem:[%s7733_s1 + $0xb00] sm:$0xff]  ;;  %v452_v12 = vld [vmem:[%s7733_s1 + $0xb08] sm:$0xff] }
  0x84   :  { %4532 = vmatpush3.bf16.msra.mxu0 %v4531_v44  ;;  %v4615_v44 = vpack.c.bf16 %v388_v36, %v387_v35  ;;  %v365_v35 = vld [vmem:[%s7733_s1 + $0x850] sm:$0xff]  ;;  %v366_v36 = vld [vmem:[%s7733_s1 + $0x858] sm:$0xff] }
  0x85   :  { %4564 = vmatpush3.bf16.msra.mxu1 %v4563_v45  ;;  %4534 = vmatprep.subr.bf16.mxu0 %v4533_v46  ;;  %v357_v45 = vld [vmem:[%s7733_s1 + $0x810] sm:$0xff]  ;;  %v358_v46 = vld [vmem:[%s7733_s1 + $0x818] sm:$0xff] }
  0x86   :  { %4566 = vmatprep.subr.bf16.mxu1 %v4565_v50  ;;  %v375_v50 = vld [vmem:[%s7733_s1 + $0x8a0] sm:$0xff]  ;;  %v53_v13 = vld [vmem:[#allocation2 + $0x90] sm:$0xff]  ;;  %v438_v15 = vld [vmem:[%s7733_s1 + $0xa98] sm:$0xff] }
  0x87   :  { %v4589_v60 = vpack.c.bf16 %v376_v51, %v375_v50  ;;  %v4637_v50 = vpack.c.bf16 %v416_v43, %v415_v42  ;;  %v400_v51 = vld [vmem:[%s7733_s1 + $0x968] sm:$0xff]  ;;  %v453_v23 = vld [vmem:[%s7733_s1 + $0xb10] sm:$0xff]  ;;  %v442_v43 = vld [vmem:[%s7733_s1 + $0xab8] sm:$0xff] }
  0x88   :  { %4536 = vmatpush3.bf16.msra.mxu0 %v4535_v56  ;;  %v79_v56 = vld [vmem:[#allocation2 + $0x160] sm:$0xff]  ;;  %v441_v42 = vld [vmem:[%s7733_s1 + $0xab0] sm:$0xff] }
  0x89   :  { %4568 = vmatpush3.bf16.msra.mxu1 %v4567_v57  ;;  %4538 = vmatprep.subr.bf16.mxu0 %v4537_v58  ;;  %v4587_v57 = vpack.c.bf16 %v358_v46, %v357_v45  ;;  %v81_v58 = vld [vmem:[#allocation2 + $0x170] sm:$0xff] }
  0x8a   :  { %4570 = vmatprep.subr.bf16.mxu1 %v4569_v62  ;;  %v360_v62 = vld [vmem:[%s7733_s1 + $0x828] sm:$0xff] }
  0x8b   :  { %v4591_v7 = vpack.c.bf16 %v360_v62, %v359_v61  ;;  %v401_v61 = vld [vmem:[%s7733_s1 + $0x970] sm:$0xff]  ;;  %v4641_v62 = vpack.c.bf16 %v418_v55, %v417_v54  ;;  %v458_v55 = vld [vmem:[%s7733_s1 + $0xb38] sm:$0xff] }
  0x8c   :  { %4540 = vmatpush3.bf16.msra.mxu0 %v4539_v4  ;;  %v409_v4 = vld [vmem:[%s7733_s1 + $0x9b0] sm:$0xff] }
  0x8d   :  { %4572 = vmatpush3.bf16.msra.mxu1 %v4571_v5  ;;  %4542 = vmatprep.subr.bf16.mxu0 %v4541_v6  ;;  %v410_v5 = vld [vmem:[%s7733_s1 + $0x9b8] sm:$0xff]  ;;  %v52_v6 = vld [vmem:[#allocation2 + $0x88] sm:$0xff] }
  0x8e   :  { %4574 = vmatprep.subr.bf16.mxu1 %v4573_v10  ;;  %v4593_v10 = vpack.c.bf16 %v378_v3, %v377_v2  ;;  %v4625_v14 = vpack.c.bf16 %v410_v5, %v409_v4  ;;  %v467_v2 = vld [vmem:[%s7733_s1 + $0xb80] sm:$0xff]  ;;  %v468_v3 = vld [vmem:[%s7733_s1 + $0xb88] sm:$0xff]  ;;  %v4643_v5 = vpack.c.bf16 %v402_v63, %v401_v61 }
  0x8f   :  { %v427_v63 = vld [vmem:[%s7733_s1 + $0xa40] sm:$0xff] }
  0x90   :  { %4544 = vmatpush3.bf16.msra.mxu0 %v4543_v16  ;;  %v379_v16 = vld [vmem:[%s7733_s1 + $0x8c0] sm:$0xff] }
  0x91   :  { %4576 = vmatpush3.bf16.msra.mxu1 %v4575_v17  ;;  %4546 = vmatprep.subr.bf16.mxu0 %v4545_v18  ;;  %v380_v17 = vld [vmem:[%s7733_s1 + $0x8c8] sm:$0xff]  ;;  %v411_v18 = vld [vmem:[%s7733_s1 + $0x9c0] sm:$0xff] }
  0x92   :  { %4578 = vmatprep.subr.bf16.mxu1 %v4577_v22  ;;  %v4597_v22 = vpack.c.bf16 %v380_v17, %v379_v16  ;;  %v4629_v26 = vpack.c.bf16 %v412_v19, %v411_v18  ;;  %v84_v17 = vld [vmem:[#allocation2 + $0x188] sm:$0xff]  ;;  %v469_v18 = vld [vmem:[%s7733_s1 + $0xb90] sm:$0xff]  ;;  %v470_v19 = vld [vmem:[%s7733_s1 + $0xb98] sm:$0xff] }
  0x94   :  { %4548 = vmatpush3.bf16.msra.mxu0 %v4547_v28  ;;  %v381_v28 = vld [vmem:[%s7733_s1 + $0x8d0] sm:$0xff] }
  0x95   :  { %4580 = vmatpush3.bf16.msra.mxu1 %v4579_v29  ;;  %4582 = vmatprep.subr.bf16.mxu0 %v4581_v30  ;;  %v382_v29 = vld [vmem:[%s7733_s1 + $0x8d8] sm:$0xff]  ;;  %v413_v30 = vld [vmem:[%s7733_s1 + $0x9d0] sm:$0xff] }
  0x96   :  { %4614 = vmatprep.subr.bf16.mxu1 %v4613_v34  ;;  %v4601_v34 = vpack.c.bf16 %v382_v29, %v381_v28  ;;  %v4633_v38 = vpack.c.bf16 %v414_v31, %v413_v30  ;;  %v86_v28 = vld [vmem:[#allocation2 + $0x198] sm:$0xff]  ;;  %v4681_v29 = vpack.c.bf16 %v470_v19, %v469_v18  ;;  %v471_v30 = vld [vmem:[%s7733_s1 + $0xba0] sm:$0xff]  ;;  %v472_v31 = vld [vmem:[%s7733_s1 + $0xba8] sm:$0xff] }
  0x97   :  { %1126 = vmatmul.mubr.f32.vlgmr.msra.gmra.mrb[12].mxu0 %v47_v33  ;;  %v4631_v33 = vpack.c.bf16 %v396_v27, %v395_v25  ;;  %v454_v25 = vld [vmem:[%s7733_s1 + $0xb18] sm:$0xff]  ;;  %v440_v27 = vld [vmem:[%s7733_s1 + $0xaa8] sm:$0xff]  ;;  %v479_v18 = vld [vmem:[%s7733_s1 + $0xbe0] sm:$0xff] }
  0x98   :  { %4584 = vmatpush3.bf16.msra.mxu0 %v4583_v40  ;;  %1201 = vmatmul.mubr.f32.vlgmr.msra.gmra.mrb[12].mxu1 %v49_v37  ;;  %v397_v37 = vld [vmem:[%s7733_s1 + $0x950] sm:$0xff]  ;;  %v383_v40 = vld [vmem:[%s7733_s1 + $0x8e0] sm:$0xff]  ;;  %v480_v19 = vld [vmem:[%s7733_s1 + $0xbe8] sm:$0xff] }
  0x99   :  { %4616 = vmatpush3.bf16.msra.mxu1 %v4615_v44  ;;  %1130 = vmatprep.mubr.f32.mxu0 %v80_v41  ;;  %v384_v41 = vld [vmem:[%s7733_s1 + $0x8e8] sm:$0xff]  ;;  %v4603_v44 = vpack.c.bf16 %v366_v36, %v365_v35  ;;  %v4635_v45 = vpack.c.bf16 %v398_v39, %v397_v37  ;;  %v4683_v35 = vpack.c.bf16 %v454_v25, %v453_v23  ;;  %v423_v37 = vld [vmem:[%s7733_s1 + $0xa20] sm:$0xff] }
  0x9a   :  { %4586 = vmatprep.subr.bf16.mxu0 %v4585_v48  ;;  %1205 = vmatprep.mubr.f32.mxu1 %v82_v52  ;;  %v4605_v46 = vpack.c.bf16 %v384_v41, %v383_v40  ;;  %v368_v48 = vld [vmem:[%s7733_s1 + $0x868] sm:$0xff]  ;;  %v385_v52 = vld [vmem:[%s7733_s1 + $0x8f0] sm:$0xff]  ;;  %v455_v39 = vld [vmem:[%s7733_s1 + $0xb20] sm:$0xff]  ;;  %v4685_v40 = vpack.c.bf16 %v472_v31, %v471_v30 }
  0x9b   :  { %1131 = vmatmul.mubr.f32.gmra.mrb[14].mxu0 %v79_v56  ;;  %4618 = vmatprep.subr.bf16.mxu1 %v4617_v53  ;;  %v386_v53 = vld [vmem:[%s7733_s1 + $0x8f8] sm:$0xff]  ;;  %v4607_v56 = vpack.c.bf16 %v368_v48, %v367_v47  ;;  %v456_v41 = vld [vmem:[%s7733_s1 + $0xb28] sm:$0xff]  ;;  %v431_v23 = vld [vmem:[%s7733_s1 + $0xa60] sm:$0xff] }
  0x9c   :  { %4588 = vmatpush3.bf16.msra.mxu0 %v4587_v57  ;;  %1206 = vmatmul.mubr.f32.gmra.mrb[14].mxu1 %v81_v58  ;;  %v4639_v57 = vpack.c.bf16 %v400_v51, %v399_v49  ;;  %v4609_v58 = vpack.c.bf16 %v386_v53, %v385_v52  ;;  %v58_v48 = vld [vmem:[#allocation2 + $0xb8] sm:$0xff]  ;;  %v4687_v49 = vpack.c.bf16 %v456_v41, %v455_v39  ;;  %v425_v51 = vld [vmem:[%s7733_s1 + $0xa30] sm:$0xff]  ;;  %v463_v25 = vld [vmem:[%s7733_s1 + $0xb60] sm:$0xff] }
  0x9d   :  { %4620 = vmatpush3.bf16.msra.mxu1 %v4619_v59  ;;  %4590 = vmatprep.subr.bf16.mxu0 %v4589_v60  ;;  %v369_v59 = vld [vmem:[%s7733_s1 + $0x870] sm:$0xff]  ;;  %v370_v60 = vld [vmem:[%s7733_s1 + $0x878] sm:$0xff]  ;;  %v500_v41 = vld [vmem:[%s7733_s1 + $0xc88] sm:$0xff] }
  0x9e   :  { %4622 = vmatprep.subr.bf16.mxu1 %v4621_v0  ;;  %1275 = vmatprep.mubr.f32.mxu0 %v52_v6  ;;  %v435_v0 = vld [vmem:[%s7733_s1 + $0xa80] sm:$0xff]  ;;  %v4611_v4 = vpack.c.bf16 %v370_v60, %v369_v59  ;;  %v426_v52 = vld [vmem:[%s7733_s1 + $0xa38] sm:$0xff]  ;;  %v457_v53 = vld [vmem:[%s7733_s1 + $0xb30] sm:$0xff] }
  0x9f   :  { %1350 = vmatprep.mubr.f32.mxu1 %v54_v8  ;;  %v4645_v6 = vpack.c.bf16 %v436_v1, %v435_v0  ;;  %v420_v8 = vld [vmem:[%s7733_s1 + $0xa08] sm:$0xff]  ;;  %v4659_v60 = vpack.c.bf16 %v426_v52, %v425_v51  ;;  %v4691_v61 = vpack.c.bf16 %v458_v55, %v457_v53  ;;  %v459_v1 = vld [vmem:[%s7733_s1 + $0xb40] sm:$0xff]  ;;  %v481_v30 = vld [vmem:[%s7733_s1 + $0xbf0] sm:$0xff] }
  0xa0   :  { %4592 = vmatpush3.bf16.msra.mxu0 %v4591_v7  ;;  %v419_v7 = vld [vmem:[%s7733_s1 + $0xa00] sm:$0xff]  ;;  %v476_v59 = vld [vmem:[%s7733_s1 + $0xbc8] sm:$0xff]  ;;  %v482_v31 = vld [vmem:[%s7733_s1 + $0xbf8] sm:$0xff] }
  0xa1   :  { %4624 = vmatpush3.bf16.msra.mxu1 %v4623_v9  ;;  %4594 = vmatprep.subr.bf16.mxu0 %v4593_v10  ;;  %v51_v9 = vld [vmem:[#allocation2 + $0x80] sm:$0xff]  ;;  %v4677_v10 = vpack.c.bf16 %v468_v3, %v467_v2  ;;  %v4647_v16 = vpack.c.bf16 %v420_v8, %v419_v7  ;;  %v428_v0 = vld [vmem:[%s7733_s1 + $0xa48] sm:$0xff]  ;;  %v478_v7 = vld [vmem:[%s7733_s1 + $0xbd8] sm:$0xff] }
  0xa2   :  { %4626 = vmatprep.subr.bf16.mxu1 %v4625_v14  ;;  %v437_v14 = vld [vmem:[%s7733_s1 + $0xa90] sm:$0xff]  ;;  %v460_v3 = vld [vmem:[%s7733_s1 + $0xb48] sm:$0xff]  ;;  %v4663_v8 = vpack.c.bf16 %v428_v0, %v427_v63  ;;  %v466_v39 = vld [vmem:[%s7733_s1 + $0xb78] sm:$0xff] }
  0xa3   :  { %v4649_v24 = vpack.c.bf16 %v438_v15, %v437_v14  ;;  %v462_v15 = vld [vmem:[%s7733_s1 + $0xb58] sm:$0xff]  ;;  %v515_v51 = vld [vmem:[%s7733_s1 + $0xd00] sm:$0xff]  ;;  %v516_v52 = vld [vmem:[%s7733_s1 + $0xd08] sm:$0xff] }
  0xa4   :  { %4596 = vmatpush3.bf16.msra.mxu0 %v4595_v20  ;;  %v4679_v20 = vpack.c.bf16 %v452_v12, %v451_v11  ;;  %v429_v11 = vld [vmem:[%s7733_s1 + $0xa50] sm:$0xff]  ;;  %v430_v12 = vld [vmem:[%s7733_s1 + $0xa58] sm:$0xff] }
  0xa5   :  { %4628 = vmatpush3.bf16.msra.mxu1 %v4627_v21  ;;  %4598 = vmatprep.subr.bf16.mxu0 %v4597_v22  ;;  %v421_v21 = vld [vmem:[%s7733_s1 + $0xa10] sm:$0xff]  ;;  %v422_v22 = vld [vmem:[%s7733_s1 + $0xa18] sm:$0xff] }
  0xa6   :  { %4630 = vmatprep.subr.bf16.mxu1 %v4629_v26  ;;  %v439_v26 = vld [vmem:[%s7733_s1 + $0xaa0] sm:$0xff]  ;;  %v57_v53 = vld [vmem:[#allocation2 + $0xb0] sm:$0xff]  ;;  %v502_v55 = vld [vmem:[%s7733_s1 + $0xc98] sm:$0xff] }
  0xa7   :  { %v4653_v36 = vpack.c.bf16 %v440_v27, %v439_v26  ;;  %v4701_v26 = vpack.c.bf16 %v480_v19, %v479_v18  ;;  %v464_v27 = vld [vmem:[%s7733_s1 + $0xb68] sm:$0xff]  ;;  %v517_v63 = vld [vmem:[%s7733_s1 + $0xd10] sm:$0xff]  ;;  %v506_v19 = vld [vmem:[%s7733_s1 + $0xcb8] sm:$0xff] }
  0xa8   :  { %4600 = vmatpush3.bf16.msra.mxu0 %v4599_v32  ;;  %v83_v32 = vld [vmem:[#allocation2 + $0x180] sm:$0xff]  ;;  %v505_v18 = vld [vmem:[%s7733_s1 + $0xcb0] sm:$0xff] }
  0xa9   :  { %4632 = vmatpush3.bf16.msra.mxu1 %v4631_v33  ;;  %4602 = vmatprep.subr.bf16.mxu0 %v4601_v34  ;;  %v4651_v33 = vpack.c.bf16 %v422_v22, %v421_v21  ;;  %v85_v34 = vld [vmem:[#allocation2 + $0x190] sm:$0xff] }
  0xaa   :  { %4634 = vmatprep.subr.bf16.mxu1 %v4633_v38  ;;  %v424_v38 = vld [vmem:[%s7733_s1 + $0xa28] sm:$0xff] }
  0xab   :  { %v4655_v47 = vpack.c.bf16 %v424_v38, %v423_v37  ;;  %v465_v37 = vld [vmem:[%s7733_s1 + $0xb70] sm:$0xff]  ;;  %v4705_v38 = vpack.c.bf16 %v482_v31, %v481_v30  ;;  %v522_v31 = vld [vmem:[%s7733_s1 + $0xd38] sm:$0xff] }
  0xac   :  { %4604 = vmatpush3.bf16.msra.mxu0 %v4603_v44  ;;  %v473_v44 = vld [vmem:[%s7733_s1 + $0xbb0] sm:$0xff] }
  0xad   :  { %4636 = vmatpush3.bf16.msra.mxu1 %v4635_v45  ;;  %4606 = vmatprep.subr.bf16.mxu0 %v4605_v46  ;;  %v474_v45 = vld [vmem:[%s7733_s1 + $0xbb8] sm:$0xff]  ;;  %v56_v46 = vld [vmem:[#allocation2 + $0xa8] sm:$0xff] }
  0xae   :  { %4638 = vmatprep.subr.bf16.mxu1 %v4637_v50  ;;  %v4657_v50 = vpack.c.bf16 %v442_v43, %v441_v42  ;;  %v4689_v54 = vpack.c.bf16 %v474_v45, %v473_v44  ;;  %v531_v42 = vld [vmem:[%s7733_s1 + $0xd80] sm:$0xff]  ;;  %v532_v43 = vld [vmem:[%s7733_s1 + $0xd88] sm:$0xff]  ;;  %v4707_v45 = vpack.c.bf16 %v466_v39, %v465_v37 }
  0xaf   :  { %v491_v39 = vld [vmem:[%s7733_s1 + $0xc40] sm:$0xff] }
  0xb0   :  { %4608 = vmatpush3.bf16.msra.mxu0 %v4607_v56  ;;  %v443_v56 = vld [vmem:[%s7733_s1 + $0xac0] sm:$0xff] }
  0xb1   :  { %4640 = vmatpush3.bf16.msra.mxu1 %v4639_v57  ;;  %4610 = vmatprep.subr.bf16.mxu0 %v4609_v58  ;;  %v444_v57 = vld [vmem:[%s7733_s1 + $0xac8] sm:$0xff]  ;;  %v475_v58 = vld [vmem:[%s7733_s1 + $0xbc0] sm:$0xff] }
  0xb2   :  { %4642 = vmatprep.subr.bf16.mxu1 %v4641_v62  ;;  %v4661_v62 = vpack.c.bf16 %v444_v57, %v443_v56  ;;  %v4693_v2 = vpack.c.bf16 %v476_v59, %v475_v58  ;;  %v88_v57 = vld [vmem:[#allocation2 + $0x1a8] sm:$0xff]  ;;  %v533_v58 = vld [vmem:[%s7733_s1 + $0xd90] sm:$0xff]  ;;  %v534_v59 = vld [vmem:[%s7733_s1 + $0xd98] sm:$0xff] }
  0xb4   :  { %4612 = vmatpush3.bf16.msra.mxu0 %v4611_v4  ;;  %v445_v4 = vld [vmem:[%s7733_s1 + $0xad0] sm:$0xff] }
  0xb5   :  { %4644 = vmatpush3.bf16.msra.mxu1 %v4643_v5  ;;  %4646 = vmatprep.subr.bf16.mxu0 %v4645_v6  ;;  %v446_v5 = vld [vmem:[%s7733_s1 + $0xad8] sm:$0xff]  ;;  %v477_v6 = vld [vmem:[%s7733_s1 + $0xbd0] sm:$0xff] }
  0xb6   :  { %4678 = vmatprep.subr.bf16.mxu1 %v4677_v10  ;;  %v4665_v10 = vpack.c.bf16 %v446_v5, %v445_v4  ;;  %v4697_v14 = vpack.c.bf16 %v478_v7, %v477_v6  ;;  %v90_v4 = vld [vmem:[#allocation2 + $0x1b8] sm:$0xff]  ;;  %v4745_v5 = vpack.c.bf16 %v534_v59, %v533_v58  ;;  %v535_v6 = vld [vmem:[%s7733_s1 + $0xda0] sm:$0xff]  ;;  %v536_v7 = vld [vmem:[%s7733_s1 + $0xda8] sm:$0xff] }
  0xb7   :  { %1276 = vmatmul.mubr.f32.vlgmr.msra.gmra.mrb[16].mxu0 %v51_v9  ;;  %v4695_v9 = vpack.c.bf16 %v460_v3, %v459_v1  ;;  %v518_v1 = vld [vmem:[%s7733_s1 + $0xd18] sm:$0xff]  ;;  %v504_v3 = vld [vmem:[%s7733_s1 + $0xca8] sm:$0xff]  ;;  %v543_v58 = vld [vmem:[%s7733_s1 + $0xde0] sm:$0xff] }
  0xb8   :  { %4648 = vmatpush3.bf16.msra.mxu0 %v4647_v16  ;;  %1351 = vmatmul.mubr.f32.vlgmr.msra.gmra.mrb[16].mxu1 %v53_v13  ;;  %v461_v13 = vld [vmem:[%s7733_s1 + $0xb50] sm:$0xff]  ;;  %v447_v16 = vld [vmem:[%s7733_s1 + $0xae0] sm:$0xff]  ;;  %v544_v59 = vld [vmem:[%s7733_s1 + $0xde8] sm:$0xff] }
  0xb9   :  { %4680 = vmatpush3.bf16.msra.mxu1 %v4679_v20  ;;  %1280 = vmatprep.mubr.f32.mxu0 %v84_v17  ;;  %v448_v17 = vld [vmem:[%s7733_s1 + $0xae8] sm:$0xff]  ;;  %v4667_v20 = vpack.c.bf16 %v430_v12, %v429_v11  ;;  %v4699_v21 = vpack.c.bf16 %v462_v15, %v461_v13  ;;  %v4747_v11 = vpack.c.bf16 %v518_v1, %v517_v63  ;;  %v487_v13 = vld [vmem:[%s7733_s1 + $0xc20] sm:$0xff] }
  0xba   :  { %4650 = vmatprep.subr.bf16.mxu0 %v4649_v24  ;;  %1355 = vmatprep.mubr.f32.mxu1 %v86_v28  ;;  %v4669_v22 = vpack.c.bf16 %v448_v17, %v447_v16  ;;  %v432_v24 = vld [vmem:[%s7733_s1 + $0xa68] sm:$0xff]  ;;  %v449_v28 = vld [vmem:[%s7733_s1 + $0xaf0] sm:$0xff]  ;;  %v519_v15 = vld [vmem:[%s7733_s1 + $0xd20] sm:$0xff]  ;;  %v4749_v16 = vpack.c.bf16 %v536_v7, %v535_v6 }
  0xbb   :  { %1281 = vmatmul.mubr.f32.gmra.mrb[18].mxu0 %v83_v32  ;;  %4682 = vmatprep.subr.bf16.mxu1 %v4681_v29  ;;  %v450_v29 = vld [vmem:[%s7733_s1 + $0xaf8] sm:$0xff]  ;;  %v4671_v32 = vpack.c.bf16 %v432_v24, %v431_v23  ;;  %v520_v17 = vld [vmem:[%s7733_s1 + $0xd28] sm:$0xff]  ;;  %v495_v63 = vld [vmem:[%s7733_s1 + $0xc60] sm:$0xff] }
  0xbc   :  { %4652 = vmatpush3.bf16.msra.mxu0 %v4651_v33  ;;  %1356 = vmatmul.mubr.f32.gmra.mrb[18].mxu1 %v85_v34  ;;  %v4703_v33 = vpack.c.bf16 %v464_v27, %v463_v25  ;;  %v4673_v34 = vpack.c.bf16 %v450_v29, %v449_v28  ;;  %v62_v24 = vld [vmem:[#allocation2 + $0xd8] sm:$0xff]  ;;  %v4751_v25 = vpack.c.bf16 %v520_v17, %v519_v15  ;;  %v489_v27 = vld [vmem:[%s7733_s1 + $0xc30] sm:$0xff]  ;;  %v527_v1 = vld [vmem:[%s7733_s1 + $0xd60] sm:$0xff] }
  0xbd   :  { %4684 = vmatpush3.bf16.msra.mxu1 %v4683_v35  ;;  %4654 = vmatprep.subr.bf16.mxu0 %v4653_v36  ;;  %v433_v35 = vld [vmem:[%s7733_s1 + $0xa70] sm:$0xff]  ;;  %v434_v36 = vld [vmem:[%s7733_s1 + $0xa78] sm:$0xff]  ;;  %v564_v17 = vld [vmem:[%s7733_s1 + $0xe88] sm:$0xff] }
  0xbe   :  { %4686 = vmatprep.subr.bf16.mxu1 %v4685_v40  ;;  %1425 = vmatprep.mubr.f32.mxu0 %v56_v46  ;;  %v499_v40 = vld [vmem:[%s7733_s1 + $0xc80] sm:$0xff]  ;;  %v4675_v44 = vpack.c.bf16 %v434_v36, %v433_v35  ;;  %v490_v28 = vld [vmem:[%s7733_s1 + $0xc38] sm:$0xff]  ;;  %v521_v29 = vld [vmem:[%s7733_s1 + $0xd30] sm:$0xff] }
  0xbf   :  { %1500 = vmatprep.mubr.f32.mxu1 %v58_v48  ;;  %v4709_v46 = vpack.c.bf16 %v500_v41, %v499_v40  ;;  %v484_v48 = vld [vmem:[%s7733_s1 + $0xc08] sm:$0xff]  ;;  %v4723_v36 = vpack.c.bf16 %v490_v28, %v489_v27  ;;  %v4755_v37 = vpack.c.bf16 %v522_v31, %v521_v29  ;;  %v523_v41 = vld [vmem:[%s7733_s1 + $0xd40] sm:$0xff]  ;;  %v545_v6 = vld [vmem:[%s7733_s1 + $0xdf0] sm:$0xff] }
  0xc0   :  { %4656 = vmatpush3.bf16.msra.mxu0 %v4655_v47  ;;  %v483_v47 = vld [vmem:[%s7733_s1 + $0xc00] sm:$0xff]  ;;  %v540_v35 = vld [vmem:[%s7733_s1 + $0xdc8] sm:$0xff]  ;;  %v546_v7 = vld [vmem:[%s7733_s1 + $0xdf8] sm:$0xff] }
  0xc1   :  { %4688 = vmatpush3.bf16.msra.mxu1 %v4687_v49  ;;  %4658 = vmatprep.subr.bf16.mxu0 %v4657_v50  ;;  %v55_v49 = vld [vmem:[#allocation2 + $0xa0] sm:$0xff]  ;;  %v4741_v50 = vpack.c.bf16 %v532_v43, %v531_v42  ;;  %v4711_v56 = vpack.c.bf16 %v484_v48, %v483_v47  ;;  %v492_v40 = vld [vmem:[%s7733_s1 + $0xc48] sm:$0xff]  ;;  %v542_v47 = vld [vmem:[%s7733_s1 + $0xdd8] sm:$0xff] }
  0xc2   :  { %4690 = vmatprep.subr.bf16.mxu1 %v4689_v54  ;;  %v501_v54 = vld [vmem:[%s7733_s1 + $0xc90] sm:$0xff]  ;;  %v524_v43 = vld [vmem:[%s7733_s1 + $0xd48] sm:$0xff]  ;;  %v4727_v48 = vpack.c.bf16 %v492_v40, %v491_v39  ;;  %v530_v15 = vld [vmem:[%s7733_s1 + $0xd78] sm:$0xff] }
  0xc3   :  { %v4713_v0 = vpack.c.bf16 %v502_v55, %v501_v54  ;;  %v526_v55 = vld [vmem:[%s7733_s1 + $0xd58] sm:$0xff]  ;;  %v579_v27 = vld [vmem:[%s7733_s1 + $0xf00] sm:$0xff]  ;;  %v580_v28 = vld [vmem:[%s7733_s1 + $0xf08] sm:$0xff] }
  0xc4   :  { %4660 = vmatpush3.bf16.msra.mxu0 %v4659_v60  ;;  %v4743_v60 = vpack.c.bf16 %v516_v52, %v515_v51  ;;  %v493_v51 = vld [vmem:[%s7733_s1 + $0xc50] sm:$0xff]  ;;  %v494_v52 = vld [vmem:[%s7733_s1 + $0xc58] sm:$0xff] }
  0xc5   :  { %4692 = vmatpush3.bf16.msra.mxu1 %v4691_v61  ;;  %4662 = vmatprep.subr.bf16.mxu0 %v4661_v62  ;;  %v485_v61 = vld [vmem:[%s7733_s1 + $0xc10] sm:$0xff]  ;;  %v486_v62 = vld [vmem:[%s7733_s1 + $0xc18] sm:$0xff] }
  0xc6   :  { %4694 = vmatprep.subr.bf16.mxu1 %v4693_v2  ;;  %v503_v2 = vld [vmem:[%s7733_s1 + $0xca0] sm:$0xff]  ;;  %v61_v29 = vld [vmem:[#allocation2 + $0xd0] sm:$0xff]  ;;  %v566_v31 = vld [vmem:[%s7733_s1 + $0xe98] sm:$0xff] }
  0xc7   :  { %v4717_v12 = vpack.c.bf16 %v504_v3, %v503_v2  ;;  %v4765_v2 = vpack.c.bf16 %v544_v59, %v543_v58  ;;  %v528_v3 = vld [vmem:[%s7733_s1 + $0xd68] sm:$0xff]  ;;  %v581_v39 = vld [vmem:[%s7733_s1 + $0xf10] sm:$0xff]  ;;  %v570_v59 = vld [vmem:[%s7733_s1 + $0xeb8] sm:$0xff] }
  0xc8   :  { %4664 = vmatpush3.bf16.msra.mxu0 %v4663_v8  ;;  %v87_v8 = vld [vmem:[#allocation2 + $0x1a0] sm:$0xff]  ;;  %v569_v58 = vld [vmem:[%s7733_s1 + $0xeb0] sm:$0xff] }
  0xc9   :  { %4696 = vmatpush3.bf16.msra.mxu1 %v4695_v9  ;;  %4666 = vmatprep.subr.bf16.mxu0 %v4665_v10  ;;  %v4715_v9 = vpack.c.bf16 %v486_v62, %v485_v61  ;;  %v89_v10 = vld [vmem:[#allocation2 + $0x1b0] sm:$0xff] }
  0xca   :  { %4698 = vmatprep.subr.bf16.mxu1 %v4697_v14  ;;  %v488_v14 = vld [vmem:[%s7733_s1 + $0xc28] sm:$0xff] }
  0xcb   :  { %v4719_v23 = vpack.c.bf16 %v488_v14, %v487_v13  ;;  %v529_v13 = vld [vmem:[%s7733_s1 + $0xd70] sm:$0xff]  ;;  %v4769_v14 = vpack.c.bf16 %v546_v7, %v545_v6  ;;  %v586_v7 = vld [vmem:[%s7733_s1 + $0xf38] sm:$0xff] }
  0xcc   :  { %4668 = vmatpush3.bf16.msra.mxu0 %v4667_v20  ;;  %v537_v20 = vld [vmem:[%s7733_s1 + $0xdb0] sm:$0xff] }
  0xcd   :  { %4700 = vmatpush3.bf16.msra.mxu1 %v4699_v21  ;;  %4670 = vmatprep.subr.bf16.mxu0 %v4669_v22  ;;  %v538_v21 = vld [vmem:[%s7733_s1 + $0xdb8] sm:$0xff]  ;;  %v60_v22 = vld [vmem:[#allocation2 + $0xc8] sm:$0xff] }
  0xce   :  { %4702 = vmatprep.subr.bf16.mxu1 %v4701_v26  ;;  %v4721_v26 = vpack.c.bf16 %v506_v19, %v505_v18  ;;  %v4753_v30 = vpack.c.bf16 %v538_v21, %v537_v20  ;;  %v595_v18 = vld [vmem:[%s7733_s1 + $0xf80] sm:$0xff]  ;;  %v596_v19 = vld [vmem:[%s7733_s1 + $0xf88] sm:$0xff]  ;;  %v4771_v21 = vpack.c.bf16 %v530_v15, %v529_v13 }
  0xcf   :  { %v555_v15 = vld [vmem:[%s7733_s1 + $0xe40] sm:$0xff] }
  0xd0   :  { %4672 = vmatpush3.bf16.msra.mxu0 %v4671_v32  ;;  %v507_v32 = vld [vmem:[%s7733_s1 + $0xcc0] sm:$0xff] }
  0xd1   :  { %4704 = vmatpush3.bf16.msra.mxu1 %v4703_v33  ;;  %4674 = vmatprep.subr.bf16.mxu0 %v4673_v34  ;;  %v508_v33 = vld [vmem:[%s7733_s1 + $0xcc8] sm:$0xff]  ;;  %v539_v34 = vld [vmem:[%s7733_s1 + $0xdc0] sm:$0xff] }
  0xd2   :  { %4706 = vmatprep.subr.bf16.mxu1 %v4705_v38  ;;  %v4725_v38 = vpack.c.bf16 %v508_v33, %v507_v32  ;;  %v4757_v42 = vpack.c.bf16 %v540_v35, %v539_v34  ;;  %v92_v33 = vld [vmem:[#allocation2 + $0x1c8] sm:$0xff]  ;;  %v597_v34 = vld [vmem:[%s7733_s1 + $0xf90] sm:$0xff]  ;;  %v598_v35 = vld [vmem:[%s7733_s1 + $0xf98] sm:$0xff] }
  0xd4   :  { %4676 = vmatpush3.bf16.msra.mxu0 %v4675_v44  ;;  %v509_v44 = vld [vmem:[%s7733_s1 + $0xcd0] sm:$0xff] }
  0xd5   :  { %4708 = vmatpush3.bf16.msra.mxu1 %v4707_v45  ;;  %4710 = vmatprep.subr.bf16.mxu0 %v4709_v46  ;;  %v510_v45 = vld [vmem:[%s7733_s1 + $0xcd8] sm:$0xff]  ;;  %v541_v46 = vld [vmem:[%s7733_s1 + $0xdd0] sm:$0xff] }
  0xd6   :  { %4742 = vmatprep.subr.bf16.mxu1 %v4741_v50  ;;  %v4729_v50 = vpack.c.bf16 %v510_v45, %v509_v44  ;;  %v4761_v54 = vpack.c.bf16 %v542_v47, %v541_v46  ;;  %v94_v44 = vld [vmem:[#allocation2 + $0x1d8] sm:$0xff]  ;;  %v4809_v45 = vpack.c.bf16 %v598_v35, %v597_v34  ;;  %v599_v46 = vld [vmem:[%s7733_s1 + $0xfa0] sm:$0xff]  ;;  %v600_v47 = vld [vmem:[%s7733_s1 + $0xfa8] sm:$0xff] }
  0xd7   :  { %1426 = vmatmul.mubr.f32.vlgmr.msra.gmra.mrb[20].mxu0 %v55_v49  ;;  %v4759_v49 = vpack.c.bf16 %v524_v43, %v523_v41  ;;  %v582_v41 = vld [vmem:[%s7733_s1 + $0xf18] sm:$0xff]  ;;  %v568_v43 = vld [vmem:[%s7733_s1 + $0xea8] sm:$0xff]  ;;  %v607_v34 = vld [vmem:[%s7733_s1 + $0xfe0] sm:$0xff] }
  0xd8   :  { %4712 = vmatpush3.bf16.msra.mxu0 %v4711_v56  ;;  %1501 = vmatmul.mubr.f32.vlgmr.msra.gmra.mrb[20].mxu1 %v57_v53  ;;  %v525_v53 = vld [vmem:[%s7733_s1 + $0xd50] sm:$0xff]  ;;  %v511_v56 = vld [vmem:[%s7733_s1 + $0xce0] sm:$0xff]  ;;  %v608_v35 = vld [vmem:[%s7733_s1 + $0xfe8] sm:$0xff] }
  0xd9   :  { %4744 = vmatpush3.bf16.msra.mxu1 %v4743_v60  ;;  %1430 = vmatprep.mubr.f32.mxu0 %v88_v57  ;;  %v512_v57 = vld [vmem:[%s7733_s1 + $0xce8] sm:$0xff]  ;;  %v4731_v60 = vpack.c.bf16 %v494_v52, %v493_v51  ;;  %v4763_v61 = vpack.c.bf16 %v526_v55, %v525_v53  ;;  %v4811_v51 = vpack.c.bf16 %v582_v41, %v581_v39  ;;  %v551_v53 = vld [vmem:[%s7733_s1 + $0xe20] sm:$0xff] }
  0xda   :  { %4714 = vmatprep.subr.bf16.mxu0 %v4713_v0  ;;  %1505 = vmatprep.mubr.f32.mxu1 %v90_v4  ;;  %v4733_v62 = vpack.c.bf16 %v512_v57, %v511_v56  ;;  %v496_v0 = vld [vmem:[%s7733_s1 + $0xc68] sm:$0xff]  ;;  %v513_v4 = vld [vmem:[%s7733_s1 + $0xcf0] sm:$0xff]  ;;  %v583_v55 = vld [vmem:[%s7733_s1 + $0xf20] sm:$0xff]  ;;  %v4813_v56 = vpack.c.bf16 %v600_v47, %v599_v46 }
  0xdb   :  { %1431 = vmatmul.mubr.f32.gmra.mrb[22].mxu0 %v87_v8  ;;  %4746 = vmatprep.subr.bf16.mxu1 %v4745_v5  ;;  %v514_v5 = vld [vmem:[%s7733_s1 + $0xcf8] sm:$0xff]  ;;  %v4735_v8 = vpack.c.bf16 %v496_v0, %v495_v63  ;;  %v584_v57 = vld [vmem:[%s7733_s1 + $0xf28] sm:$0xff]  ;;  %v559_v39 = vld [vmem:[%s7733_s1 + $0xe60] sm:$0xff] }
  0xdc   :  { %4716 = vmatpush3.bf16.msra.mxu0 %v4715_v9  ;;  %1506 = vmatmul.mubr.f32.gmra.mrb[22].mxu1 %v89_v10  ;;  %v4767_v9 = vpack.c.bf16 %v528_v3, %v527_v1  ;;  %v4737_v10 = vpack.c.bf16 %v514_v5, %v513_v4  ;;  %v66_v0 = vld [vmem:[#allocation2 + $0xf8] sm:$0xff]  ;;  %v4815_v1 = vpack.c.bf16 %v584_v57, %v583_v55  ;;  %v553_v3 = vld [vmem:[%s7733_s1 + $0xe30] sm:$0xff]  ;;  %v591_v41 = vld [vmem:[%s7733_s1 + $0xf60] sm:$0xff] }
  0xdd   :  { %4748 = vmatpush3.bf16.msra.mxu1 %v4747_v11  ;;  %4718 = vmatprep.subr.bf16.mxu0 %v4717_v12  ;;  %v497_v11 = vld [vmem:[%s7733_s1 + $0xc70] sm:$0xff]  ;;  %v498_v12 = vld [vmem:[%s7733_s1 + $0xc78] sm:$0xff] }
  0xde   :  { %4750 = vmatprep.subr.bf16.mxu1 %v4749_v16  ;;  %1575 = vmatprep.mubr.f32.mxu0 %v60_v22  ;;  %v563_v16 = vld [vmem:[%s7733_s1 + $0xe80] sm:$0xff]  ;;  %v4739_v20 = vpack.c.bf16 %v498_v12, %v497_v11  ;;  %v554_v4 = vld [vmem:[%s7733_s1 + $0xe38] sm:$0xff]  ;;  %v585_v5 = vld [vmem:[%s7733_s1 + $0xf30] sm:$0xff] }
  0xdf   :  { %1650 = vmatprep.mubr.f32.mxu1 %v62_v24  ;;  %v4773_v22 = vpack.c.bf16 %v564_v17, %v563_v16  ;;  %v548_v24 = vld [vmem:[%s7733_s1 + $0xe08] sm:$0xff]  ;;  %v4787_v12 = vpack.c.bf16 %v554_v4, %v553_v3  ;;  %v4819_v13 = vpack.c.bf16 %v586_v7, %v585_v5  ;;  %v587_v17 = vld [vmem:[%s7733_s1 + $0xf40] sm:$0xff]  ;;  %v578_v46 = vld [vmem:[%s7733_s1 + $0xef8] sm:$0xff] }
  0xe0   :  { %4720 = vmatpush3.bf16.msra.mxu0 %v4719_v23  ;;  %v547_v23 = vld [vmem:[%s7733_s1 + $0xe00] sm:$0xff]  ;;  %v604_v11 = vld [vmem:[%s7733_s1 + $0xfc8] sm:$0xff]  ;;  %v561_v57 = vld [vmem:[%s7733_s1 + $0xe70] sm:$0xff] }
  0xe1   :  { %4752 = vmatpush3.bf16.msra.mxu1 %v4751_v25  ;;  %4722 = vmatprep.subr.bf16.mxu0 %v4721_v26  ;;  %v59_v25 = vld [vmem:[#allocation2 + $0xc0] sm:$0xff]  ;;  %v4805_v26 = vpack.c.bf16 %v596_v19, %v595_v18  ;;  %v4775_v32 = vpack.c.bf16 %v548_v24, %v547_v23  ;;  %v556_v16 = vld [vmem:[%s7733_s1 + $0xe48] sm:$0xff]  ;;  %v606_v23 = vld [vmem:[%s7733_s1 + $0xfd8] sm:$0xff] }
  0xe2   :  { %4754 = vmatprep.subr.bf16.mxu1 %v4753_v30  ;;  %v565_v30 = vld [vmem:[%s7733_s1 + $0xe90] sm:$0xff]  ;;  %v588_v19 = vld [vmem:[%s7733_s1 + $0xf48] sm:$0xff]  ;;  %v4791_v24 = vpack.c.bf16 %v556_v16, %v555_v15  ;;  %v63_v4 = vld [vmem:[#allocation2 + $0xe0] sm:$0xff] }
  0xe3   :  { %v4777_v40 = vpack.c.bf16 %v566_v31, %v565_v30  ;;  %v590_v31 = vld [vmem:[%s7733_s1 + $0xf58] sm:$0xff]  ;;  %v65_v7 = vld [vmem:[#allocation2 + $0xf0] sm:$0xff] }
  0xe4   :  { %4724 = vmatpush3.bf16.msra.mxu0 %v4723_v36  ;;  %v4807_v36 = vpack.c.bf16 %v580_v28, %v579_v27  ;;  %v557_v27 = vld [vmem:[%s7733_s1 + $0xe50] sm:$0xff]  ;;  %v558_v28 = vld [vmem:[%s7733_s1 + $0xe58] sm:$0xff] }
  0xe5   :  { %4756 = vmatpush3.bf16.msra.mxu1 %v4755_v37  ;;  %4726 = vmatprep.subr.bf16.mxu0 %v4725_v38  ;;  %v549_v37 = vld [vmem:[%s7733_s1 + $0xe10] sm:$0xff]  ;;  %v550_v38 = vld [vmem:[%s7733_s1 + $0xe18] sm:$0xff] }
  0xe6   :  { %4758 = vmatprep.subr.bf16.mxu1 %v4757_v42  ;;  %v567_v42 = vld [vmem:[%s7733_s1 + $0xea0] sm:$0xff] }
  0xe7   :  { %v4781_v52 = vpack.c.bf16 %v568_v43, %v567_v42  ;;  %v4829_v43 = vpack.c.bf16 %v608_v35, %v607_v34 }
  0xe8   :  { %4728 = vmatpush3.bf16.msra.mxu0 %v4727_v48  ;;  %v91_v48 = vld [vmem:[#allocation2 + $0x1c0] sm:$0xff] }
  0xe9   :  { %4760 = vmatpush3.bf16.msra.mxu1 %v4759_v49  ;;  %4730 = vmatprep.subr.bf16.mxu0 %v4729_v50  ;;  %v4779_v49 = vpack.c.bf16 %v550_v38, %v549_v37  ;;  %v93_v50 = vld [vmem:[#allocation2 + $0x1d0] sm:$0xff] }
  0xea   :  { %4762 = vmatprep.subr.bf16.mxu1 %v4761_v54  ;;  %v552_v54 = vld [vmem:[%s7733_s1 + $0xe28] sm:$0xff] }
  0xeb   :  { %v4783_v63 = vpack.c.bf16 %v552_v54, %v551_v53 }
  0xec   :  { %4732 = vmatpush3.bf16.msra.mxu0 %v4731_v60  ;;  %v601_v60 = vld [vmem:[%s7733_s1 + $0xfb0] sm:$0xff] }
  0xed   :  { %4764 = vmatpush3.bf16.msra.mxu1 %v4763_v61  ;;  %4734 = vmatprep.subr.bf16.mxu0 %v4733_v62  ;;  %v602_v61 = vld [vmem:[%s7733_s1 + $0xfb8] sm:$0xff]  ;;  %v64_v62 = vld [vmem:[#allocation2 + $0xe8] sm:$0xff] }
  0xee   :  { %4766 = vmatprep.subr.bf16.mxu1 %v4765_v2  ;;  %v4785_v2 = vpack.c.bf16 %v570_v59, %v569_v58  ;;  %v4817_v6 = vpack.c.bf16 %v602_v61, %v601_v60  ;;  %v562_v58 = vld [vmem:[%s7733_s1 + $0xe78] sm:$0xff]  ;;  %v593_v60 = vld [vmem:[%s7733_s1 + $0xf70] sm:$0xff] }
  0xef   :  { %v594_v61 = vld [vmem:[%s7733_s1 + $0xf78] sm:$0xff] }
  0xf0   :  { %4736 = vmatpush3.bf16.msra.mxu0 %v4735_v8  ;;  %v571_v8 = vld [vmem:[%s7733_s1 + $0xec0] sm:$0xff] }
  0xf1   :  { %4768 = vmatpush3.bf16.msra.mxu1 %v4767_v9  ;;  %4738 = vmatprep.subr.bf16.mxu0 %v4737_v10  ;;  %v572_v9 = vld [vmem:[%s7733_s1 + $0xec8] sm:$0xff]  ;;  %v603_v10 = vld [vmem:[%s7733_s1 + $0xfc0] sm:$0xff] }
  0xf2   :  { %4770 = vmatprep.subr.bf16.mxu1 %v4769_v14  ;;  %v4789_v14 = vpack.c.bf16 %v572_v9, %v571_v8  ;;  %v4821_v18 = vpack.c.bf16 %v604_v11, %v603_v10  ;;  %v96_v8 = vld [vmem:[#allocation2 + $0x1e8] sm:$0xff]  ;;  %v98_v10 = vld [vmem:[#allocation2 + $0x1f8] sm:$0xff] }
  0xf4   :  { %4740 = vmatpush3.bf16.msra.mxu0 %v4739_v20  ;;  %v573_v20 = vld [vmem:[%s7733_s1 + $0xed0] sm:$0xff] }
  0xf5   :  { %4772 = vmatpush3.bf16.msra.mxu1 %v4771_v21  ;;  %4774 = vmatprep.subr.bf16.mxu0 %v4773_v22  ;;  %v574_v21 = vld [vmem:[%s7733_s1 + $0xed8] sm:$0xff]  ;;  %v605_v22 = vld [vmem:[%s7733_s1 + $0xfd0] sm:$0xff] }
  0xf6   :  { %4806 = vmatprep.subr.bf16.mxu1 %v4805_v26  ;;  %v4793_v26 = vpack.c.bf16 %v574_v21, %v573_v20  ;;  %v4825_v30 = vpack.c.bf16 %v606_v23, %v605_v22 }
  0xf7   :  { %1576 = vmatmul.mubr.f32.vlgmr.msra.gmra.mrb[24].mxu0 %v59_v25  ;;  %v4823_v25 = vpack.c.bf16 %v588_v19, %v587_v17 }
  0xf8   :  { %4776 = vmatpush3.bf16.msra.mxu0 %v4775_v32  ;;  %1651 = vmatmul.mubr.f32.vlgmr.msra.gmra.mrb[24].mxu1 %v61_v29  ;;  %v589_v29 = vld [vmem:[%s7733_s1 + $0xf50] sm:$0xff]  ;;  %v575_v32 = vld [vmem:[%s7733_s1 + $0xee0] sm:$0xff] }
  0xf9   :  { %4808 = vmatpush3.bf16.msra.mxu1 %v4807_v36  ;;  %1580 = vmatprep.mubr.f32.mxu0 %v92_v33  ;;  %v576_v33 = vld [vmem:[%s7733_s1 + $0xee8] sm:$0xff]  ;;  %v4795_v36 = vpack.c.bf16 %v558_v28, %v557_v27  ;;  %v4827_v37 = vpack.c.bf16 %v590_v31, %v589_v29 }
  0xfa   :  { %4778 = vmatprep.subr.bf16.mxu0 %v4777_v40  ;;  %1655 = vmatprep.mubr.f32.mxu1 %v94_v44  ;;  %v4797_v38 = vpack.c.bf16 %v576_v33, %v575_v32  ;;  %v560_v40 = vld [vmem:[%s7733_s1 + $0xe68] sm:$0xff] }
  0xfb   :  { %1581 = vmatmul.mubr.f32.gmra.mrb[26].mxu0 %v91_v48  ;;  %4810 = vmatprep.subr.bf16.mxu1 %v4809_v45  ;;  %v592_v44 = vld [vmem:[%s7733_s1 + $0xf68] sm:$0xff]  ;;  %v577_v45 = vld [vmem:[%s7733_s1 + $0xef0] sm:$0xff]  ;;  %v4799_v53 = vpack.c.bf16 %v560_v40, %v559_v39 }
  0xfc   :  { %4780 = vmatpush3.bf16.msra.mxu0 %v4779_v49  ;;  %1656 = vmatmul.mubr.f32.gmra.mrb[26].mxu1 %v93_v50  ;;  %v609_v49 = vld [vmem:[%s7733_s1 + $0xff0] sm:$0xff]  ;;  %v610_v50 = vld [vmem:[%s7733_s1 + $0xff8] sm:$0xff]  ;;  %v4831_v55 = vpack.c.bf16 %v592_v44, %v591_v41 }
  0xfd   :  { %4812 = vmatpush3.bf16.msra.mxu1 %v4811_v51  ;;  %4782 = vmatprep.subr.bf16.mxu0 %v4781_v52  ;;  %v4833_v59 = vpack.c.bf16 %v610_v50, %v609_v49  ;;  %v1813_v49 = vld [vmem:[%s7734_s2 + $0x10] sm:$0xff]  ;;  %v1814_v50 = vld [vmem:[%s7734_s2 + $0x18] sm:$0xff] }
  0xfe   :  { %4814 = vmatprep.subr.bf16.mxu1 %v4813_v56  ;;  %1725 = vmatprep.mubr.f32.mxu0 %v64_v62  ;;  %v4801_v56 = vpack.c.bf16 %v578_v46, %v577_v45  ;;  %v1811_v46 = vld [vmem:[%s7734_s2] sm:$0xff] }
  0xff   :  { %1800 = vmatprep.mubr.f32.mxu1 %v66_v0  ;;  %v4835_v0 = vpack.c.bf16 %v594_v61, %v593_v60 }
 0x100   :  { %4784 = vmatpush3.bf16.msra.mxu0 %v4783_v63  ;;  %v4803_v63 = vpack.c.bf16 %v562_v58, %v561_v57  ;;  %v1815_v57 = vld [vmem:[%s7734_s2 + $0x20] sm:$0xff]  ;;  %v1816_v58 = vld [vmem:[%s7734_s2 + $0x28] sm:$0xff] }
 0x101   :  { %4816 = vmatpush3.bf16.msra.mxu1 %v4815_v1  ;;  %4786 = vmatprep.subr.bf16.mxu0 %v4785_v2  ;;  %v4845_v60 = vpack.c.bf16 %v1816_v58, %v1815_v57 }
 0x102   :  { %4818 = vmatprep.subr.bf16.mxu1 %v4817_v6 }
 0x104   :  { %4788 = vmatpush3.bf16.msra.mxu0 %v4787_v12  ;;  %v95_v12 = vld [vmem:[#allocation2 + $0x1e0] sm:$0xff] }
 0x105   :  { %4820 = vmatpush3.bf16.msra.mxu1 %v4819_v13  ;;  %4790 = vmatprep.subr.bf16.mxu0 %v4789_v14  ;;  %v97_v13 = vld [vmem:[#allocation2 + $0x1f0] sm:$0xff] }
 0x106   :  { %4822 = vmatprep.subr.bf16.mxu1 %v4821_v18 }
 0x108   :  { %4792 = vmatpush3.bf16.msra.mxu0 %v4791_v24 }
 0x109   :  { %4824 = vmatpush3.bf16.msra.mxu1 %v4823_v25  ;;  %4794 = vmatprep.subr.bf16.mxu0 %v4793_v26 }
 0x10a   :  { %v3712_v42 = vpop.f32.mrb[0].mxu0  ;;  %4826 = vmatprep.subr.bf16.mxu1 %v4825_v30 }
 0x10b   :  { %v3750_v47 = vpop.f32.mrb[0].mxu1  ;;  %v3713_v48 = vpop.f32.mrb[1].mxu0 }
 0x10c   :  { %v3714_v51 = vadd.f32 %v3713_v48, %v3712_v42  ;;  %v3751_v52 = vpop.f32.mrb[1].mxu1  ;;  %4796 = vmatpush3.bf16.msra.mxu0 %v4795_v36 }
 0x10d   :  { %v3752_v54 = vadd.f32 %v3751_v52, %v3750_v47  ;;  %4828 = vmatpush3.bf16.msra.mxu1 %v4827_v37  ;;  %4798 = vmatprep.subr.bf16.mxu0 %v4797_v38  ;;  %v1812_v47 = vld [vmem:[%s7734_s2 + $0x8] sm:$0xff] }
 0x10e   :  { %4830 = vmatprep.subr.bf16.mxu1 %v4829_v43  ;;  %v3715_v1 = vpop.f32.mrb[2].mxu0  ;;  %v4837_v48 = vpack.c.bf16 %v1812_v47, %v1811_v46 }
 0x10f   :  { %v753_v62 = vadd.f32 %v3752_v54, %v3714_v51  ;;  %v3753_v2 = vpop.f32.mrb[2].mxu1  ;;  %v3716_v3 = vpop.f32.mrb[3].mxu0  ;;  %v4841_v51 = vpack.c.bf16 %v1814_v50, %v1813_v49 }
 0x110   :  { %4800 = vmatpush3.bf16.msra.mxu0 %v4799_v53  ;;  %v3717_v5 = vadd.f32 %v3716_v3, %v3715_v1  ;;  %v3754_v6 = vpop.f32.mrb[3].mxu1 }
 0x111   :  { %4832 = vmatpush3.bf16.msra.mxu1 %v4831_v55  ;;  %4802 = vmatprep.subr.bf16.mxu0 %v4801_v56  ;;  %v3755_v9 = vadd.f32 %v3754_v6, %v3753_v2 }
 0x112   :  { %4834 = vmatprep.subr.bf16.mxu1 %v4833_v59 }
 0x113   :  { %v758_v11 = vadd.f32 %v3755_v9, %v3717_v5  ;;  %v1818_v5 = vld [vmem:[%s7734_s2 + $0x38] sm:$0xff] }
 0x114   :  { %4804 = vmatpush3.bf16.msra.mxu0 %v4803_v63 }
 0x115   :  { %4836 = vmatpush3.bf16.msra.mxu1 %v4835_v0  ;;  %4838 = vmatprep.subr.bf16.mxu0 %v4837_v48 }
 0x117   :  { %1726 = vmatmul.mubr.f32.vlgmr.msra.gmra.mrb[28].mxu0 %v63_v4  ;;  %v1817_v4 = vld [vmem:[%s7734_s2 + $0x30] sm:$0xff] }
 0x118   :  { %1801 = vmatmul.mubr.f32.vlgmr.msra.gmra.mrb[28].mxu1 %v65_v7  ;;  %1730 = vmatprep.mubr.f32.mxu0 %v96_v8  ;;  %v4849_v7 = vpack.c.bf16 %v1818_v5, %v1817_v4 }
 0x119   :  { %1805 = vmatprep.mubr.f32.mxu1 %v98_v10  ;;  %4840 = vmatpush3.bf16.msra.mxu0 %v4837_v48  ;;  %v1903_v10 = vld [vmem:[%s7735_s3] sm:$0xf] }
 0x11a   :  { %4842 = vmatprep.subr.bf16.mxu0 %v4841_v51  ;;  %4320 = vmatprep.subr.msk.mxu1 %vm1911_vm0, %v1903_v10 }
 0x11b   :  { %1731 = vmatmul.mubr.f32.gmra.mrb[30].mxu0 %v95_v12  ;;  %4321 = vmatpush3.msk.msra.mxu1 %vm1911_vm0, %v1903_v10 }
 0x11c   :  { %1806 = vmatmul.mubr.f32.gmra.mrb[30].mxu1 %v97_v13 }
 0x11d   :  { %4844 = vmatpush3.bf16.msra.mxu0 %v4841_v51 }
 0x11e   :  { %4846 = vmatprep.subr.bf16.mxu0 %v4845_v60 }
 0x121   :  { %4848 = vmatpush3.bf16.msra.mxu0 %v4845_v60 }
 0x122   :  { %4850 = vmatprep.subr.bf16.mxu0 %v4849_v7 }
 0x125   :  { %4852 = vmatpush3.bf16.msra.mxu0 %v4849_v7 }
 0x12a   :  { %v3788_v14 = vpop.f32.mrb[4].mxu0 }
 0x12b   :  { %v3789_v15 = vpop.f32.mrb[5].mxu0  ;;  %v3826_v16 = vpop.f32.mrb[4].mxu1 }
 0x12c   :  { %v3790_v17 = vadd.f32 %v3789_v15, %v3788_v14  ;;  %v3827_v18 = vpop.f32.mrb[5].mxu1 }
 0x12d   :  { %v3828_v19 = vadd.f32 %v3827_v18, %v3826_v16 }
 0x12e   :  { %v828_v20 = vadd.f32 %v3790_v17, %v753_v62  ;;  %v3791_v21 = vpop.f32.mrb[6].mxu0 }
 0x12f   :  { %v3792_v22 = vpop.f32.mrb[7].mxu0  ;;  %v3829_v23 = vpop.f32.mrb[6].mxu1 }
 0x130   :  { %v903_v24 = vadd.f32 %v3828_v19, %v828_v20  ;;  %v3793_v25 = vadd.f32 %v3792_v22, %v3791_v21  ;;  %v3830_v26 = vpop.f32.mrb[7].mxu1 }
 0x131   :  { %v3831_v27 = vadd.f32 %v3830_v26, %v3829_v23 }
 0x132   :  { %v833_v28 = vadd.f32 %v3793_v25, %v758_v11 }
 0x134   :  { %v908_v29 = vadd.f32 %v3831_v27, %v833_v28 }
 0x14a   :  { %v3864_v30 = vpop.f32.mrb[8].mxu0 }
 0x14b   :  { %v3865_v31 = vpop.f32.mrb[9].mxu0  ;;  %v3902_v32 = vpop.f32.mrb[8].mxu1 }
 0x14c   :  { %v3866_v33 = vadd.f32 %v3865_v31, %v3864_v30  ;;  %v3903_v34 = vpop.f32.mrb[9].mxu1 }
 0x14d   :  { %v3904_v35 = vadd.f32 %v3903_v34, %v3902_v32 }
 0x14e   :  { %v978_v36 = vadd.f32 %v3866_v33, %v903_v24  ;;  %v3867_v37 = vpop.f32.mrb[10].mxu0 }
 0x14f   :  { %v3868_v38 = vpop.f32.mrb[11].mxu0  ;;  %v3905_v39 = vpop.f32.mrb[10].mxu1 }
 0x150   :  { %v1053_v40 = vadd.f32 %v3904_v35, %v978_v36  ;;  %v3869_v41 = vadd.f32 %v3868_v38, %v3867_v37  ;;  %v3906_v42 = vpop.f32.mrb[11].mxu1 }
 0x151   :  { %v3907_v43 = vadd.f32 %v3906_v42, %v3905_v39 }
 0x152   :  { %v983_v44 = vadd.f32 %v3869_v41, %v908_v29 }
 0x154   :  { %v1058_v45 = vadd.f32 %v3907_v43, %v983_v44 }
 0x16a   :  { %v3940_v52 = vpop.f32.mrb[12].mxu0 }
 0x16b   :  { %v3941_v53 = vpop.f32.mrb[13].mxu0  ;;  %v3978_v54 = vpop.f32.mrb[12].mxu1 }
 0x16c   :  { %v3942_v55 = vadd.f32 %v3941_v53, %v3940_v52  ;;  %v3979_v56 = vpop.f32.mrb[13].mxu1 }
 0x16d   :  { %v3980_v59 = vadd.f32 %v3979_v56, %v3978_v54 }
 0x16e   :  { %v1128_v61 = vadd.f32 %v3942_v55, %v1053_v40  ;;  %v3943_v62 = vpop.f32.mrb[14].mxu0 }
 0x16f   :  { %v3944_v63 = vpop.f32.mrb[15].mxu0  ;;  %v3981_v0 = vpop.f32.mrb[14].mxu1 }
 0x170   :  { %v1203_v1 = vadd.f32 %v3980_v59, %v1128_v61  ;;  %v3945_v2 = vadd.f32 %v3944_v63, %v3943_v62  ;;  %v3982_v3 = vpop.f32.mrb[15].mxu1 }
 0x171   :  { %v3983_v6 = vadd.f32 %v3982_v3, %v3981_v0 }
 0x172   :  { %v1133_v8 = vadd.f32 %v3945_v2, %v1058_v45 }
 0x174   :  { %v1208_v9 = vadd.f32 %v3983_v6, %v1133_v8 }
 0x18a   :  { %v4016_v11 = vpop.f32.mrb[16].mxu0 }
 0x18b   :  { %v4017_v12 = vpop.f32.mrb[17].mxu0  ;;  %v4054_v13 = vpop.f32.mrb[16].mxu1 }
 0x18c   :  { %v4018_v14 = vadd.f32 %v4017_v12, %v4016_v11  ;;  %v4055_v15 = vpop.f32.mrb[17].mxu1 }
 0x18d   :  { %v4056_v16 = vadd.f32 %v4055_v15, %v4054_v13  ;;  %v2003_v15 = vld [vmem:[%s7736_s4 + $0x8] sm:$0xff] }
 0x18e   :  { %v1278_v17 = vadd.f32 %v4018_v14, %v1203_v1  ;;  %v4019_v18 = vpop.f32.mrb[18].mxu0 }
 0x18f   :  { %v4020_v19 = vpop.f32.mrb[19].mxu0  ;;  %v4057_v20 = vpop.f32.mrb[18].mxu1 }
 0x190   :  { %v1353_v21 = vadd.f32 %v4056_v16, %v1278_v17  ;;  %v4021_v22 = vadd.f32 %v4020_v19, %v4019_v18  ;;  %v4058_v23 = vpop.f32.mrb[19].mxu1  ;;  %v2035_v16 = vld [vmem:[%s7736_s4 + $0x108] sm:$0xff]  ;;  %v2005_v17 = vld [vmem:[%s7736_s4 + $0x18] sm:$0xff] }
 0x191   :  { %v4059_v24 = vadd.f32 %v4058_v23, %v4057_v20  ;;  %v4853_v18 = vpack.c.bf16 %v2035_v16, %v2003_v15  ;;  %v2037_v19 = vld [vmem:[%s7736_s4 + $0x118] sm:$0xff]  ;;  %v2002_v20 = vld [vmem:[%s7736_s4] sm:$0xff]  ;;  %v2008_v16 = vld [vmem:[%s7736_s4 + $0x30] sm:$0xff] }
 0x192   :  { %v1283_v25 = vadd.f32 %v4021_v22, %v1208_v9  ;;  %v4869_v22 = vpack.c.bf16 %v2037_v19, %v2005_v17  ;;  %v2038_v15 = vld [vmem:[%s7736_s4 + $0x120] sm:$0xff]  ;;  %v2040_v17 = vld [vmem:[%s7736_s4 + $0x130] sm:$0xff]  ;;  %v2103_v19 = vld [vmem:[%s7736_s4 + $0x328] sm:$0xff] }
 0x193   :  { %4854 = vmatprep.subr.bf16.mxu1 %v4853_v18  ;;  %v2071_v18 = vld [vmem:[%s7736_s4 + $0x228] sm:$0xff] }
 0x194   :  { %v1358_v26 = vadd.f32 %v4059_v24, %v1283_v25  ;;  %v2004_v24 = vld [vmem:[%s7736_s4 + $0x10] sm:$0xff]  ;;  %4870 = vmatprep.subr.bf16.mxu0 %v4869_v22 }
 0x195   :  { %v2036_v25 = vld [vmem:[%s7736_s4 + $0x110] sm:$0xff] }
 0x1aa   :  { %v4092_v27 = vpop.f32.mrb[20].mxu0 }
 0x1ab   :  { %v4093_v28 = vpop.f32.mrb[21].mxu0  ;;  %v4130_v29 = vpop.f32.mrb[20].mxu1 }
 0x1ac   :  { %v4094_v30 = vadd.f32 %v4093_v28, %v4092_v27  ;;  %v4131_v31 = vpop.f32.mrb[21].mxu1  ;;  %v2067_v27 = vld [vmem:[%s7736_s4 + $0x208] sm:$0xff] }
 0x1ad   :  { %v4132_v32 = vadd.f32 %v4131_v31, %v4130_v29  ;;  %v2099_v28 = vld [vmem:[%s7736_s4 + $0x308] sm:$0xff]  ;;  %v2069_v29 = vld [vmem:[%s7736_s4 + $0x218] sm:$0xff] }
 0x1ae   :  { %v1428_v33 = vadd.f32 %v4094_v30, %v1353_v21  ;;  %v4095_v34 = vpop.f32.mrb[22].mxu0  ;;  %v2034_v21 = vld [vmem:[%s7736_s4 + $0x100] sm:$0xff]  ;;  %v4857_v30 = vpack.c.bf16 %v2099_v28, %v2067_v27  ;;  %v2101_v31 = vld [vmem:[%s7736_s4 + $0x318] sm:$0xff]  ;;  %v2104_v27 = vld [vmem:[%s7736_s4 + $0x330] sm:$0xff] }
 0x1af   :  { %v4096_v35 = vpop.f32.mrb[23].mxu0  ;;  %v4133_v36 = vpop.f32.mrb[22].mxu1  ;;  %v4855_v23 = vpack.c.bf16 %v2034_v21, %v2002_v20  ;;  %v2073_v20 = vld [vmem:[%s7736_s4 + $0x238] sm:$0xff]  ;;  %v2135_v28 = vld [vmem:[%s7736_s4 + $0x428] sm:$0xff] }
 0x1b0   :  { %v1503_v37 = vadd.f32 %v4132_v32, %v1428_v33  ;;  %v4097_v38 = vadd.f32 %v4096_v35, %v4095_v34  ;;  %v4134_v39 = vpop.f32.mrb[23].mxu1  ;;  %v2066_v32 = vld [vmem:[%s7736_s4 + $0x200] sm:$0xff]  ;;  %v4873_v34 = vpack.c.bf16 %v2101_v31, %v2069_v29  ;;  %v2105_v21 = vld [vmem:[%s7736_s4 + $0x338] sm:$0xff] }
 0x1b1   :  { %v4135_v40 = vadd.f32 %v4134_v39, %v4133_v36  ;;  %v2098_v33 = vld [vmem:[%s7736_s4 + $0x300] sm:$0xff]  ;;  %v2068_v36 = vld [vmem:[%s7736_s4 + $0x210] sm:$0xff]  ;;  %v2131_v39 = vld [vmem:[%s7736_s4 + $0x408] sm:$0xff]  ;;  %v4905_v31 = vpack.c.bf16 %v2105_v21, %v2073_v20 }
 0x1b2   :  { %v1433_v41 = vadd.f32 %v4097_v38, %v1358_v26  ;;  %v4871_v26 = vpack.c.bf16 %v2036_v25, %v2004_v24  ;;  %v4859_v35 = vpack.c.bf16 %v2098_v33, %v2066_v32  ;;  %v2070_v24 = vld [vmem:[%s7736_s4 + $0x220] sm:$0xff]  ;;  %v2167_v32 = vld [vmem:[%s7736_s4 + $0x528] sm:$0xff]  ;;  %v2137_v33 = vld [vmem:[%s7736_s4 + $0x438] sm:$0xff] }
 0x1b3   :  { %v2102_v25 = vld [vmem:[%s7736_s4 + $0x320] sm:$0xff]  ;;  %v2173_v20 = vld [vmem:[%s7736_s4 + $0x558] sm:$0xff] }
 0x1b4   :  { %v1508_v42 = vadd.f32 %v4135_v40, %v1433_v41  ;;  %v2163_v40 = vld [vmem:[%s7736_s4 + $0x508] sm:$0xff]  ;;  %v2133_v41 = vld [vmem:[%s7736_s4 + $0x418] sm:$0xff] }
 0x1ca   :  { %v4168_v43 = vpop.f32.mrb[24].mxu0 }
 0x1cb   :  { %v4169_v44 = vpop.f32.mrb[25].mxu0  ;;  %v4206_v45 = vpop.f32.mrb[24].mxu1 }
 0x1cc   :  { %v4170_v46 = vadd.f32 %v4169_v44, %v4168_v43  ;;  %v4207_v47 = vpop.f32.mrb[25].mxu1  ;;  %v2165_v43 = vld [vmem:[%s7736_s4 + $0x518] sm:$0xff]  ;;  %v2130_v44 = vld [vmem:[%s7736_s4 + $0x400] sm:$0xff] }
 0x1cd   :  { %v4208_v48 = vadd.f32 %v4207_v47, %v4206_v45  ;;  %v2162_v45 = vld [vmem:[%s7736_s4 + $0x500] sm:$0xff]  ;;  %v4877_v47 = vpack.c.bf16 %v2165_v43, %v2133_v41  ;;  %v2136_v41 = vld [vmem:[%s7736_s4 + $0x430] sm:$0xff]  ;;  %v2199_v43 = vld [vmem:[%s7736_s4 + $0x628] sm:$0xff] }
 0x1ce   :  { %v1578_v49 = vadd.f32 %v4170_v46, %v1503_v37  ;;  %v4171_v50 = vpop.f32.mrb[26].mxu0  ;;  %v2100_v37 = vld [vmem:[%s7736_s4 + $0x310] sm:$0xff]  ;;  %v5237_v46 = vmov 0.0  }
 0x1cf   :  { %v4172_v51 = vpop.f32.mrb[27].mxu0  ;;  %v4209_v52 = vpop.f32.mrb[26].mxu1  ;;  %v4875_v38 = vpack.c.bf16 %v2100_v37, %v2068_v36  ;;  %v2134_v37 = vld [vmem:[%s7736_s4 + $0x420] sm:$0xff] }
 0x1d0   :  { %v1653_v53 = vadd.f32 %v4208_v48, %v1578_v49  ;;  %v4173_v54 = vadd.f32 %v4172_v51, %v4171_v50  ;;  %v4210_v55 = vpop.f32.mrb[27].mxu1  ;;  %v4863_v48 = vpack.c.bf16 %v2162_v45, %v2130_v44  ;;  %v2132_v49 = vld [vmem:[%s7736_s4 + $0x410] sm:$0xff]  ;;  %v2195_v51 = vld [vmem:[%s7736_s4 + $0x608] sm:$0xff] }
 0x1d1   :  { %v4211_v56 = vadd.f32 %v4210_v55, %v4209_v52  ;;  %v2164_v50 = vld [vmem:[%s7736_s4 + $0x510] sm:$0xff]  ;;  %v2229_v55 = vld [vmem:[%s7736_s4 + $0x718] sm:$0xff]  ;;  %v2231_v45 = vld [vmem:[%s7736_s4 + $0x728] sm:$0xff] }
 0x1d2   :  { %v1583_v57 = vadd.f32 %v4173_v54, %v1508_v42  ;;  %v4861_v42 = vpack.c.bf16 %v2163_v40, %v2131_v39  ;;  %v4879_v52 = vpack.c.bf16 %v2164_v50, %v2132_v49  ;;  %v2197_v54 = vld [vmem:[%s7736_s4 + $0x618] sm:$0xff]  ;;  %v4893_v39 = vpack.c.bf16 %v2167_v32, %v2135_v28  ;;  %v2172_v28 = vld [vmem:[%s7736_s4 + $0x550] sm:$0xff] }
 0x1d3   :  { %v2205_v32 = vld [vmem:[%s7736_s4 + $0x658] sm:$0xff] }
 0x1d4   :  { %v1658_v58 = vadd.f32 %v4211_v56, %v1583_v57  ;;  %v4881_v57 = vpack.c.bf16 %v2229_v55, %v2197_v54  ;;  %v2200_v55 = vld [vmem:[%s7736_s4 + $0x630] sm:$0xff] }
 0x1ea   :  { %v4244_v59 = vpop.f32.mrb[28].mxu0 }
 0x1eb   :  { %v4245_v60 = vpop.f32.mrb[29].mxu0  ;;  %v4282_v61 = vpop.f32.mrb[28].mxu1 }
 0x1ec   :  { %v4246_v62 = vadd.f32 %v4245_v60, %v4244_v59  ;;  %v4283_v63 = vpop.f32.mrb[29].mxu1  ;;  %v2226_v59 = vld [vmem:[%s7736_s4 + $0x700] sm:$0xff]  ;;  %v2196_v60 = vld [vmem:[%s7736_s4 + $0x610] sm:$0xff] }
 0x1ed   :  { %v4284_v0 = vadd.f32 %v4283_v63, %v4282_v61  ;;  %v2007_v63 = vld [vmem:[%s7736_s4 + $0x28] sm:$0xff] }
 0x1ee   :  { %v1728_v1 = vadd.f32 %v4246_v62, %v1653_v53  ;;  %v4247_v2 = vpop.f32.mrb[30].mxu0  ;;  %v2227_v53 = vld [vmem:[%s7736_s4 + $0x708] sm:$0xff]  ;;  %v2228_v62 = vld [vmem:[%s7736_s4 + $0x710] sm:$0xff] }
 0x1ef   :  { %v4248_v3 = vpop.f32.mrb[31].mxu0  ;;  %v4285_v4 = vpop.f32.mrb[30].mxu1  ;;  %v4865_v56 = vpack.c.bf16 %v2227_v53, %v2195_v51  ;;  %v2198_v51 = vld [vmem:[%s7736_s4 + $0x620] sm:$0xff]  ;;  %v4897_v53 = vpack.c.bf16 %v2231_v45, %v2199_v43  ;;  %v2047_v43 = vld [vmem:[%s7736_s4 + $0x168] sm:$0xff]  ;;  %v2017_v45 = vld [vmem:[%s7736_s4 + $0x78] sm:$0xff] }
 0x1f0   :  { %v1803_v5 = vadd.f32 %v4284_v0, %v1728_v1  ;;  %v4249_v6 = vadd.f32 %v4248_v3, %v4247_v2  ;;  %v4286_v7 = vpop.f32.mrb[31].mxu1  ;;  %v2039_v0 = vld [vmem:[%s7736_s4 + $0x128] sm:$0xff]  ;;  %v4883_v1 = vpack.c.bf16 %v2228_v62, %v2196_v60  ;;  %v2009_v3 = vld [vmem:[%s7736_s4 + $0x38] sm:$0xff] }
 0x1f1   :  { %v4287_v8 = vadd.f32 %v4286_v7, %v4285_v4  ;;  %v4885_v2 = vpack.c.bf16 %v2039_v0, %v2007_v63  ;;  %v2041_v4 = vld [vmem:[%s7736_s4 + $0x138] sm:$0xff]  ;;  %v2010_v63 = vld [vmem:[%s7736_s4 + $0x40] sm:$0xff] }
 0x1f2   :  { %v1733_v9 = vadd.f32 %v4249_v6, %v1658_v58  ;;  %4317 = vmatprep.mubr.msk.f32.mxu0 %vm1819_vm1, %v1803_v5  ;;  %v2194_v58 = vld [vmem:[%s7736_s4 + $0x600] sm:$0xff]  ;;  %v4901_v5 = vpack.c.bf16 %v2041_v4, %v2009_v3  ;;  %v2045_v60 = vld [vmem:[%s7736_s4 + $0x158] sm:$0xff]  ;;  %v2012_v3 = vld [vmem:[%s7736_s4 + $0x50] sm:$0xff] }
 0x1f3   :  { %v4867_v61 = vpack.c.bf16 %v2226_v59, %v2194_v58  ;;  %v2043_v58 = vld [vmem:[%s7736_s4 + $0x148] sm:$0xff]  ;;  %v2013_v59 = vld [vmem:[%s7736_s4 + $0x58] sm:$0xff]  ;;  %v2044_v4 = vld [vmem:[%s7736_s4 + $0x150] sm:$0xff] }
 0x1f4   :  { %v1808_v10 = vadd.f32 %v4287_v8, %v1733_v9 }
 0x1f6   :  { %4318 = vmatmul.mubr.msk.f32.vlgmr.msra.gmra.mrb[32].mxu0 %vm1819_vm1, %v1808_v10 }
 0x1f7   :  { %4872 = vmatpush1.bf16.msra.mxu0 %v4871_v26  ;;  %2405 = vmatprep.mubr.f32.mxu0 %v5237_v46  ;;  %v2072_v26 = vld [vmem:[%s7736_s4 + $0x230] sm:$0xff] }
 0x1f8   :  { %4874 = vmatprep.subr.bf16.mxu0 %v4873_v34  ;;  %v2169_v34 = vld [vmem:[%s7736_s4 + $0x538] sm:$0xff]  ;;  %v4907_v36 = vpack.c.bf16 %v2104_v27, %v2072_v26  ;;  %v2140_v27 = vld [vmem:[%s7736_s4 + $0x450] sm:$0xff] }
 0x1f9   :  { %v4909_v40 = vpack.c.bf16 %v2169_v34, %v2137_v33  ;;  %v2237_v33 = vld [vmem:[%s7736_s4 + $0x758] sm:$0xff] }
 0x1fb   :  { %4876 = vmatpush1.bf16.msra.mxu0 %v4875_v38  ;;  %v2166_v38 = vld [vmem:[%s7736_s4 + $0x520] sm:$0xff] }
 0x1fc   :  { %4878 = vmatprep.subr.bf16.mxu0 %v4877_v47  ;;  %v2201_v47 = vld [vmem:[%s7736_s4 + $0x638] sm:$0xff]  ;;  %v4895_v49 = vpack.c.bf16 %v2166_v38, %v2134_v37  ;;  %v2234_v37 = vld [vmem:[%s7736_s4 + $0x740] sm:$0xff] }
 0x1ff   :  { %4880 = vmatpush1.bf16.msra.mxu0 %v4879_v52  ;;  %v2230_v52 = vld [vmem:[%s7736_s4 + $0x720] sm:$0xff] }
 0x200   :  { %4882 = vmatprep.subr.bf16.mxu0 %v4881_v57  ;;  %v2011_v57 = vld [vmem:[%s7736_s4 + $0x48] sm:$0xff] }
 0x201   :  { %v4917_v0 = vpack.c.bf16 %v2043_v58, %v2011_v57  ;;  %v2111_v57 = vld [vmem:[%s7736_s4 + $0x368] sm:$0xff]  ;;  %v2081_v58 = vld [vmem:[%s7736_s4 + $0x278] sm:$0xff] }
 0x203   :  { %4884 = vmatpush1.bf16.msra.mxu0 %v4883_v1  ;;  %v4933_v1 = vpack.c.bf16 %v2045_v60, %v2013_v59  ;;  %v2113_v59 = vld [vmem:[%s7736_s4 + $0x378] sm:$0xff] }
 0x204   :  { %4902 = vmatprep.subr.bf16.mxu0 %v4901_v5  ;;  %v2075_v5 = vld [vmem:[%s7736_s4 + $0x248] sm:$0xff] }
 0x2c9   :  { %v4319_v11 = vpop.f32.mrb[32].mxu0 }
 0x2ca   :  { %v1892_v12 = vpop.f32.mrb[33].mxu0  ;;  %v1902_v14 = vmax.f32 %v4319_v11, 0.0 }
 0x2cb   :  { %v1901_v13 = vmax.f32 %v1892_v12, 0.0 }
 0x2cd   :  { %4322 = vmatprep.mubr.msk.f32.mxu1 %vm1904_vm2, %v1901_v13 }
 0x2ce   :  { %4323 = vmatmul.mubr.msk.f32.vlgmr.msra.gmra.mrb[32].mxu1 %vm1904_vm2, %v1902_v14  ;;  %v2006_v14 = vld [vmem:[%s7736_s4 + $0x20] sm:$0xff] }
 0x2cf   :  { %4856 = vmatpush1.bf16.msra.mxu1 %v4855_v23  ;;  %2328 = vmatprep.mubr.f32.mxu1 %v5237_v46  ;;  %v4887_v22 = vpack.c.bf16 %v2038_v15, %v2006_v14  ;;  %v4903_v23 = vpack.c.bf16 %v2040_v17, %v2008_v16  ;;  %v2108_v14 = vld [vmem:[%s7736_s4 + $0x350] sm:$0xff]  ;;  %v2139_v15 = vld [vmem:[%s7736_s4 + $0x448] sm:$0xff] }
 0x2d0   :  { %4858 = vmatprep.subr.bf16.mxu1 %v4857_v30  ;;  %v4889_v30 = vpack.c.bf16 %v2103_v19, %v2071_v18  ;;  %v2171_v18 = vld [vmem:[%s7736_s4 + $0x548] sm:$0xff]  ;;  %v2141_v19 = vld [vmem:[%s7736_s4 + $0x458] sm:$0xff] }
 0x2d1   :  { %v4941_v26 = vpack.c.bf16 %v2173_v20, %v2141_v19  ;;  %v2241_v19 = vld [vmem:[%s7736_s4 + $0x778] sm:$0xff] }
 0x2d3   :  { %4860 = vmatpush1.bf16.msra.mxu1 %v4859_v35  ;;  %v4891_v35 = vpack.c.bf16 %v2102_v25, %v2070_v24  ;;  %v2170_v24 = vld [vmem:[%s7736_s4 + $0x540] sm:$0xff]  ;;  %v4925_v25 = vpack.c.bf16 %v2171_v18, %v2139_v15  ;;  %v2176_v15 = vld [vmem:[%s7736_s4 + $0x570] sm:$0xff]  ;;  %v2209_v18 = vld [vmem:[%s7736_s4 + $0x678] sm:$0xff] }
 0x2d4   :  { %4862 = vmatprep.subr.bf16.mxu1 %v4861_v42  ;;  %v2168_v42 = vld [vmem:[%s7736_s4 + $0x530] sm:$0xff] }
 0x2d5   :  { %v4911_v50 = vpack.c.bf16 %v2168_v42, %v2136_v41  ;;  %v2236_v41 = vld [vmem:[%s7736_s4 + $0x750] sm:$0xff]  ;;  %v2015_v42 = vld [vmem:[%s7736_s4 + $0x68] sm:$0xff] }
 0x2d7   :  { %4864 = vmatpush1.bf16.msra.mxu1 %v4863_v48  ;;  %v2233_v48 = vld [vmem:[%s7736_s4 + $0x738] sm:$0xff] }
 0x2d8   :  { %4866 = vmatprep.subr.bf16.mxu1 %v4865_v56  ;;  %v4913_v54 = vpack.c.bf16 %v2233_v48, %v2201_v47  ;;  %v2232_v56 = vld [vmem:[%s7736_s4 + $0x730] sm:$0xff]  ;;  %v2049_v47 = vld [vmem:[%s7736_s4 + $0x178] sm:$0xff] }
 0x2d9   :  { %v4915_v62 = vpack.c.bf16 %v2232_v56, %v2200_v55  ;;  %v2048_v55 = vld [vmem:[%s7736_s4 + $0x170] sm:$0xff]  ;;  %v2079_v56 = vld [vmem:[%s7736_s4 + $0x268] sm:$0xff] }
 0x2db   :  { %4868 = vmatpush1.bf16.msra.mxu1 %v4867_v61  ;;  %v4899_v61 = vpack.c.bf16 %v2230_v52, %v2198_v51  ;;  %v4949_v51 = vpack.c.bf16 %v2047_v43, %v2015_v42  ;;  %v4965_v52 = vpack.c.bf16 %v2049_v47, %v2017_v45  ;;  %v2115_v42 = vld [vmem:[%s7736_s4 + $0x388] sm:$0xff]  ;;  %v2085_v43 = vld [vmem:[%s7736_s4 + $0x298] sm:$0xff] }
 0x2dc   :  { %4886 = vmatprep.subr.bf16.mxu1 %v4885_v2  ;;  %v2042_v2 = vld [vmem:[%s7736_s4 + $0x140] sm:$0xff]  ;;  %v2117_v45 = vld [vmem:[%s7736_s4 + $0x398] sm:$0xff] }
 0x3a1   :  { %v4324_v6 = vpop.f32.mrb[32].mxu1 }
 0x3a2   :  { %v3647_v7 = vmul.f32 -1.442695, %v4324_v6  ;;  %v1981_v8 = vpop.f32.mrb[33].mxu1  ;;  %v2107_v6 = vld [vmem:[%s7736_s4 + $0x348] sm:$0xff] }
 0x3a3   :  { %v3646_v9 = vmul.f32 -1.442695, %v1981_v8  ;;  %v2109_v8 = vld [vmem:[%s7736_s4 + $0x358] sm:$0xff]  ;;  %v4921_v16 = vpack.c.bf16 %v2107_v6, %v2075_v5  ;;  %v2175_v5 = vld [vmem:[%s7736_s4 + $0x568] sm:$0xff] }
 0x3a4   :  { %5114 = vpow2.f32 %v3647_v7  ;;  %v2077_v7 = vld [vmem:[%s7736_s4 + $0x258] sm:$0xff] }
 0x3a5   :  { %5116 = vpow2.f32 %v3646_v9  ;;  %v4919_v9 = vpack.c.bf16 %v2042_v2, %v2010_v63  ;;  %v4937_v17 = vpack.c.bf16 %v2109_v8, %v2077_v7  ;;  %v2110_v63 = vld [vmem:[%s7736_s4 + $0x360] sm:$0xff]  ;;  %v2143_v2 = vld [vmem:[%s7736_s4 + $0x468] sm:$0xff]  ;;  %v2145_v6 = vld [vmem:[%s7736_s4 + $0x478] sm:$0xff] }
 0x3a6   :  { %v2177_v7 = vld [vmem:[%s7736_s4 + $0x578] sm:$0xff] }
 0x3ae   :  { %v5115_v10 = vpop.eup %5114 }
 0x3af   :  { %v5117_v11 = vpop.eup %5116  ;;  %v1997_v13 = vadd.f32 1.0, %v5115_v10  ;;  %v4935_v10 = vpack.c.bf16 %v2044_v4, %v2012_v3  ;;  %v4953_v3 = vpack.c.bf16 %v2111_v57, %v2079_v56  ;;  %v4969_v4 = vpack.c.bf16 %v2113_v59, %v2081_v58  ;;  %v2179_v56 = vld [vmem:[%s7736_s4 + $0x588] sm:$0xff]  ;;  %v2149_v57 = vld [vmem:[%s7736_s4 + $0x498] sm:$0xff] }
 0x3b0   :  { %v1996_v12 = vadd.f32 1.0, %v5117_v11  ;;  %v2074_v11 = vld [vmem:[%s7736_s4 + $0x240] sm:$0xff]  ;;  %v2181_v58 = vld [vmem:[%s7736_s4 + $0x598] sm:$0xff] }
 0x3b2   :  { %5118 = vrcp.f32 %v1996_v12  ;;  %v2106_v12 = vld [vmem:[%s7736_s4 + $0x340] sm:$0xff] }
 0x3b3   :  { %5120 = vrcp.f32 %v1997_v13  ;;  %v2076_v13 = vld [vmem:[%s7736_s4 + $0x250] sm:$0xff]  ;;  %v4923_v21 = vpack.c.bf16 %v2106_v12, %v2074_v11  ;;  %v2174_v11 = vld [vmem:[%s7736_s4 + $0x560] sm:$0xff]  ;;  %v4957_v12 = vpack.c.bf16 %v2175_v5, %v2143_v2  ;;  %v2213_v5 = vld [vmem:[%s7736_s4 + $0x698] sm:$0xff] }
 0x3b4   :  { %v2180_v2 = vld [vmem:[%s7736_s4 + $0x590] sm:$0xff] }
 0x3bc   :  { %v6998_v29 = vpop.eup %5118 }
 0x3bd   :  { %3648 = vmatmul.mubr.msk.f32.vlgmr.msra.gmra.mrb[34].mxu1 %vm1819_vm1, %v6998_v29  ;;  %3650 = vmatmul.mubr.msk.f32.vlgmr.msra.gmra.mrb[34].mxu0 %vm1819_vm1, %v6998_v29  ;;  %v7030_v44 = vpop.eup %5120 }
 0x3be   :  { %4888 = vmatpush1.bf16.msra.mxu1 %v4887_v22  ;;  %4904 = vmatpush1.bf16.msra.mxu0 %v4903_v23  ;;  %v4939_v22 = vpack.c.bf16 %v2108_v14, %v2076_v13  ;;  %v2138_v23 = vld [vmem:[%s7736_s4 + $0x440] sm:$0xff]  ;;  %v4973_v13 = vpack.c.bf16 %v2177_v7, %v2145_v6  ;;  %v2144_v14 = vld [vmem:[%s7736_s4 + $0x470] sm:$0xff]  ;;  %v2245_v6 = vld [vmem:[%s7736_s4 + $0x798] sm:$0xff] }
 0x3bf   :  { %2334 = vmatprep.mubr.f32.mxu1 %v5237_v46  ;;  %2411 = vmatprep.mubr.f32.mxu0 %v5237_v46  ;;  %v4927_v34 = vpack.c.bf16 %v2170_v24, %v2138_v23  ;;  %v2238_v23 = vld [vmem:[%s7736_s4 + $0x760] sm:$0xff] }
 0x3c0   :  { %4890 = vmatprep.subr.bf16.mxu1 %v4889_v30  ;;  %4906 = vmatprep.subr.bf16.mxu0 %v4905_v31  ;;  %v2203_v30 = vld [vmem:[%s7736_s4 + $0x648] sm:$0xff] }
 0x3c1   :  { %3649 = vmatmul.mubr.msk.f32.gmra.mrb[36].mxu1 %vm1819_vm1, %v7030_v44  ;;  %3651 = vmatmul.mubr.msk.f32.gmra.mrb[36].mxu0 %vm1819_vm1, %v7030_v44  ;;  %v2235_v31 = vld [vmem:[%s7736_s4 + $0x748] sm:$0xff] }
 0x3c2   :  { %4892 = vmatpush1.bf16.msra.mxu1 %v4891_v35  ;;  %4908 = vmatpush1.bf16.msra.mxu0 %v4907_v36  ;;  %v4943_v35 = vpack.c.bf16 %v2172_v28, %v2140_v27  ;;  %v2202_v36 = vld [vmem:[%s7736_s4 + $0x640] sm:$0xff]  ;;  %v4929_v38 = vpack.c.bf16 %v2235_v31, %v2203_v30  ;;  %v2240_v27 = vld [vmem:[%s7736_s4 + $0x770] sm:$0xff]  ;;  %v2019_v28 = vld [vmem:[%s7736_s4 + $0x88] sm:$0xff] }
 0x3c3   :  { %4894 = vmatprep.subr.bf16.mxu1 %v4893_v39  ;;  %4910 = vmatprep.subr.bf16.mxu0 %v4909_v40  ;;  %v4945_v39 = vpack.c.bf16 %v2237_v33, %v2205_v32  ;;  %v2204_v40 = vld [vmem:[%s7736_s4 + $0x650] sm:$0xff]  ;;  %v4931_v48 = vpack.c.bf16 %v2234_v37, %v2202_v36  ;;  %v2051_v30 = vld [vmem:[%s7736_s4 + $0x188] sm:$0xff]  ;;  %v2021_v31 = vld [vmem:[%s7736_s4 + $0x98] sm:$0xff] }
 0x3c4   :  { %2482 = vmatprep.mubr.f32.mxu1 %v5237_v46  ;;  %2559 = vmatprep.mubr.f32.mxu0 %v5237_v46  ;;  %v2053_v32 = vld [vmem:[%s7736_s4 + $0x198] sm:$0xff]  ;;  %v4981_v36 = vpack.c.bf16 %v2051_v30, %v2019_v28  ;;  %v2119_v28 = vld [vmem:[%s7736_s4 + $0x3a8] sm:$0xff] }
 0x3c5   :  { %v4997_v37 = vpack.c.bf16 %v2053_v32, %v2021_v31  ;;  %v2089_v30 = vld [vmem:[%s7736_s4 + $0x2b8] sm:$0xff] }
 0x3c6   :  { %4896 = vmatpush1.bf16.msra.mxu1 %v4895_v49  ;;  %4912 = vmatpush1.bf16.msra.mxu0 %v4911_v50  ;;  %v4947_v49 = vpack.c.bf16 %v2236_v41, %v2204_v40  ;;  %v2014_v50 = vld [vmem:[%s7736_s4 + $0x60] sm:$0xff]  ;;  %v2052_v40 = vld [vmem:[%s7736_s4 + $0x190] sm:$0xff]  ;;  %v2083_v41 = vld [vmem:[%s7736_s4 + $0x288] sm:$0xff] }
 0x3c7   :  { %4898 = vmatprep.subr.bf16.mxu1 %v4897_v53  ;;  %4914 = vmatprep.subr.bf16.mxu0 %v4913_v54  ;;  %v2046_v53 = vld [vmem:[%s7736_s4 + $0x160] sm:$0xff]  ;;  %v2016_v54 = vld [vmem:[%s7736_s4 + $0x70] sm:$0xff]  ;;  %v2121_v31 = vld [vmem:[%s7736_s4 + $0x3b8] sm:$0xff] }
 0x3c8   :  { %v4951_v60 = vpack.c.bf16 %v2046_v53, %v2014_v50  ;;  %v2114_v50 = vld [vmem:[%s7736_s4 + $0x380] sm:$0xff]  ;;  %v2147_v53 = vld [vmem:[%s7736_s4 + $0x488] sm:$0xff] }
 0x3ca   :  { %4900 = vmatpush1.bf16.msra.mxu1 %v4899_v61  ;;  %4916 = vmatpush1.bf16.msra.mxu0 %v4915_v62  ;;  %v4967_v61 = vpack.c.bf16 %v2048_v55, %v2016_v54  ;;  %v2078_v62 = vld [vmem:[%s7736_s4 + $0x260] sm:$0xff]  ;;  %v4985_v54 = vpack.c.bf16 %v2115_v42, %v2083_v41  ;;  %v5001_v55 = vpack.c.bf16 %v2117_v45, %v2085_v43  ;;  %v2183_v41 = vld [vmem:[%s7736_s4 + $0x5a8] sm:$0xff]  ;;  %v2153_v42 = vld [vmem:[%s7736_s4 + $0x4b8] sm:$0xff] }
 0x3cb   :  { %4918 = vmatprep.subr.bf16.mxu1 %v4917_v0  ;;  %4934 = vmatprep.subr.bf16.mxu0 %v4933_v1  ;;  %v2080_v0 = vld [vmem:[%s7736_s4 + $0x270] sm:$0xff]  ;;  %v4955_v8 = vpack.c.bf16 %v2110_v63, %v2078_v62  ;;  %v2178_v62 = vld [vmem:[%s7736_s4 + $0x580] sm:$0xff]  ;;  %v4989_v63 = vpack.c.bf16 %v2179_v56, %v2147_v53  ;;  %v2185_v43 = vld [vmem:[%s7736_s4 + $0x5b8] sm:$0xff] }
 0x3cc   :  { %v2112_v1 = vld [vmem:[%s7736_s4 + $0x370] sm:$0xff]  ;;  %v2217_v56 = vld [vmem:[%s7736_s4 + $0x6b8] sm:$0xff] }
 0x3cd   :  { %3652 = vmatmul.mubr.msk.f32.vlgmr.msra.gmra.mrb[38].mxu1 %vm1819_vm1, %v6998_v29  ;;  %3654 = vmatmul.mubr.msk.f32.vlgmr.msra.gmra.mrb[38].mxu0 %vm1819_vm1, %v6998_v29  ;;  %v2184_v53 = vld [vmem:[%s7736_s4 + $0x5b0] sm:$0xff] }
 0x3ce   :  { %4920 = vmatpush1.bf16.msra.mxu1 %v4919_v9  ;;  %4936 = vmatpush1.bf16.msra.mxu0 %v4935_v10  ;;  %v4971_v9 = vpack.c.bf16 %v2112_v1, %v2080_v0  ;;  %v2142_v10 = vld [vmem:[%s7736_s4 + $0x460] sm:$0xff]  ;;  %v5005_v0 = vpack.c.bf16 %v2181_v58, %v2149_v57  ;;  %v2148_v1 = vld [vmem:[%s7736_s4 + $0x490] sm:$0xff]  ;;  %v2249_v57 = vld [vmem:[%s7736_s4 + $0x7b8] sm:$0xff] }
 0x3cf   :  { %2488 = vmatprep.mubr.f32.mxu1 %v5237_v46  ;;  %2565 = vmatprep.mubr.f32.mxu0 %v5237_v46  ;;  %v4959_v20 = vpack.c.bf16 %v2174_v11, %v2142_v10  ;;  %v2242_v10 = vld [vmem:[%s7736_s4 + $0x780] sm:$0xff] }
 0x3d0   :  { %4922 = vmatprep.subr.bf16.mxu1 %v4921_v16  ;;  %4938 = vmatprep.subr.bf16.mxu0 %v4937_v17  ;;  %v2207_v16 = vld [vmem:[%s7736_s4 + $0x668] sm:$0xff] }
 0x3d1   :  { %3653 = vmatmul.mubr.msk.f32.gmra.mrb[40].mxu1 %vm1819_vm1, %v7030_v44  ;;  %3655 = vmatmul.mubr.msk.f32.gmra.mrb[40].mxu0 %vm1819_vm1, %v7030_v44  ;;  %v2239_v17 = vld [vmem:[%s7736_s4 + $0x768] sm:$0xff] }
 0x3d2   :  { %4924 = vmatpush1.bf16.msra.mxu1 %v4923_v21  ;;  %4940 = vmatpush1.bf16.msra.mxu0 %v4939_v22  ;;  %v4975_v21 = vpack.c.bf16 %v2176_v15, %v2144_v14  ;;  %v2206_v22 = vld [vmem:[%s7736_s4 + $0x660] sm:$0xff]  ;;  %v4961_v24 = vpack.c.bf16 %v2239_v17, %v2207_v16  ;;  %v2244_v14 = vld [vmem:[%s7736_s4 + $0x790] sm:$0xff]  ;;  %v2023_v15 = vld [vmem:[%s7736_s4 + $0xa8] sm:$0xff] }
 0x3d3   :  { %4926 = vmatprep.subr.bf16.mxu1 %v4925_v25  ;;  %4942 = vmatprep.subr.bf16.mxu0 %v4941_v26  ;;  %v4977_v25 = vpack.c.bf16 %v2241_v19, %v2209_v18  ;;  %v2208_v26 = vld [vmem:[%s7736_s4 + $0x670] sm:$0xff]  ;;  %v4963_v33 = vpack.c.bf16 %v2238_v23, %v2206_v22  ;;  %v2055_v16 = vld [vmem:[%s7736_s4 + $0x1a8] sm:$0xff]  ;;  %v2025_v17 = vld [vmem:[%s7736_s4 + $0xb8] sm:$0xff] }
 0x3d4   :  { %2636 = vmatprep.mubr.f32.mxu1 %v5237_v46  ;;  %2713 = vmatprep.mubr.f32.mxu0 %v5237_v46  ;;  %v2057_v18 = vld [vmem:[%s7736_s4 + $0x1b8] sm:$0xff]  ;;  %v5013_v22 = vpack.c.bf16 %v2055_v16, %v2023_v15  ;;  %v2123_v15 = vld [vmem:[%s7736_s4 + $0x3c8] sm:$0xff] }
 0x3d5   :  { %v5029_v23 = vpack.c.bf16 %v2057_v18, %v2025_v17  ;;  %v2093_v16 = vld [vmem:[%s7736_s4 + $0x2d8] sm:$0xff] }
 0x3d6   :  { %4928 = vmatpush1.bf16.msra.mxu1 %v4927_v34  ;;  %4944 = vmatpush1.bf16.msra.mxu0 %v4943_v35  ;;  %v4979_v34 = vpack.c.bf16 %v2240_v27, %v2208_v26  ;;  %v2018_v35 = vld [vmem:[%s7736_s4 + $0x80] sm:$0xff]  ;;  %v2056_v26 = vld [vmem:[%s7736_s4 + $0x1b0] sm:$0xff]  ;;  %v2087_v27 = vld [vmem:[%s7736_s4 + $0x2a8] sm:$0xff] }
 0x3d7   :  { %4930 = vmatprep.subr.bf16.mxu1 %v4929_v38  ;;  %4946 = vmatprep.subr.bf16.mxu0 %v4945_v39  ;;  %v2050_v38 = vld [vmem:[%s7736_s4 + $0x180] sm:$0xff]  ;;  %v2020_v39 = vld [vmem:[%s7736_s4 + $0x90] sm:$0xff]  ;;  %v2125_v17 = vld [vmem:[%s7736_s4 + $0x3d8] sm:$0xff] }
 0x3d8   :  { %v4983_v47 = vpack.c.bf16 %v2050_v38, %v2018_v35  ;;  %v2118_v35 = vld [vmem:[%s7736_s4 + $0x3a0] sm:$0xff]  ;;  %v2151_v38 = vld [vmem:[%s7736_s4 + $0x4a8] sm:$0xff] }
 0x3da   :  { %4932 = vmatpush1.bf16.msra.mxu1 %v4931_v48  ;;  %4948 = vmatpush1.bf16.msra.mxu0 %v4947_v49  ;;  %v4999_v48 = vpack.c.bf16 %v2052_v40, %v2020_v39  ;;  %v2082_v49 = vld [vmem:[%s7736_s4 + $0x280] sm:$0xff]  ;;  %v5017_v39 = vpack.c.bf16 %v2119_v28, %v2087_v27  ;;  %v5033_v40 = vpack.c.bf16 %v2121_v31, %v2089_v30  ;;  %v2187_v27 = vld [vmem:[%s7736_s4 + $0x5c8] sm:$0xff]  ;;  %v2157_v28 = vld [vmem:[%s7736_s4 + $0x4d8] sm:$0xff] }
 0x3db   :  { %4950 = vmatprep.subr.bf16.mxu1 %v4949_v51  ;;  %4966 = vmatprep.subr.bf16.mxu0 %v4965_v52  ;;  %v2084_v51 = vld [vmem:[%s7736_s4 + $0x290] sm:$0xff]  ;;  %v4987_v59 = vpack.c.bf16 %v2114_v50, %v2082_v49  ;;  %v2182_v49 = vld [vmem:[%s7736_s4 + $0x5a0] sm:$0xff]  ;;  %v5021_v50 = vpack.c.bf16 %v2183_v41, %v2151_v38  ;;  %v2189_v30 = vld [vmem:[%s7736_s4 + $0x5d8] sm:$0xff] }
 0x3dc   :  { %v2116_v52 = vld [vmem:[%s7736_s4 + $0x390] sm:$0xff]  ;;  %v2221_v41 = vld [vmem:[%s7736_s4 + $0x6d8] sm:$0xff] }
 0x3dd   :  { %3656 = vmatmul.mubr.msk.f32.vlgmr.msra.gmra.mrb[42].mxu1 %vm1819_vm1, %v6998_v29  ;;  %3658 = vmatmul.mubr.msk.f32.vlgmr.msra.gmra.mrb[42].mxu0 %vm1819_vm1, %v6998_v29  ;;  %v2188_v38 = vld [vmem:[%s7736_s4 + $0x5d0] sm:$0xff] }
 0x3de   :  { %4952 = vmatpush1.bf16.msra.mxu1 %v4951_v60  ;;  %4968 = vmatpush1.bf16.msra.mxu0 %v4967_v61  ;;  %v5003_v60 = vpack.c.bf16 %v2116_v52, %v2084_v51  ;;  %v2146_v61 = vld [vmem:[%s7736_s4 + $0x480] sm:$0xff]  ;;  %v5037_v51 = vpack.c.bf16 %v2185_v43, %v2153_v42  ;;  %v2152_v52 = vld [vmem:[%s7736_s4 + $0x4b0] sm:$0xff]  ;;  %v2253_v42 = vld [vmem:[%s7736_s4 + $0x7d8] sm:$0xff] }
 0x3df   :  { %2642 = vmatprep.mubr.f32.mxu1 %v5237_v46  ;;  %2719 = vmatprep.mubr.f32.mxu0 %v5237_v46  ;;  %v4991_v7 = vpack.c.bf16 %v2178_v62, %v2146_v61  ;;  %v2246_v61 = vld [vmem:[%s7736_s4 + $0x7a0] sm:$0xff] }
 0x3e0   :  { %4954 = vmatprep.subr.bf16.mxu1 %v4953_v3  ;;  %4970 = vmatprep.subr.bf16.mxu0 %v4969_v4  ;;  %v2211_v3 = vld [vmem:[%s7736_s4 + $0x688] sm:$0xff] }
 0x3e1   :  { %3657 = vmatmul.mubr.msk.f32.gmra.mrb[44].mxu1 %vm1819_vm1, %v7030_v44  ;;  %3659 = vmatmul.mubr.msk.f32.gmra.mrb[44].mxu0 %vm1819_vm1, %v7030_v44  ;;  %v2243_v4 = vld [vmem:[%s7736_s4 + $0x788] sm:$0xff] }
 0x3e2   :  { %4956 = vmatpush1.bf16.msra.mxu1 %v4955_v8  ;;  %4972 = vmatpush1.bf16.msra.mxu0 %v4971_v9  ;;  %v5007_v8 = vpack.c.bf16 %v2180_v2, %v2148_v1  ;;  %v2210_v9 = vld [vmem:[%s7736_s4 + $0x680] sm:$0xff]  ;;  %v4993_v11 = vpack.c.bf16 %v2243_v4, %v2211_v3  ;;  %v2248_v1 = vld [vmem:[%s7736_s4 + $0x7b0] sm:$0xff]  ;;  %v2027_v2 = vld [vmem:[%s7736_s4 + $0xc8] sm:$0xff] }
 0x3e3   :  { %4958 = vmatprep.subr.bf16.mxu1 %v4957_v12  ;;  %4974 = vmatprep.subr.bf16.mxu0 %v4973_v13  ;;  %v5009_v12 = vpack.c.bf16 %v2245_v6, %v2213_v5  ;;  %v2212_v13 = vld [vmem:[%s7736_s4 + $0x690] sm:$0xff]  ;;  %v4995_v19 = vpack.c.bf16 %v2242_v10, %v2210_v9  ;;  %v2059_v3 = vld [vmem:[%s7736_s4 + $0x1c8] sm:$0xff]  ;;  %v2029_v4 = vld [vmem:[%s7736_s4 + $0xd8] sm:$0xff] }
 0x3e4   :  { %2790 = vmatprep.mubr.f32.mxu1 %v5237_v46  ;;  %2867 = vmatprep.mubr.f32.mxu0 %v5237_v46  ;;  %v2061_v5 = vld [vmem:[%s7736_s4 + $0x1d8] sm:$0xff]  ;;  %v5045_v9 = vpack.c.bf16 %v2059_v3, %v2027_v2  ;;  %v2127_v2 = vld [vmem:[%s7736_s4 + $0x3e8] sm:$0xff] }
 0x3e5   :  { %v5061_v10 = vpack.c.bf16 %v2061_v5, %v2029_v4  ;;  %v2097_v3 = vld [vmem:[%s7736_s4 + $0x2f8] sm:$0xff] }
 0x3e6   :  { %4960 = vmatpush1.bf16.msra.mxu1 %v4959_v20  ;;  %4976 = vmatpush1.bf16.msra.mxu0 %v4975_v21  ;;  %v5011_v20 = vpack.c.bf16 %v2244_v14, %v2212_v13  ;;  %v2022_v21 = vld [vmem:[%s7736_s4 + $0xa0] sm:$0xff]  ;;  %v2060_v13 = vld [vmem:[%s7736_s4 + $0x1d0] sm:$0xff]  ;;  %v2091_v14 = vld [vmem:[%s7736_s4 + $0x2c8] sm:$0xff] }
 0x3e7   :  { %4962 = vmatprep.subr.bf16.mxu1 %v4961_v24  ;;  %4978 = vmatprep.subr.bf16.mxu0 %v4977_v25  ;;  %v2054_v24 = vld [vmem:[%s7736_s4 + $0x1a0] sm:$0xff]  ;;  %v2024_v25 = vld [vmem:[%s7736_s4 + $0xb0] sm:$0xff]  ;;  %v2129_v4 = vld [vmem:[%s7736_s4 + $0x3f8] sm:$0xff] }
 0x3e8   :  { %v5015_v32 = vpack.c.bf16 %v2054_v24, %v2022_v21  ;;  %v2122_v21 = vld [vmem:[%s7736_s4 + $0x3c0] sm:$0xff]  ;;  %v2155_v24 = vld [vmem:[%s7736_s4 + $0x4c8] sm:$0xff] }
 0x3ea   :  { %4964 = vmatpush1.bf16.msra.mxu1 %v4963_v33  ;;  %4980 = vmatpush1.bf16.msra.mxu0 %v4979_v34  ;;  %v5031_v33 = vpack.c.bf16 %v2056_v26, %v2024_v25  ;;  %v2086_v34 = vld [vmem:[%s7736_s4 + $0x2a0] sm:$0xff]  ;;  %v5049_v25 = vpack.c.bf16 %v2123_v15, %v2091_v14  ;;  %v5065_v26 = vpack.c.bf16 %v2125_v17, %v2093_v16  ;;  %v2191_v14 = vld [vmem:[%s7736_s4 + $0x5e8] sm:$0xff]  ;;  %v2161_v15 = vld [vmem:[%s7736_s4 + $0x4f8] sm:$0xff] }
 0x3eb   :  { %4982 = vmatprep.subr.bf16.mxu1 %v4981_v36  ;;  %4998 = vmatprep.subr.bf16.mxu0 %v4997_v37  ;;  %v2088_v36 = vld [vmem:[%s7736_s4 + $0x2b0] sm:$0xff]  ;;  %v5019_v45 = vpack.c.bf16 %v2118_v35, %v2086_v34  ;;  %v2186_v34 = vld [vmem:[%s7736_s4 + $0x5c0] sm:$0xff]  ;;  %v5053_v35 = vpack.c.bf16 %v2187_v27, %v2155_v24  ;;  %v2193_v16 = vld [vmem:[%s7736_s4 + $0x5f8] sm:$0xff] }
 0x3ec   :  { %v2120_v37 = vld [vmem:[%s7736_s4 + $0x3b0] sm:$0xff]  ;;  %v2225_v27 = vld [vmem:[%s7736_s4 + $0x6f8] sm:$0xff] }
 0x3ed   :  { %3660 = vmatmul.mubr.msk.f32.vlgmr.msra.gmra.mrb[46].mxu1 %vm1819_vm1, %v6998_v29  ;;  %3662 = vmatmul.mubr.msk.f32.vlgmr.msra.gmra.mrb[46].mxu0 %vm1819_vm1, %v6998_v29  ;;  %v2192_v24 = vld [vmem:[%s7736_s4 + $0x5f0] sm:$0xff] }
 0x3ee   :  { %4984 = vmatpush1.bf16.msra.mxu1 %v4983_v47  ;;  %5000 = vmatpush1.bf16.msra.mxu0 %v4999_v48  ;;  %v5035_v47 = vpack.c.bf16 %v2120_v37, %v2088_v36  ;;  %v2150_v48 = vld [vmem:[%s7736_s4 + $0x4a0] sm:$0xff]  ;;  %v5069_v36 = vpack.c.bf16 %v2189_v30, %v2157_v28  ;;  %v2156_v37 = vld [vmem:[%s7736_s4 + $0x4d0] sm:$0xff]  ;;  %v2257_v28 = vld [vmem:[%s7736_s4 + $0x7f8] sm:$0xff] }
 0x3ef   :  { %2796 = vmatprep.mubr.f32.mxu1 %v5237_v46  ;;  %2873 = vmatprep.mubr.f32.mxu0 %v5237_v46  ;;  %v5023_v58 = vpack.c.bf16 %v2182_v49, %v2150_v48  ;;  %v2250_v48 = vld [vmem:[%s7736_s4 + $0x7c0] sm:$0xff] }
 0x3f0   :  { %4986 = vmatprep.subr.bf16.mxu1 %v4985_v54  ;;  %5002 = vmatprep.subr.bf16.mxu0 %v5001_v55  ;;  %v2215_v54 = vld [vmem:[%s7736_s4 + $0x6a8] sm:$0xff] }
 0x3f1   :  { %3661 = vmatmul.mubr.msk.f32.gmra.mrb[48].mxu1 %vm1819_vm1, %v7030_v44  ;;  %3663 = vmatmul.mubr.msk.f32.gmra.mrb[48].mxu0 %vm1819_vm1, %v7030_v44  ;;  %v2247_v55 = vld [vmem:[%s7736_s4 + $0x7a8] sm:$0xff] }
 0x3f2   :  { %4988 = vmatpush1.bf16.msra.mxu1 %v4987_v59  ;;  %5004 = vmatpush1.bf16.msra.mxu0 %v5003_v60  ;;  %v5039_v59 = vpack.c.bf16 %v2184_v53, %v2152_v52  ;;  %v2214_v60 = vld [vmem:[%s7736_s4 + $0x6a0] sm:$0xff]  ;;  %v5025_v62 = vpack.c.bf16 %v2247_v55, %v2215_v54  ;;  %v2252_v52 = vld [vmem:[%s7736_s4 + $0x7d0] sm:$0xff]  ;;  %v2031_v53 = vld [vmem:[%s7736_s4 + $0xe8] sm:$0xff] }
 0x3f3   :  { %4990 = vmatprep.subr.bf16.mxu1 %v4989_v63  ;;  %5006 = vmatprep.subr.bf16.mxu0 %v5005_v0  ;;  %v5041_v63 = vpack.c.bf16 %v2249_v57, %v2217_v56  ;;  %v2216_v0 = vld [vmem:[%s7736_s4 + $0x6b0] sm:$0xff]  ;;  %v5027_v6 = vpack.c.bf16 %v2246_v61, %v2214_v60  ;;  %v2063_v54 = vld [vmem:[%s7736_s4 + $0x1e8] sm:$0xff]  ;;  %v2033_v55 = vld [vmem:[%s7736_s4 + $0xf8] sm:$0xff] }
 0x3f4   :  { %2944 = vmatprep.mubr.f32.mxu1 %v5237_v46  ;;  %3021 = vmatprep.mubr.f32.mxu0 %v5237_v46  ;;  %v2065_v56 = vld [vmem:[%s7736_s4 + $0x1f8] sm:$0xff]  ;;  %v5077_v60 = vpack.c.bf16 %v2063_v54, %v2031_v53  ;;  %v5126_v54 = vld [vmem:[#allocation2 + $0x100] sm:$0xff] }
 0x3f5   :  { %v5093_v61 = vpack.c.bf16 %v2065_v56, %v2033_v55  ;;  %v5127_v55 = vld [vmem:[#allocation2 + $0x110] sm:$0xff] }
 0x3f6   :  { %4992 = vmatpush1.bf16.msra.mxu1 %v4991_v7  ;;  %5008 = vmatpush1.bf16.msra.mxu0 %v5007_v8  ;;  %v5043_v7 = vpack.c.bf16 %v2248_v1, %v2216_v0  ;;  %v2026_v8 = vld [vmem:[%s7736_s4 + $0xc0] sm:$0xff]  ;;  %v2064_v0 = vld [vmem:[%s7736_s4 + $0x1f0] sm:$0xff]  ;;  %v2095_v1 = vld [vmem:[%s7736_s4 + $0x2e8] sm:$0xff] }
 0x3f7   :  { %4994 = vmatprep.subr.bf16.mxu1 %v4993_v11  ;;  %5010 = vmatprep.subr.bf16.mxu0 %v5009_v12  ;;  %v2058_v11 = vld [vmem:[%s7736_s4 + $0x1c0] sm:$0xff]  ;;  %v2028_v12 = vld [vmem:[%s7736_s4 + $0xd0] sm:$0xff] }
 0x3f8   :  { %v5047_v18 = vpack.c.bf16 %v2058_v11, %v2026_v8  ;;  %v2126_v8 = vld [vmem:[%s7736_s4 + $0x3e0] sm:$0xff]  ;;  %v2159_v11 = vld [vmem:[%s7736_s4 + $0x4e8] sm:$0xff] }
 0x3fa   :  { %4996 = vmatpush1.bf16.msra.mxu1 %v4995_v19  ;;  %5012 = vmatpush1.bf16.msra.mxu0 %v5011_v20  ;;  %v5063_v19 = vpack.c.bf16 %v2060_v13, %v2028_v12  ;;  %v2090_v20 = vld [vmem:[%s7736_s4 + $0x2c0] sm:$0xff]  ;;  %v5081_v12 = vpack.c.bf16 %v2127_v2, %v2095_v1  ;;  %v5097_v13 = vpack.c.bf16 %v2129_v4, %v2097_v3  ;;  %v5131_v3 = vld [vmem:[#allocation2 + $0x30] sm:$0xff] }
 0x3fb   :  { %5014 = vmatprep.subr.bf16.mxu1 %v5013_v22  ;;  %5030 = vmatprep.subr.bf16.mxu0 %v5029_v23  ;;  %v2092_v22 = vld [vmem:[%s7736_s4 + $0x2d0] sm:$0xff]  ;;  %v5051_v31 = vpack.c.bf16 %v2122_v21, %v2090_v20  ;;  %v2190_v20 = vld [vmem:[%s7736_s4 + $0x5e0] sm:$0xff]  ;;  %v5085_v21 = vpack.c.bf16 %v2191_v14, %v2159_v11 }
 0x3fc   :  { %v2124_v23 = vld [vmem:[%s7736_s4 + $0x3d0] sm:$0xff]  ;;  %v5130_v1 = vld [vmem:[#allocation2 + $0x20] sm:$0xff] }
 0x3fd   :  { %3664 = vmatmul.mubr.msk.f32.vlgmr.msra.gmra.mrb[50].mxu1 %vm1819_vm1, %v6998_v29  ;;  %3666 = vmatmul.mubr.msk.f32.vlgmr.msra.gmra.mrb[50].mxu0 %vm1819_vm1, %v6998_v29 }
 0x3fe   :  { %5016 = vmatpush1.bf16.msra.mxu1 %v5015_v32  ;;  %5032 = vmatpush1.bf16.msra.mxu0 %v5031_v33  ;;  %v5067_v32 = vpack.c.bf16 %v2124_v23, %v2092_v22  ;;  %v2154_v33 = vld [vmem:[%s7736_s4 + $0x4c0] sm:$0xff]  ;;  %v5101_v22 = vpack.c.bf16 %v2193_v16, %v2161_v15  ;;  %v2160_v23 = vld [vmem:[%s7736_s4 + $0x4f0] sm:$0xff] }
 0x3ff   :  { %2950 = vmatprep.mubr.f32.mxu1 %v5237_v46  ;;  %3027 = vmatprep.mubr.f32.mxu0 %v5237_v46  ;;  %v5055_v43 = vpack.c.bf16 %v2186_v34, %v2154_v33  ;;  %v5105_v34 = vpack.c.bf16 %v2257_v28, %v2225_v27  ;;  %v5135_v15 = vld [vmem:[#allocation2 + $0x130] sm:$0xff] }
 0x400   :  { %5018 = vmatprep.subr.bf16.mxu1 %v5017_v39  ;;  %5034 = vmatprep.subr.bf16.mxu0 %v5033_v40  ;;  %v2219_v39 = vld [vmem:[%s7736_s4 + $0x6c8] sm:$0xff]  ;;  %v5139_v27 = vld [vmem:[#allocation2 + $0x50] sm:$0xff] }
 0x401   :  { %3665 = vmatmul.mubr.msk.f32.gmra.mrb[52].mxu1 %vm1819_vm1, %v7030_v44  ;;  %3667 = vmatmul.mubr.msk.f32.gmra.mrb[52].mxu0 %vm1819_vm1, %v7030_v44  ;;  %v2251_v40 = vld [vmem:[%s7736_s4 + $0x7c8] sm:$0xff] }
 0x402   :  { %5020 = vmatpush1.bf16.msra.mxu1 %v5019_v45  ;;  %5036 = vmatpush1.bf16.msra.mxu0 %v5035_v47  ;;  %v5071_v45 = vpack.c.bf16 %v2188_v38, %v2156_v37  ;;  %v2218_v47 = vld [vmem:[%s7736_s4 + $0x6c0] sm:$0xff]  ;;  %v5057_v49 = vpack.c.bf16 %v2251_v40, %v2219_v39  ;;  %v2256_v37 = vld [vmem:[%s7736_s4 + $0x7f0] sm:$0xff] }
 0x403   :  { %5022 = vmatprep.subr.bf16.mxu1 %v5021_v50  ;;  %5038 = vmatprep.subr.bf16.mxu0 %v5037_v51  ;;  %v5073_v50 = vpack.c.bf16 %v2253_v42, %v2221_v41  ;;  %v2220_v51 = vld [vmem:[%s7736_s4 + $0x6d0] sm:$0xff]  ;;  %v5059_v57 = vpack.c.bf16 %v2250_v48, %v2218_v47  ;;  %v5122_v42 = vld [vmem:[#allocation2] sm:$0xff] }
 0x404   :  { %3098 = vmatprep.mubr.f32.mxu1 %v5237_v46  ;;  %3175 = vmatprep.mubr.f32.mxu0 %v5237_v46 }
 0x406   :  { %5024 = vmatpush1.bf16.msra.mxu1 %v5023_v58  ;;  %5040 = vmatpush1.bf16.msra.mxu0 %v5039_v59  ;;  %v5075_v58 = vpack.c.bf16 %v2252_v52, %v2220_v51  ;;  %v2030_v59 = vld [vmem:[%s7736_s4 + $0xe0] sm:$0xff]  ;;  %v5125_v51 = vld [vmem:[#allocation2 + $0x18] sm:$0xff] }
 0x407   :  { %5026 = vmatprep.subr.bf16.mxu1 %v5025_v62  ;;  %5042 = vmatprep.subr.bf16.mxu0 %v5041_v63  ;;  %v2062_v62 = vld [vmem:[%s7736_s4 + $0x1e0] sm:$0xff]  ;;  %v2032_v63 = vld [vmem:[%s7736_s4 + $0xf0] sm:$0xff] }
 0x408   :  { %v5079_v5 = vpack.c.bf16 %v2062_v62, %v2030_v59  ;;  %v5128_v59 = vld [vmem:[#allocation2 + $0x108] sm:$0xff] }
 0x40a   :  { %5028 = vmatpush1.bf16.msra.mxu1 %v5027_v6  ;;  %5044 = vmatpush1.bf16.msra.mxu0 %v5043_v7  ;;  %v5095_v6 = vpack.c.bf16 %v2064_v0, %v2032_v63  ;;  %v2094_v7 = vld [vmem:[%s7736_s4 + $0x2e0] sm:$0xff] }
 0x40b   :  { %5046 = vmatprep.subr.bf16.mxu1 %v5045_v9  ;;  %5062 = vmatprep.subr.bf16.mxu0 %v5061_v10  ;;  %v2096_v9 = vld [vmem:[%s7736_s4 + $0x2f0] sm:$0xff]  ;;  %v5083_v17 = vpack.c.bf16 %v2126_v8, %v2094_v7  ;;  %v5132_v7 = vld [vmem:[#allocation2 + $0x28] sm:$0xff] }
 0x40c   :  { %v2128_v10 = vld [vmem:[%s7736_s4 + $0x3f0] sm:$0xff] }
 0x40d   :  { %3668 = vmatmul.mubr.msk.f32.vlgmr.msra.gmra.mrb[54].mxu1 %vm1819_vm1, %v6998_v29  ;;  %3670 = vmatmul.mubr.msk.f32.vlgmr.msra.gmra.mrb[54].mxu0 %vm1819_vm1, %v6998_v29 }
 0x40e   :  { %5048 = vmatpush1.bf16.msra.mxu1 %v5047_v18  ;;  %5064 = vmatpush1.bf16.msra.mxu0 %v5063_v19  ;;  %v5099_v18 = vpack.c.bf16 %v2128_v10, %v2096_v9  ;;  %v2158_v19 = vld [vmem:[%s7736_s4 + $0x4e0] sm:$0xff]  ;;  %v5133_v9 = vld [vmem:[#allocation2 + $0x38] sm:$0xff] }
 0x40f   :  { %3104 = vmatprep.mubr.f32.mxu1 %v5237_v46  ;;  %3181 = vmatprep.mubr.f32.mxu0 %v5237_v46  ;;  %v5087_v30 = vpack.c.bf16 %v2190_v20, %v2158_v19  ;;  %v5136_v19 = vld [vmem:[#allocation2 + $0x128] sm:$0xff] }
 0x410   :  { %5050 = vmatprep.subr.bf16.mxu1 %v5049_v25  ;;  %5066 = vmatprep.subr.bf16.mxu0 %v5065_v26  ;;  %v2223_v25 = vld [vmem:[%s7736_s4 + $0x6e8] sm:$0xff] }
 0x411   :  { %3669 = vmatmul.mubr.msk.f32.gmra.mrb[56].mxu1 %vm1819_vm1, %v7030_v44  ;;  %3671 = vmatmul.mubr.msk.f32.gmra.mrb[56].mxu0 %vm1819_vm1, %v7030_v44  ;;  %v2255_v26 = vld [vmem:[%s7736_s4 + $0x7e8] sm:$0xff] }
 0x412   :  { %5052 = vmatpush1.bf16.msra.mxu1 %v5051_v31  ;;  %5068 = vmatpush1.bf16.msra.mxu0 %v5067_v32  ;;  %v5103_v31 = vpack.c.bf16 %v2192_v24, %v2160_v23  ;;  %v2222_v32 = vld [vmem:[%s7736_s4 + $0x6e0] sm:$0xff]  ;;  %v5089_v33 = vpack.c.bf16 %v2255_v26, %v2223_v25 }
 0x413   :  { %5054 = vmatprep.subr.bf16.mxu1 %v5053_v35  ;;  %5070 = vmatprep.subr.bf16.mxu0 %v5069_v36  ;;  %v2254_v35 = vld [vmem:[%s7736_s4 + $0x7e0] sm:$0xff]  ;;  %v2224_v36 = vld [vmem:[%s7736_s4 + $0x6f0] sm:$0xff]  ;;  %s5238_s4 = smov [#allocation5]  }
 0x414   :  { %3252 = vmatprep.mubr.f32.mxu1 %v5237_v46  ;;  %3329 = vmatprep.mubr.f32.mxu0 %v5237_v46  ;;  %v5091_v38 = vpack.c.bf16 %v2254_v35, %v2222_v32  ;;  %v5107_v39 = vpack.c.bf16 %v2256_v37, %v2224_v36  ;;  %v5138_v25 = vld [vmem:[#allocation2 + $0x40] sm:$0xff]  ;;  %v5140_v32 = vld [vmem:[#allocation2 + $0x48] sm:$0xff]  ;;  %s3629_s0 = sshll.u32 %s5238_s4, 4  ;;  %s3630_s0 = int_to_ptr.vmem [resolvable:$true] %s3629_s0 }
 0x415   :  { %s5208_s2 = scalar_lea.vmem %s3630_s0, 8192  ;;  %p5213_p9 = scmp.lt.s32.totalorder %s3630_s0, %s3630_s0 }
 0x416   :  { %5056 = vmatpush1.bf16.msra.mxu1 %v5055_v43  ;;  %5072 = vmatpush1.bf16.msra.mxu0 %v5071_v45  ;;  %v5123_v45 = vld [vmem:[#allocation2 + $0x10] sm:$0xff]  ;;  %p5209_p8 = scmp.ne.s32.totalorder %s3630_s0, %s5208_s2  ;;  %p5214_p10 = scmp.lt.s32.totalorder %s5208_s2, %s5208_s2 }
 0x417   :  { %5058 = vmatprep.subr.bf16.mxu1 %v5057_v49  ;;  %5074 = vmatprep.subr.bf16.mxu0 %v5073_v50  ;;  %v5124_v50 = vld [vmem:[#allocation2 + $0x8] sm:$0xff] }
 0x418   :  { %p5215_p11 = por %p5214_p10, %p5213_p9 }
 0x41a   :  { %5060 = vmatpush1.bf16.msra.mxu1 %v5059_v57  ;;  %5076 = vmatpush1.bf16.msra.mxu0 %v5075_v58  ;;  %p5216_p12 = pnand %p5215_p11, %p5209_p8 }
 0x41b   :  { %5078 = vmatprep.subr.bf16.mxu1 %v5077_v60  ;;  %5094 = vmatprep.subr.bf16.mxu0 %v5093_v61  ;;  %v5129_v61 = vld [vmem:[#allocation2 + $0x118] sm:$0xff] }
 0x41d   :  { %3672 = vmatmul.mubr.msk.f32.vlgmr.msra.gmra.mrb[58].mxu1 %vm1819_vm1, %v6998_v29  ;;  %3674 = vmatmul.mubr.msk.f32.vlgmr.msra.gmra.mrb[58].mxu0 %vm1819_vm1, %v6998_v29 }
 0x41e   :  { %5080 = vmatpush1.bf16.msra.mxu1 %v5079_v5  ;;  %5096 = vmatpush1.bf16.msra.mxu0 %v5095_v6 }
 0x41f   :  { %3258 = vmatprep.mubr.f32.mxu1 %v5237_v46  ;;  %3335 = vmatprep.mubr.f32.mxu0 %v5237_v46 }
 0x420   :  { %5082 = vmatprep.subr.bf16.mxu1 %v5081_v12  ;;  %5098 = vmatprep.subr.bf16.mxu0 %v5097_v13  ;;  %v5134_v13 = vld [vmem:[#allocation2 + $0x120] sm:$0xff] }
 0x421   :  { %3673 = vmatmul.mubr.msk.f32.gmra.mrb[60].mxu1 %vm1819_vm1, %v7030_v44  ;;  %3675 = vmatmul.mubr.msk.f32.gmra.mrb[60].mxu0 %vm1819_vm1, %v7030_v44 }
 0x422   :  { %5084 = vmatpush1.bf16.msra.mxu1 %v5083_v17  ;;  %5100 = vmatpush1.bf16.msra.mxu0 %v5099_v18 }
 0x423   :  { %5086 = vmatprep.subr.bf16.mxu1 %v5085_v21  ;;  %5102 = vmatprep.subr.bf16.mxu0 %v5101_v22  ;;  %v5137_v21 = vld [vmem:[#allocation2 + $0x138] sm:$0xff] }
 0x424   :  { %3406 = vmatprep.mubr.f32.mxu1 %v5237_v46  ;;  %3483 = vmatprep.mubr.f32.mxu0 %v5237_v46 }
 0x426   :  { %5088 = vmatpush1.bf16.msra.mxu1 %v5087_v30  ;;  %5104 = vmatpush1.bf16.msra.mxu0 %v5103_v31 }
 0x427   :  { %5090 = vmatprep.subr.bf16.mxu1 %v5089_v33  ;;  %5106 = vmatprep.subr.bf16.mxu0 %v5105_v34  ;;  %v5141_v34 = vld [vmem:[#allocation2 + $0x58] sm:$0xff] }
 0x42a   :  { %5092 = vmatpush1.bf16.msra.mxu1 %v5091_v38  ;;  %5108 = vmatpush1.bf16.msra.mxu0 %v5107_v39  ;;  %v5142_v38 = vld [vmem:[#allocation2 + $0x140] sm:$0xff] }
 0x42d   :  { %3676 = vmatmul.mubr.msk.f32.vlgmr.msra.gmra.mrb[62].mxu1 %vm1819_vm1, %v6998_v29  ;;  %3678 = vmatmul.mubr.msk.f32.vlgmr.msra.gmra.mrb[62].mxu0 %vm1819_vm1, %v6998_v29 }
 0x42e   :  { %3412 = vmatprep.mubr.f32.mxu1 %v5237_v46  ;;  %3489 = vmatprep.mubr.f32.mxu0 %v5237_v46 }
 0x431   :  { %3677 = vmatmul.mubr.msk.f32.gmra.mrb[64].mxu1 %vm1819_vm1, %v7030_v44  ;;  %3679 = vmatmul.mubr.msk.f32.gmra.mrb[64].mxu0 %vm1819_vm1, %v7030_v44 }
 0x490   :  { %v2330_v40 = vpop.f32.mrb[34].mxu1  ;;  %v2407_v41 = vpop.f32.mrb[34].mxu0 }
 0x491   :  { %v3496_v43 = vmul.f32 %v5122_v42, %v2330_v40  ;;  %v3498_v47 = vmul.f32 %v5123_v45, %v2407_v41  ;;  %v2332_v48 = vpop.f32.mrb[35].mxu1  ;;  %v2409_v49 = vpop.f32.mrb[35].mxu0  ;;  %v5143_v40 = vld [vmem:[#allocation2 + $0x150] sm:$0xff]  ;;  %v5144_v45 = vld [vmem:[#allocation2 + $0x148] sm:$0xff] }
 0x492   :  { %v3497_v29 = vmul.f32 %v5124_v50, %v2332_v48  ;;  %v3499_v52 = vmul.f32 %v5125_v51, %v2409_v49  ;;  %v5145_v48 = vld [vmem:[#allocation2 + $0x158] sm:$0xff]  ;;  %v5146_v51 = vld [vmem:[#allocation2 + $0x60] sm:$0xff] }
 0x493   :  { %3560 = vst [vmem:[#allocation5] sm:$0xff] %v3496_v43  ;;  %3562 = vst [vmem:[#allocation5 + $0x10] sm:$0xff] %v3498_v47 }
 0x494   :  { %3561 = vst [vmem:[#allocation5 + $0x8] sm:$0xff] %v3497_v29  ;;  %3563 = vst [vmem:[#allocation5 + $0x18] sm:$0xff] %v3499_v52  ;;  %v2336_v46 = vpop.f32.mrb[36].mxu1  ;;  %v2413_v53 = vpop.f32.mrb[36].mxu0 }
 0x495   :  { %v3528_v44 = vmul.f32 %v5126_v54, %v2336_v46  ;;  %v3530_v56 = vmul.f32 %v5127_v55, %v2413_v53  ;;  %v2338_v57 = vpop.f32.mrb[37].mxu1  ;;  %v2415_v58 = vpop.f32.mrb[37].mxu0  ;;  %v5147_v46 = vld [vmem:[#allocation2 + $0x70] sm:$0xff]  ;;  %v5148_v55 = vld [vmem:[#allocation2 + $0x68] sm:$0xff] }
 0x496   :  { %v3529_v60 = vmul.f32 %v5128_v59, %v2338_v57  ;;  %v3531_v62 = vmul.f32 %v5129_v61, %v2415_v58  ;;  %v5149_v57 = vld [vmem:[#allocation2 + $0x78] sm:$0xff]  ;;  %v5150_v61 = vld [vmem:[#allocation2 + $0x160] sm:$0xff] }
 0x497   :  { %3592 = vst [vmem:[#allocation5 + $0x100] sm:$0xff] %v3528_v44  ;;  %3594 = vst [vmem:[#allocation5 + $0x110] sm:$0xff] %v3530_v56 }
 0x498   :  { %3593 = vst [vmem:[#allocation5 + $0x108] sm:$0xff] %v3529_v60  ;;  %3595 = vst [vmem:[#allocation5 + $0x118] sm:$0xff] %v3531_v62 }
 0x4a0   :  { %v2484_v63 = vpop.f32.mrb[38].mxu1  ;;  %v2561_v0 = vpop.f32.mrb[38].mxu0 }
 0x4a1   :  { %v3500_v2 = vmul.f32 %v5130_v1, %v2484_v63  ;;  %v3502_v4 = vmul.f32 %v5131_v3, %v2561_v0  ;;  %v2486_v5 = vpop.f32.mrb[39].mxu1  ;;  %v2563_v6 = vpop.f32.mrb[39].mxu0  ;;  %v5151_v63 = vld [vmem:[#allocation2 + $0x170] sm:$0xff]  ;;  %v5152_v3 = vld [vmem:[#allocation2 + $0x168] sm:$0xff] }
 0x4a2   :  { %v3501_v8 = vmul.f32 %v5132_v7, %v2486_v5  ;;  %v3503_v10 = vmul.f32 %v5133_v9, %v2563_v6  ;;  %v5153_v5 = vld [vmem:[#allocation2 + $0x178] sm:$0xff]  ;;  %v5154_v9 = vld [vmem:[#allocation2 + $0x80] sm:$0xff] }
 0x4a3   :  { %3564 = vst [vmem:[#allocation5 + $0x20] sm:$0xff] %v3500_v2  ;;  %3566 = vst [vmem:[#allocation5 + $0x30] sm:$0xff] %v3502_v4 }
 0x4a4   :  { %3565 = vst [vmem:[#allocation5 + $0x28] sm:$0xff] %v3501_v8  ;;  %3567 = vst [vmem:[#allocation5 + $0x38] sm:$0xff] %v3503_v10  ;;  %v2490_v11 = vpop.f32.mrb[40].mxu1  ;;  %v2567_v12 = vpop.f32.mrb[40].mxu0 }
 0x4a5   :  { %v3532_v14 = vmul.f32 %v5134_v13, %v2490_v11  ;;  %v3534_v16 = vmul.f32 %v5135_v15, %v2567_v12  ;;  %v2492_v17 = vpop.f32.mrb[41].mxu1  ;;  %v2569_v18 = vpop.f32.mrb[41].mxu0  ;;  %v5155_v11 = vld [vmem:[#allocation2 + $0x90] sm:$0xff]  ;;  %v5156_v15 = vld [vmem:[#allocation2 + $0x88] sm:$0xff] }
 0x4a6   :  { %v3533_v20 = vmul.f32 %v5136_v19, %v2492_v17  ;;  %v3535_v22 = vmul.f32 %v5137_v21, %v2569_v18  ;;  %v5157_v17 = vld [vmem:[#allocation2 + $0x98] sm:$0xff]  ;;  %v5158_v21 = vld [vmem:[#allocation2 + $0x180] sm:$0xff] }
 0x4a7   :  { %3596 = vst [vmem:[#allocation5 + $0x120] sm:$0xff] %v3532_v14  ;;  %3598 = vst [vmem:[#allocation5 + $0x130] sm:$0xff] %v3534_v16 }
 0x4a8   :  { %3597 = vst [vmem:[#allocation5 + $0x128] sm:$0xff] %v3533_v20  ;;  %3599 = vst [vmem:[#allocation5 + $0x138] sm:$0xff] %v3535_v22 }
 0x4b0   :  { %v2638_v23 = vpop.f32.mrb[42].mxu1  ;;  %v2715_v24 = vpop.f32.mrb[42].mxu0 }
 0x4b1   :  { %v3504_v26 = vmul.f32 %v5138_v25, %v2638_v23  ;;  %v3506_v28 = vmul.f32 %v5139_v27, %v2715_v24  ;;  %v2640_v30 = vpop.f32.mrb[43].mxu1  ;;  %v2717_v31 = vpop.f32.mrb[43].mxu0  ;;  %v5159_v23 = vld [vmem:[#allocation2 + $0x190] sm:$0xff]  ;;  %v5160_v27 = vld [vmem:[#allocation2 + $0x188] sm:$0xff] }
 0x4b2   :  { %v3505_v33 = vmul.f32 %v5140_v32, %v2640_v30  ;;  %v3507_v35 = vmul.f32 %v5141_v34, %v2717_v31  ;;  %v5161_v30 = vld [vmem:[#allocation2 + $0x198] sm:$0xff]  ;;  %v5162_v34 = vld [vmem:[#allocation2 + $0xa0] sm:$0xff] }
 0x4b3   :  { %3568 = vst [vmem:[#allocation5 + $0x40] sm:$0xff] %v3504_v26  ;;  %3570 = vst [vmem:[#allocation5 + $0x50] sm:$0xff] %v3506_v28 }
 0x4b4   :  { %3569 = vst [vmem:[#allocation5 + $0x48] sm:$0xff] %v3505_v33  ;;  %3571 = vst [vmem:[#allocation5 + $0x58] sm:$0xff] %v3507_v35  ;;  %v2644_v36 = vpop.f32.mrb[44].mxu1  ;;  %v2721_v37 = vpop.f32.mrb[44].mxu0 }
 0x4b5   :  { %v3536_v39 = vmul.f32 %v5142_v38, %v2644_v36  ;;  %v3538_v41 = vmul.f32 %v5143_v40, %v2721_v37  ;;  %v2646_v42 = vpop.f32.mrb[45].mxu1  ;;  %v2723_v43 = vpop.f32.mrb[45].mxu0  ;;  %v5163_v36 = vld [vmem:[#allocation2 + $0xb0] sm:$0xff]  ;;  %v5164_v40 = vld [vmem:[#allocation2 + $0xa8] sm:$0xff] }
 0x4b6   :  { %v3537_v47 = vmul.f32 %v5144_v45, %v2646_v42  ;;  %v3539_v49 = vmul.f32 %v5145_v48, %v2723_v43  ;;  %v5165_v42 = vld [vmem:[#allocation2 + $0xb8] sm:$0xff]  ;;  %v5166_v48 = vld [vmem:[#allocation2 + $0x1a0] sm:$0xff] }
 0x4b7   :  { %3600 = vst [vmem:[#allocation5 + $0x140] sm:$0xff] %v3536_v39  ;;  %3602 = vst [vmem:[#allocation5 + $0x150] sm:$0xff] %v3538_v41 }
 0x4b8   :  { %3601 = vst [vmem:[#allocation5 + $0x148] sm:$0xff] %v3537_v47  ;;  %3603 = vst [vmem:[#allocation5 + $0x158] sm:$0xff] %v3539_v49 }
 0x4c0   :  { %v2792_v50 = vpop.f32.mrb[46].mxu1  ;;  %v2869_v29 = vpop.f32.mrb[46].mxu0 }
 0x4c1   :  { %v3508_v52 = vmul.f32 %v5146_v51, %v2792_v50  ;;  %v3510_v53 = vmul.f32 %v5147_v46, %v2869_v29  ;;  %v2794_v54 = vpop.f32.mrb[47].mxu1  ;;  %v2871_v44 = vpop.f32.mrb[47].mxu0  ;;  %v5167_v50 = vld [vmem:[#allocation2 + $0x1b0] sm:$0xff]  ;;  %v5168_v46 = vld [vmem:[#allocation2 + $0x1a8] sm:$0xff] }
 0x4c2   :  { %v3509_v56 = vmul.f32 %v5148_v55, %v2794_v54  ;;  %v3511_v58 = vmul.f32 %v5149_v57, %v2871_v44  ;;  %v5169_v54 = vld [vmem:[#allocation2 + $0x1b8] sm:$0xff]  ;;  %v5170_v57 = vld [vmem:[#allocation2 + $0xc0] sm:$0xff] }
 0x4c3   :  { %3572 = vst [vmem:[#allocation5 + $0x60] sm:$0xff] %v3508_v52  ;;  %3574 = vst [vmem:[#allocation5 + $0x70] sm:$0xff] %v3510_v53 }
 0x4c4   :  { %3573 = vst [vmem:[#allocation5 + $0x68] sm:$0xff] %v3509_v56  ;;  %3575 = vst [vmem:[#allocation5 + $0x78] sm:$0xff] %v3511_v58  ;;  %v2798_v59 = vpop.f32.mrb[48].mxu1  ;;  %v2875_v60 = vpop.f32.mrb[48].mxu0 }
 0x4c5   :  { %v3540_v62 = vmul.f32 %v5150_v61, %v2798_v59  ;;  %v3542_v0 = vmul.f32 %v5151_v63, %v2875_v60  ;;  %v2800_v1 = vpop.f32.mrb[49].mxu1  ;;  %v2877_v2 = vpop.f32.mrb[49].mxu0  ;;  %v5171_v59 = vld [vmem:[#allocation2 + $0xd0] sm:$0xff]  ;;  %v5172_v63 = vld [vmem:[#allocation2 + $0xc8] sm:$0xff] }
 0x4c6   :  { %v3541_v4 = vmul.f32 %v5152_v3, %v2800_v1  ;;  %v3543_v6 = vmul.f32 %v5153_v5, %v2877_v2  ;;  %v5173_v1 = vld [vmem:[#allocation2 + $0xd8] sm:$0xff]  ;;  %v5174_v5 = vld [vmem:[#allocation2 + $0x1c0] sm:$0xff] }
 0x4c7   :  { %3604 = vst [vmem:[#allocation5 + $0x160] sm:$0xff] %v3540_v62  ;;  %3606 = vst [vmem:[#allocation5 + $0x170] sm:$0xff] %v3542_v0 }
 0x4c8   :  { %3605 = vst [vmem:[#allocation5 + $0x168] sm:$0xff] %v3541_v4  ;;  %3607 = vst [vmem:[#allocation5 + $0x178] sm:$0xff] %v3543_v6 }
 0x4d0   :  { %v2946_v7 = vpop.f32.mrb[50].mxu1  ;;  %v3023_v8 = vpop.f32.mrb[50].mxu0 }
 0x4d1   :  { %v3512_v10 = vmul.f32 %v5154_v9, %v2946_v7  ;;  %v3514_v12 = vmul.f32 %v5155_v11, %v3023_v8  ;;  %v2948_v13 = vpop.f32.mrb[51].mxu1  ;;  %v3025_v14 = vpop.f32.mrb[51].mxu0  ;;  %v5175_v7 = vld [vmem:[#allocation2 + $0x1d0] sm:$0xff]  ;;  %v5176_v11 = vld [vmem:[#allocation2 + $0x1c8] sm:$0xff] }
 0x4d2   :  { %v3513_v16 = vmul.f32 %v5156_v15, %v2948_v13  ;;  %v3515_v18 = vmul.f32 %v5157_v17, %v3025_v14  ;;  %v5177_v13 = vld [vmem:[#allocation2 + $0x1d8] sm:$0xff]  ;;  %v5178_v17 = vld [vmem:[#allocation2 + $0xe0] sm:$0xff] }
 0x4d3   :  { %3576 = vst [vmem:[#allocation5 + $0x80] sm:$0xff] %v3512_v10  ;;  %3578 = vst [vmem:[#allocation5 + $0x90] sm:$0xff] %v3514_v12 }
 0x4d4   :  { %3577 = vst [vmem:[#allocation5 + $0x88] sm:$0xff] %v3513_v16  ;;  %3579 = vst [vmem:[#allocation5 + $0x98] sm:$0xff] %v3515_v18  ;;  %v2952_v19 = vpop.f32.mrb[52].mxu1  ;;  %v3029_v20 = vpop.f32.mrb[52].mxu0 }
 0x4d5   :  { %v3544_v22 = vmul.f32 %v5158_v21, %v2952_v19  ;;  %v3546_v24 = vmul.f32 %v5159_v23, %v3029_v20  ;;  %v2954_v25 = vpop.f32.mrb[53].mxu1  ;;  %v3031_v26 = vpop.f32.mrb[53].mxu0  ;;  %v5179_v19 = vld [vmem:[#allocation2 + $0xf0] sm:$0xff]  ;;  %v5180_v23 = vld [vmem:[#allocation2 + $0xe8] sm:$0xff] }
 0x4d6   :  { %v3545_v28 = vmul.f32 %v5160_v27, %v2954_v25  ;;  %v3547_v31 = vmul.f32 %v5161_v30, %v3031_v26  ;;  %v5181_v25 = vld [vmem:[#allocation2 + $0xf8] sm:$0xff]  ;;  %v5182_v30 = vld [vmem:[#allocation2 + $0x1e0] sm:$0xff] }
 0x4d7   :  { %3608 = vst [vmem:[#allocation5 + $0x180] sm:$0xff] %v3544_v22  ;;  %3610 = vst [vmem:[#allocation5 + $0x190] sm:$0xff] %v3546_v24 }
 0x4d8   :  { %3609 = vst [vmem:[#allocation5 + $0x188] sm:$0xff] %v3545_v28  ;;  %3611 = vst [vmem:[#allocation5 + $0x198] sm:$0xff] %v3547_v31 }
 0x4e0   :  { %v3100_v32 = vpop.f32.mrb[54].mxu1  ;;  %v3177_v33 = vpop.f32.mrb[54].mxu0 }
 0x4e1   :  { %v3516_v35 = vmul.f32 %v5162_v34, %v3100_v32  ;;  %v3518_v37 = vmul.f32 %v5163_v36, %v3177_v33  ;;  %v3102_v38 = vpop.f32.mrb[55].mxu1  ;;  %v3179_v39 = vpop.f32.mrb[55].mxu0  ;;  %v5183_v32 = vld [vmem:[#allocation2 + $0x1f0] sm:$0xff]  ;;  %v5184_v36 = vld [vmem:[#allocation2 + $0x1e8] sm:$0xff] }
 0x4e2   :  { %v3517_v41 = vmul.f32 %v5164_v40, %v3102_v38  ;;  %v3519_v43 = vmul.f32 %v5165_v42, %v3179_v39  ;;  %v5185_v38 = vld [vmem:[#allocation2 + $0x1f8] sm:$0xff] }
 0x4e3   :  { %3580 = vst [vmem:[#allocation5 + $0xa0] sm:$0xff] %v3516_v35  ;;  %3582 = vst [vmem:[#allocation5 + $0xb0] sm:$0xff] %v3518_v37 }
 0x4e4   :  { %3581 = vst [vmem:[#allocation5 + $0xa8] sm:$0xff] %v3517_v41  ;;  %3583 = vst [vmem:[#allocation5 + $0xb8] sm:$0xff] %v3519_v43  ;;  %v3106_v45 = vpop.f32.mrb[56].mxu1  ;;  %v3183_v47 = vpop.f32.mrb[56].mxu0 }
 0x4e5   :  { %v3548_v49 = vmul.f32 %v5166_v48, %v3106_v45  ;;  %v3550_v29 = vmul.f32 %v5167_v50, %v3183_v47  ;;  %v3108_v51 = vpop.f32.mrb[57].mxu1  ;;  %v3185_v52 = vpop.f32.mrb[57].mxu0 }
 0x4e6   :  { %v3549_v53 = vmul.f32 %v5168_v46, %v3108_v51  ;;  %v3551_v44 = vmul.f32 %v5169_v54, %v3185_v52 }
 0x4e7   :  { %3612 = vst [vmem:[#allocation5 + $0x1a0] sm:$0xff] %v3548_v49  ;;  %3614 = vst [vmem:[#allocation5 + $0x1b0] sm:$0xff] %v3550_v29 }
 0x4e8   :  { %3613 = vst [vmem:[#allocation5 + $0x1a8] sm:$0xff] %v3549_v53  ;;  %3615 = vst [vmem:[#allocation5 + $0x1b8] sm:$0xff] %v3551_v44 }
 0x4f0   :  { %v3254_v55 = vpop.f32.mrb[58].mxu1  ;;  %v3331_v56 = vpop.f32.mrb[58].mxu0 }
 0x4f1   :  { %v3520_v58 = vmul.f32 %v5170_v57, %v3254_v55  ;;  %v3522_v60 = vmul.f32 %v5171_v59, %v3331_v56  ;;  %v3256_v61 = vpop.f32.mrb[59].mxu1  ;;  %v3333_v62 = vpop.f32.mrb[59].mxu0 }
 0x4f2   :  { %v3521_v0 = vmul.f32 %v5172_v63, %v3256_v61  ;;  %v3523_v2 = vmul.f32 %v5173_v1, %v3333_v62 }
 0x4f3   :  { %3584 = vst [vmem:[#allocation5 + $0xc0] sm:$0xff] %v3520_v58  ;;  %3586 = vst [vmem:[#allocation5 + $0xd0] sm:$0xff] %v3522_v60 }
 0x4f4   :  { %3585 = vst [vmem:[#allocation5 + $0xc8] sm:$0xff] %v3521_v0  ;;  %3587 = vst [vmem:[#allocation5 + $0xd8] sm:$0xff] %v3523_v2  ;;  %v3260_v3 = vpop.f32.mrb[60].mxu1  ;;  %v3337_v4 = vpop.f32.mrb[60].mxu0 }
 0x4f5   :  { %v3552_v6 = vmul.f32 %v5174_v5, %v3260_v3  ;;  %v3554_v8 = vmul.f32 %v5175_v7, %v3337_v4  ;;  %v3262_v9 = vpop.f32.mrb[61].mxu1  ;;  %v3339_v10 = vpop.f32.mrb[61].mxu0 }
 0x4f6   :  { %v3553_v12 = vmul.f32 %v5176_v11, %v3262_v9  ;;  %v3555_v14 = vmul.f32 %v5177_v13, %v3339_v10 }
 0x4f7   :  { %3616 = vst [vmem:[#allocation5 + $0x1c0] sm:$0xff] %v3552_v6  ;;  %3618 = vst [vmem:[#allocation5 + $0x1d0] sm:$0xff] %v3554_v8 }
 0x4f8   :  { %3617 = vst [vmem:[#allocation5 + $0x1c8] sm:$0xff] %v3553_v12  ;;  %3619 = vst [vmem:[#allocation5 + $0x1d8] sm:$0xff] %v3555_v14 }
 0x500   :  { %v3408_v15 = vpop.f32.mrb[62].mxu1  ;;  %v3485_v16 = vpop.f32.mrb[62].mxu0 }
 0x501   :  { %v3524_v18 = vmul.f32 %v5178_v17, %v3408_v15  ;;  %v3526_v20 = vmul.f32 %v5179_v19, %v3485_v16  ;;  %v3410_v21 = vpop.f32.mrb[63].mxu1  ;;  %v3487_v22 = vpop.f32.mrb[63].mxu0 }
 0x502   :  { %v3525_v24 = vmul.f32 %v5180_v23, %v3410_v21  ;;  %v3527_v26 = vmul.f32 %v5181_v25, %v3487_v22 }
 0x503   :  { %3588 = vst [vmem:[#allocation5 + $0xe0] sm:$0xff] %v3524_v18  ;;  %3590 = vst [vmem:[#allocation5 + $0xf0] sm:$0xff] %v3526_v20 }
 0x504   :  { %3589 = vst [vmem:[#allocation5 + $0xe8] sm:$0xff] %v3525_v24  ;;  %3591 = vst [vmem:[#allocation5 + $0xf8] sm:$0xff] %v3527_v26  ;;  %v3414_v27 = vpop.f32.mrb[64].mxu1  ;;  %v3491_v28 = vpop.f32.mrb[64].mxu0 }
 0x505   :  { %v3556_v31 = vmul.f32 %v5182_v30, %v3414_v27  ;;  %v3558_v33 = vmul.f32 %v5183_v32, %v3491_v28  ;;  %v3416_v34 = vpop.f32.mrb[65].mxu1  ;;  %v3493_v35 = vpop.f32.mrb[65].mxu0 }
 0x506   :  { %v3557_v37 = vmul.f32 %v5184_v36, %v3416_v34  ;;  %v3559_v39 = vmul.f32 %v5185_v38, %v3493_v35 }
 0x507   :  { %3620 = vst [vmem:[#allocation5 + $0x1e0] sm:$0xff] %v3556_v31  ;;  %3622 = vst [vmem:[#allocation5 + $0x1f0] sm:$0xff] %v3558_v33 }
 0x508   :  { %3621 = vst [vmem:[#allocation5 + $0x1e8] sm:$0xff] %v3557_v37  ;;  %3623 = vst [vmem:[#allocation5 + $0x1f8] sm:$0xff] %v3559_v39 }
 0x509   :  { %5219 = shalt.err (!%p5216_p12)
}
 0x50a   :  { %s5220_s16 = scalar_lea.hbm %s7737_s5, 8192 }
 0x50b   :  { %p5221_p13 = scmp.ne.s32.totalorder %s7737_s5, %s5220_s16  ;;  %p5224_p0 = scmp.lt.u32.totalorder %s5220_s16, %s7737_s5 }
 0x50d   :  { %p5226_p1 = pnand %p5224_p0, %p5221_p13 }
 0x50f   :  { %5229 = shalt.err (!%p5226_p1)
}
 0x510   :  { %3635 = dma.vmem_to_hbm [thread:$0]  %s3630_s0, 8192, %s7737_s5, [#allocation4], %s5235_s28, %s5235_s28, %s5236_s29  }
 0x511   :  { %5232 = dma.done.wait [#allocation4], 8192  }
 0x512   :  { %5233 = vsyncadd [#allocation4], 4294959104 }
 0x513   :  { %3639 = vsyncpa [#allocation3], 1 }
 0x514   :  { %3640 = vsyncpa [#allocation4], 1 }

</bundles_post_ra>
